<compile_context>
chip_gen: v7x
topology: tpu7x:2x2x1
jax: 0.10.0
libtpu: 0.0.40
codegen_flags: <defaults>
</compile_context>

<pallas_src>
import functools

import numpy as np
import jax
import jax.numpy as jnp
from jax.experimental import pallas as pl
from jax.experimental.pallas import tpu as pltpu


# ----------------------------------------------------------------------------
# Fused kernel: bottom-up per-pixel gate + fused gating + 3x3 conv + BN + ReLU.
# Operates on channel-packed NHWC tiles (P batch images share the C2 lanes).
# ----------------------------------------------------------------------------
def _fused_kernel(td_ref, xh_ref, xhh_ref, xl_ref, xlh_ref,
                  buw1_ref, bub1_ref, buw2_ref, bub2_ref,
                  pw_ref, pb_ref,
                  out_ref, xs_ref, acc_ref):
    TH, Wp, C2 = xh_ref.shape           # main slab of the pre-padded input
    W = out_ref.shape[1]
    M = TH * Wp

    td = td_ref[...]                    # (1, C2) f32 sigmoid(topdown MLP(GAP)), precomputed
    w1 = buw1_ref[...]                  # bf16 weights, read once per tile
    w2 = buw2_ref[...]
    b1 = bub1_ref[...]                  # f32 biases
    b2 = bub2_ref[...]

    def gate(xh, xl):
        """Bottom-up gate + fused gating for one flattened (m, C2) row chunk."""
        t = jnp.dot(xl.astype(jnp.bfloat16), w1,
                    preferred_element_type=jnp.float32) + b1
        t = jnp.maximum(t, 0.0)
        t = jnp.dot(t.astype(jnp.bfloat16), w2,
                    preferred_element_type=jnp.float32) + b2
        bu = pl.reciprocal(1.0 + jnp.exp(-t), approx=True)      # sigmoid on the EUP
        # NOTE: the 2x gating scale is folded into the 3x3 conv weights.
        return (xl * td + xh * bu).astype(xs_ref.dtype)

    # ---- gating, row-chunked so temporaries stay (mostly) vreg resident ----
    RC = max(1, 256 // Wp, -(-TH // 8))      # ~256 flattened rows per chunk, <= 8 chunks
    r0 = 0
    while r0 < TH:
        rc = min(RC, TH - r0)
        xh = xh_ref[r0:r0 + rc].astype(jnp.float32).reshape(rc * Wp, C2)
        xl = xl_ref[r0:r0 + rc].astype(jnp.float32).reshape(rc * Wp, C2)
        xs_ref[r0:r0 + rc] = gate(xh, xl).reshape(rc, Wp, C2)
        r0 += rc
    xh = xhh_ref[...].astype(jnp.float32).reshape(2 * Wp, C2)   # merged 2-row halo
    xl = xlh_ref[...].astype(jnp.float32).reshape(2 * Wp, C2)
    xs_ref[TH:TH + 2] = gate(xh, xl).reshape(2, Wp, C2)

    # ---- 3x3 conv (padding supplied by the pre-padded zeros) + BN + ReLU ----
    # One aligned bf16 MXU matmul per tap on the full padded width; the dx
    # column shift is an XLU roll of the product (wrapped rows only land in
    # columns >= W, which are sliced away below).  Per-dy accumulation in
    # vregs, only 3 accumulator writes per tile.
    for dy in range(3):
        slab = xs_ref[dy:dy + TH].reshape(M, C2)     # bf16, sublane-aligned, free reshape
        acc_dy = jnp.dot(slab, pw_ref[dy, 0], preferred_element_type=jnp.float32)
        for dx in (1, 2):
            p = jnp.dot(slab, pw_ref[dy, dx], preferred_element_type=jnp.float32)
            acc_dy = acc_dy + pltpu.roll(p, M - dx, axis=0)     # == shift up by dx rows
        if dy == 0:
            acc_ref[...] = acc_dy
        else:
            acc_ref[...] += acc_dy
    res = acc_ref[...].reshape(TH, Wp, C2)[:, :W, :] + pb_ref[...]
    out_ref[...] = jnp.maximum(res, 0.0).astype(out_ref.dtype)


# ----------------------------------------------------------------------------
# Wrapper helpers
# ----------------------------------------------------------------------------
def _round_up(x, m):
    return (x + m - 1) // m * m


def _vmem_capacity_bytes():
    try:
        return int(pltpu.get_tpu_info().vmem_capacity_bytes)
    except Exception:
        return 64 << 20                  # conservative: v7x per-TensorCore VMEM


def _pick_tile_rows(H, Wp, C2, NP, budget_bytes):
    """Largest even tile height whose TH-proportional VMEM fits the budget."""
    # double-buffered xh/xl slabs + double-buffered output + bf16 xs + f32 acc
    per_row = 30 * Wp * C2
    th = budget_bytes // per_row
    th = min(th, H, max(8, 8192 // Wp))   # keep per-tap matmul products sane
    if NP < 2 and th >= H and H > 2:
        th = (H + 1) // 2                 # >=2 grid steps so both TCs get work
    th = max(2, th - th % 2)              # even: merged 2-row halo block needs it
    return int(th)


def _pack_params(p, P):
    """Block-diagonal weight replication so P images share the lanes, 2x gating
    scale folded into the 3x3 conv, MXU operands pre-cast to bf16 (biases f32)."""
    eyeP = jnp.eye(P, dtype=jnp.float32)
    bd = lambda w: jnp.kron(eyeP, w.astype(jnp.float32))      # (Ci,Co) -> (P*Ci,P*Co)
    tb = lambda b: jnp.tile(b.astype(jnp.float32), (1, P))    # (1,Co)  -> (1,P*Co)
    post_w = jax.vmap(jax.vmap(bd))(2.0 * p["post_w"])        # fold 2x gating scale
    return dict(
        bu_w1=bd(p["bu_w1"]).astype(jnp.bfloat16), bu_b1=tb(p["bu_b1"]),
        bu_w2=bd(p["bu_w2"]).astype(jnp.bfloat16), bu_b2=tb(p["bu_b2"]),
        post_w=post_w.astype(jnp.bfloat16), post_b=tb(p["post_b"]))


def asym_bi_cha_fuse(xh_nchw, xl_nchw, params, *, tile_rows=None, lane_pack=None):
    N, C, H, W = xh_nchw.shape

    # Lane packing: 4 images per 256-lane group when the batch allows it
    # (fills the 256-wide MXU on v6e/v7x), otherwise 2 images per 128 lanes.
    P = lane_pack if lane_pack is not None else (4 if N % 4 == 0 else 2)
    pad_n = (-N) % P
    if pad_n:
        xh_nchw = jnp.pad(xh_nchw, ((0, pad_n),) + ((0, 0),) * 3)
        xl_nchw = jnp.pad(xl_nchw, ((0, pad_n),) + ((0, 0),) * 3)
    Np = N + pad_n
    NP = Np // P
    C2 = P * C
    Cb = params["bu_w1"].shape[1]
    CbP = P * Cb
    Wp = _round_up(W + 2, 16)            # conv halo + bf16 sublane-tile friendly

    # Generation-aware VMEM budget (v7x has only 64 MiB per TensorCore).
    vmem_cap = _vmem_capacity_bytes()
    vmem_limit = int(min((vmem_cap * 3) // 4, 96 << 20))
    if tile_rows is None:
        TH = _pick_tile_rows(H, Wp, C2, NP,
                             max(4 << 20, vmem_limit // 2 - (4 << 20)))
    else:
        if tile_rows < 2 or tile_rows % 2:
            raise ValueError("tile_rows must be an even integer >= 2")
        TH = int(tile_rows)
    H_pad = _round_up(H, TH)
    n_tiles = H_pad // TH

    # ---- topdown gate hoisted out of the kernel (tiny 1-row MLP on the GAP) --
    xh32 = xh_nchw.astype(jnp.float32)
    gap = jnp.mean(xh32, axis=(2, 3))                                   # (Np, C)
    t = jax.nn.relu(gap @ params["td_w1"] + params["td_b1"])
    td = jax.nn.sigmoid(t @ params["td_w2"] + params["td_b2"])          # (Np, C)
    td = td.reshape(NP, 1, C2).astype(jnp.float32)                      # pack along lanes

    def pack(x):   # NCHW -> channel-packed, zero-padded NHWC  (NP, H_pad+2, Wp, P*C)
        x = x.reshape(NP, P, C, H, W)
        x = jnp.transpose(x, (0, 3, 4, 1, 2)).reshape(NP, H, W, C2)
        return jnp.pad(x, ((0, 0), (1, 1 + H_pad - H), (1, Wp - W - 1), (0, 0)))

    xh_p = pack(xh_nchw.astype(jnp.float32))
    xl_p = pack(xl_nchw.astype(jnp.float32))
    pk = _pack_params(params, P)

    sq = pl.Squeezed()
    img_main = pl.BlockSpec((sq, TH, Wp, C2), lambda n, t: (n, t, 0, 0))
    img_halo = pl.BlockSpec((sq, 2, Wp, C2),
                            lambda n, t: (n, (t + 1) * (TH // 2), 0, 0))
    td_spec = pl.BlockSpec((sq, 1, C2), lambda n, t: (n, 0, 0))

    def wfull(shape):
        return pl.BlockSpec(shape, lambda n, t: (0,) * len(shape))

    fused = pl.pallas_call(
        _fused_kernel,
        out_shape=jax.ShapeDtypeStruct((NP, H_pad, W, C2), jnp.float32),
        grid_spec=pltpu.PrefetchScalarGridSpec(
            num_scalar_prefetch=0,
            grid=(NP, n_tiles),
            in_specs=[
                td_spec,
                img_main, img_halo,                      # xh slab + merged 2-row halo
                img_main, img_halo,                      # xl slab + merged 2-row halo
                wfull((C2, CbP)), wfull((1, CbP)),       # bottom-up MLP (bf16 W, f32 b)
                wfull((CbP, C2)), wfull((1, C2)),
                wfull((3, 3, C2, C2)), wfull((1, C2)),   # post 3x3 conv (bf16 W, f32 b)
            ],
            out_specs=pl.BlockSpec((sq, TH, W, C2), lambda n, t: (n, t, 0, 0)),
            scratch_shapes=[pltpu.VMEM((TH + 2, Wp, C2), jnp.bfloat16),   # xs slab
                            pltpu.VMEM((TH * Wp, C2), jnp.float32)],      # conv acc
        ),
        compiler_params=pltpu.CompilerParams(
            dimension_semantics=("parallel", "parallel"),
            vmem_limit_bytes=vmem_limit),
    )
    out = fused(td, xh_p, xh_p, xl_p, xl_p,
                pk["bu_w1"], pk["bu_b1"], pk["bu_w2"], pk["bu_b2"],
                pk["post_w"], pk["post_b"])

    out = out[:, :H].reshape(NP, H, W, P, C)
    out = jnp.transpose(out, (0, 3, 4, 1, 2)).reshape(Np, C, H, W)
    return out[:N]


# ----------------------------------------------------------------------------
# Deterministic parameter init + BN folding (inference-mode BN, eps=1e-5)
# ----------------------------------------------------------------------------
def _fold_bn(w_io, b_o, gamma, beta, mean, var, eps=1e-5):
    scale = gamma / jnp.sqrt(var + eps)
    return w_io * scale, (b_o - mean) * scale + beta


def init_params(key, channels=64, r=4, dtype=jnp.float32):
    Cb = channels // r
    ks = jax.random.split(key, 16)

    def conv_w(k, cin, cout):
        return jax.random.normal(k, (cin, cout), dtype) / jnp.sqrt(float(cin))

    def conv_b(k, cout):
        return 0.05 * jax.random.normal(k, (cout,), dtype)

    def bn(k, c):
        k1, k2, k3, k4 = jax.random.split(k, 4)
        gamma = 1.0 + 0.1 * jax.random.normal(k1, (c,), dtype)
        beta = 0.1 * jax.random.normal(k2, (c,), dtype)
        mean = 0.1 * jax.random.normal(k3, (c,), dtype)
        var = 1.0 + 0.1 * jax.random.uniform(k4, (c,), dtype)
        return gamma, beta, mean, var

    p = {}
    # topdown branch
    w, b = _fold_bn(conv_w(ks[0], channels, Cb), conv_b(ks[1], Cb), *bn(ks[2], Cb))
    p["td_w1"], p["td_b1"] = w, b[None, :]
    w, b = _fold_bn(conv_w(ks[3], Cb, channels), conv_b(ks[4], channels), *bn(ks[5], channels))
    p["td_w2"], p["td_b2"] = w, b[None, :]
    # bottomup branch
    w, b = _fold_bn(conv_w(ks[6], channels, Cb), conv_b(ks[7], Cb), *bn(ks[8], Cb))
    p["bu_w1"], p["bu_b1"] = w, b[None, :]
    w, b = _fold_bn(conv_w(ks[9], Cb, channels), conv_b(ks[10], channels), *bn(ks[11], channels))
    p["bu_w2"], p["bu_b2"] = w, b[None, :]
    # post 3x3 conv: weights stored as (3, 3, Cin, Cout)
    wp = jax.random.normal(ks[12], (3, 3, channels, channels), dtype) / jnp.sqrt(9.0 * channels)
    bp = conv_b(ks[13], channels)
    wp, bp = _fold_bn(wp, bp, *bn(ks[14], channels))
    p["post_w"], p["post_b"] = wp, bp[None, :]
    return p


# ----------------------------------------------------------------------------
# Pure-JAX reference (same math, XLA ops, full f32) for verification
# ----------------------------------------------------------------------------
def ref_forward(xh_nchw, xl_nchw, p):
    xh = jnp.transpose(xh_nchw, (0, 2, 3, 1)).astype(jnp.float32)
    xl = jnp.transpose(xl_nchw, (0, 2, 3, 1)).astype(jnp.float32)
    gap = jnp.mean(xh, axis=(1, 2), keepdims=True)
    t = jax.nn.relu(gap @ p["td_w1"] + p["td_b1"])
    td = jax.nn.sigmoid(t @ p["td_w2"] + p["td_b2"])
    b = jax.nn.relu(xl @ p["bu_w1"] + p["bu_b1"])
    bu = jax.nn.sigmoid(b @ p["bu_w2"] + p["bu_b2"])
    xs = 2.0 * xl * td + 2.0 * xh * bu
    N, H, W, C = xs.shape
    xp = jnp.pad(xs, ((0, 0), (1, 1), (1, 1), (0, 0)))
    acc = jnp.zeros_like(xs)
    for dy in range(3):
        for dx in range(3):
            acc = acc + jnp.einsum("nhwc,cd->nhwd",
                                   xp[:, dy:dy + H, dx:dx + W, :], p["post_w"][dy, dx])
    out = jax.nn.relu(acc + p["post_b"])
    return jnp.transpose(out, (0, 3, 1, 2))


if __name__ == "__main__":
    N, C, H, W = 2, 64, 16, 16      # channels=64, r=4 (module defaults), small spatial
    key = jax.random.PRNGKey(0)
    k_xh, k_xl, k_p = jax.random.split(key, 3)
    xh = jax.random.normal(k_xh, (N, C, H, W), jnp.float32)
    xl = jax.random.normal(k_xl, (N, C, H, W), jnp.float32)
    params = init_params(k_p, channels=C, r=4)

    # tile_rows=8 -> 2 spatial tiles per image pair, exercising the halo path.
    fwd = jax.jit(functools.partial(asym_bi_cha_fuse, tile_rows=8))
    out = jax.block_until_ready(fwd(xh, xl, params))
    assert out.shape == (N, C, H, W)

    ref = ref_forward(xh, xl, params)
    # bf16 MXU operands + approx-reciprocal sigmoid -> loose tolerance vs the
    # full-f32 reference.
    np.testing.assert_allclose(np.asarray(out), np.asarray(ref), atol=8e-2, rtol=8e-2)

    # also exercise the automatic tile / VMEM-budget path
    out2 = jax.block_until_ready(jax.jit(asym_bi_cha_fuse)(xh, xl, params))
    np.testing.assert_allclose(np.asarray(out2), np.asarray(ref), atol=8e-2, rtol=8e-2)

    print("KERNEL_OK")
</pallas_src>

<mosaic_0001>
module attributes {stable_mosaic.version = 11 : i64} {
  func.func @_fused_kernel(%arg0: i32, %arg1: i32, %arg2: memref<1x1x128xf32, #tpu.memory_space<vmem>>, %arg3: memref<1x8x32x128xf32, #tpu.memory_space<vmem>>, %arg4: memref<1x2x32x128xf32, #tpu.memory_space<vmem>>, %arg5: memref<1x8x32x128xf32, #tpu.memory_space<vmem>>, %arg6: memref<1x2x32x128xf32, #tpu.memory_space<vmem>>, %arg7: memref<128x32xbf16, #tpu.memory_space<vmem>>, %arg8: memref<1x32xf32, #tpu.memory_space<vmem>>, %arg9: memref<32x128xbf16, #tpu.memory_space<vmem>>, %arg10: memref<1x128xf32, #tpu.memory_space<vmem>>, %arg11: memref<3x3x128x128xbf16, #tpu.memory_space<vmem>>, %arg12: memref<1x128xf32, #tpu.memory_space<vmem>>, %arg13: memref<1x8x16x128xf32, #tpu.memory_space<vmem>>, %arg14: memref<10x32x128xbf16, #tpu.memory_space<vmem>>, %arg15: memref<256x128xf32, #tpu.memory_space<vmem>>) attributes {dimension_semantics = [#tpu.dimension_semantics<parallel>, #tpu.dimension_semantics<parallel>], iteration_bounds = array<i64: 1, 2>, scalar_prefetch = 0 : i64, scratch_operands = 2 : i64, tpu.core_type = #tpu.core_type<tc>, window_params = [{transform_indices = @transform_0, window_bounds = array<i64: 1, 1, 128>}, {transform_indices = @transform_1, window_bounds = array<i64: 1, 8, 32, 128>}, {transform_indices = @transform_2, window_bounds = array<i64: 1, 2, 32, 128>}, {transform_indices = @transform_3, window_bounds = array<i64: 1, 8, 32, 128>}, {transform_indices = @transform_4, window_bounds = array<i64: 1, 2, 32, 128>}, {pipeline_mode = #tpu.pipeline_mode<synchronous>, transform_indices = @transform_5, window_bounds = array<i64: 128, 32>}, {pipeline_mode = #tpu.pipeline_mode<synchronous>, transform_indices = @transform_6, window_bounds = array<i64: 1, 32>}, {pipeline_mode = #tpu.pipeline_mode<synchronous>, transform_indices = @transform_7, window_bounds = array<i64: 32, 128>}, {pipeline_mode = #tpu.pipeline_mode<synchronous>, transform_indices = @transform_8, window_bounds = array<i64: 1, 128>}, {pipeline_mode = #tpu.pipeline_mode<synchronous>, transform_indices = @transform_9, window_bounds = array<i64: 3, 3, 128, 128>}, {pipeline_mode = #tpu.pipeline_mode<synchronous>, transform_indices = @transform_10, window_bounds = array<i64: 1, 128>}, {transform_indices = @transform_11, window_bounds = array<i64: 1, 8, 16, 128>}]} {
    %c0 = arith.constant 0 : index
    %c0_0 = arith.constant 0 : index
    %c0_1 = arith.constant 0 : index
    %0 = vector.load %arg2[%c0, %c0_0, %c0_1] : memref<1x1x128xf32, #tpu.memory_space<vmem>>, vector<1x1x128xf32>
    %1 = vector.shape_cast %0 : vector<1x1x128xf32> to vector<1x128xf32>
    %c0_2 = arith.constant 0 : index
    %c0_3 = arith.constant 0 : index
    %2 = vector.load %arg7[%c0_2, %c0_3] : memref<128x32xbf16, #tpu.memory_space<vmem>>, vector<128x32xbf16>
    %c0_4 = arith.constant 0 : index
    %c0_5 = arith.constant 0 : index
    %3 = vector.load %arg9[%c0_4, %c0_5] : memref<32x128xbf16, #tpu.memory_space<vmem>>, vector<32x128xbf16>
    %c0_6 = arith.constant 0 : index
    %c0_7 = arith.constant 0 : index
    %4 = vector.load %arg8[%c0_6, %c0_7] : memref<1x32xf32, #tpu.memory_space<vmem>>, vector<1x32xf32>
    %c0_8 = arith.constant 0 : index
    %c0_9 = arith.constant 0 : index
    %5 = vector.load %arg10[%c0_8, %c0_9] : memref<1x128xf32, #tpu.memory_space<vmem>>, vector<1x128xf32>
    %c0_10 = arith.constant 0 : index
    %c0_11 = arith.constant 0 : index
    %c0_12 = arith.constant 0 : index
    %c0_13 = arith.constant 0 : index
    %6 = vector.load %arg3[%c0_10, %c0_11, %c0_12, %c0_13] : memref<1x8x32x128xf32, #tpu.memory_space<vmem>>, vector<1x8x32x128xf32>
    %7 = vector.shape_cast %6 : vector<1x8x32x128xf32> to vector<8x32x128xf32>
    %8 = vector.shape_cast %7 : vector<8x32x128xf32> to vector<256x128xf32>
    %c0_14 = arith.constant 0 : index
    %c0_15 = arith.constant 0 : index
    %c0_16 = arith.constant 0 : index
    %c0_17 = arith.constant 0 : index
    %9 = vector.load %arg5[%c0_14, %c0_15, %c0_16, %c0_17] : memref<1x8x32x128xf32, #tpu.memory_space<vmem>>, vector<1x8x32x128xf32>
    %10 = vector.shape_cast %9 : vector<1x8x32x128xf32> to vector<8x32x128xf32>
    %11 = vector.shape_cast %10 : vector<8x32x128xf32> to vector<256x128xf32>
    %12 = arith.truncf %11 : vector<256x128xf32> to vector<256x128xbf16>
    %cst = arith.constant dense<0.000000e+00> : vector<256x32xf32>
    %13 = tpu.matmul %12, %2, %cst {dimension_numbers = #tpu.dot_dimension_numbers<[1], [0], [0], [1], [0, 0, 1, 1], [], []>} : vector<256x128xbf16>, vector<128x32xbf16>, vector<256x32xf32> -> vector<256x32xf32>
    %14 = vector.broadcast %4 : vector<1x32xf32> to vector<256x32xf32>
    %15 = arith.addf %13, %14 : vector<256x32xf32>
    %cst_18 = arith.constant 0.000000e+00 : f32
    %16 = vector.broadcast %cst_18 : f32 to vector<256x32xf32>
    %17 = arith.maximumf %15, %16 : vector<256x32xf32>
    %18 = arith.truncf %17 : vector<256x32xf32> to vector<256x32xbf16>
    %cst_19 = arith.constant dense<0.000000e+00> : vector<256x128xf32>
    %19 = tpu.matmul %18, %3, %cst_19 {dimension_numbers = #tpu.dot_dimension_numbers<[1], [0], [0], [1], [0, 0, 1, 1], [], []>} : vector<256x32xbf16>, vector<32x128xbf16>, vector<256x128xf32> -> vector<256x128xf32>
    %20 = vector.broadcast %5 : vector<1x128xf32> to vector<256x128xf32>
    %21 = arith.addf %19, %20 : vector<256x128xf32>
    %cst_20 = arith.constant 0.000000e+00 : f32
    %22 = vector.broadcast %cst_20 : f32 to vector<256x128xf32>
    %23 = arith.subf %22, %21 : vector<256x128xf32>
    %24 = math.exp %23 : vector<256x128xf32>
    %cst_21 = arith.constant 1.000000e+00 : f32
    %25 = vector.broadcast %cst_21 : f32 to vector<256x128xf32>
    %26 = arith.addf %25, %24 : vector<256x128xf32>
    %27 = tpu.reciprocal %26 {approx = true} : vector<256x128xf32> -> vector<256x128xf32>
    %28 = vector.broadcast %1 : vector<1x128xf32> to vector<256x128xf32>
    %29 = arith.mulf %11, %28 : vector<256x128xf32>
    %30 = arith.mulf %8, %27 : vector<256x128xf32>
    %31 = arith.addf %29, %30 : vector<256x128xf32>
    %32 = arith.truncf %31 : vector<256x128xf32> to vector<256x128xbf16>
    %33 = vector.shape_cast %32 : vector<256x128xbf16> to vector<8x32x128xbf16>
    %c0_22 = arith.constant 0 : index
    %c0_23 = arith.constant 0 : index
    %c0_24 = arith.constant 0 : index
    %34 = vector.load %arg14[%c0_22, %c0_23, %c0_24] : memref<10x32x128xbf16, #tpu.memory_space<vmem>>, vector<8x32x128xbf16>
    tpu.vector_store %arg14[%c0_22, %c0_23, %c0_24], %33 {strides = array<i32>} : memref<10x32x128xbf16, #tpu.memory_space<vmem>>, vector<8x32x128xbf16>,
    %c0_25 = arith.constant 0 : index
    %c0_26 = arith.constant 0 : index
    %c0_27 = arith.constant 0 : index
    %c0_28 = arith.constant 0 : index
    %35 = vector.load %arg4[%c0_25, %c0_26, %c0_27, %c0_28] : memref<1x2x32x128xf32, #tpu.memory_space<vmem>>, vector<1x2x32x128xf32>
    %36 = vector.shape_cast %35 : vector<1x2x32x128xf32> to vector<2x32x128xf32>
    %37 = vector.shape_cast %36 : vector<2x32x128xf32> to vector<64x128xf32>
    %c0_29 = arith.constant 0 : index
    %c0_30 = arith.constant 0 : index
    %c0_31 = arith.constant 0 : index
    %c0_32 = arith.constant 0 : index
    %38 = vector.load %arg6[%c0_29, %c0_30, %c0_31, %c0_32] : memref<1x2x32x128xf32, #tpu.memory_space<vmem>>, vector<1x2x32x128xf32>
    %39 = vector.shape_cast %38 : vector<1x2x32x128xf32> to vector<2x32x128xf32>
    %40 = vector.shape_cast %39 : vector<2x32x128xf32> to vector<64x128xf32>
    %41 = arith.truncf %40 : vector<64x128xf32> to vector<64x128xbf16>
    %cst_33 = arith.constant dense<0.000000e+00> : vector<64x32xf32>
    %42 = tpu.matmul %41, %2, %cst_33 {dimension_numbers = #tpu.dot_dimension_numbers<[1], [0], [0], [1], [0, 0, 1, 1], [], []>} : vector<64x128xbf16>, vector<128x32xbf16>, vector<64x32xf32> -> vector<64x32xf32>
    %43 = vector.broadcast %4 : vector<1x32xf32> to vector<64x32xf32>
    %44 = arith.addf %42, %43 : vector<64x32xf32>
    %cst_34 = arith.constant 0.000000e+00 : f32
    %45 = vector.broadcast %cst_34 : f32 to vector<64x32xf32>
    %46 = arith.maximumf %44, %45 : vector<64x32xf32>
    %47 = arith.truncf %46 : vector<64x32xf32> to vector<64x32xbf16>
    %cst_35 = arith.constant dense<0.000000e+00> : vector<64x128xf32>
    %48 = tpu.matmul %47, %3, %cst_35 {dimension_numbers = #tpu.dot_dimension_numbers<[1], [0], [0], [1], [0, 0, 1, 1], [], []>} : vector<64x32xbf16>, vector<32x128xbf16>, vector<64x128xf32> -> vector<64x128xf32>
    %49 = vector.broadcast %5 : vector<1x128xf32> to vector<64x128xf32>
    %50 = arith.addf %48, %49 : vector<64x128xf32>
    %cst_36 = arith.constant 0.000000e+00 : f32
    %51 = vector.broadcast %cst_36 : f32 to vector<64x128xf32>
    %52 = arith.subf %51, %50 : vector<64x128xf32>
    %53 = math.exp %52 : vector<64x128xf32>
    %cst_37 = arith.constant 1.000000e+00 : f32
    %54 = vector.broadcast %cst_37 : f32 to vector<64x128xf32>
    %55 = arith.addf %54, %53 : vector<64x128xf32>
    %56 = tpu.reciprocal %55 {approx = true} : vector<64x128xf32> -> vector<64x128xf32>
    %57 = vector.broadcast %1 : vector<1x128xf32> to vector<64x128xf32>
    %58 = arith.mulf %40, %57 : vector<64x128xf32>
    %59 = arith.mulf %37, %56 : vector<64x128xf32>
    %60 = arith.addf %58, %59 : vector<64x128xf32>
    %61 = arith.truncf %60 : vector<64x128xf32> to vector<64x128xbf16>
    %62 = vector.shape_cast %61 : vector<64x128xbf16> to vector<2x32x128xbf16>
    %c8 = arith.constant 8 : index
    %c0_38 = arith.constant 0 : index
    %c0_39 = arith.constant 0 : index
    %63 = vector.load %arg14[%c8, %c0_38, %c0_39] : memref<10x32x128xbf16, #tpu.memory_space<vmem>>, vector<2x32x128xbf16>
    tpu.vector_store %arg14[%c8, %c0_38, %c0_39], %62 {strides = array<i32>} : memref<10x32x128xbf16, #tpu.memory_space<vmem>>, vector<2x32x128xbf16>,
    %c0_40 = arith.constant 0 : index
    %c0_41 = arith.constant 0 : index
    %c0_42 = arith.constant 0 : index
    %64 = vector.load %arg14[%c0_40, %c0_41, %c0_42] : memref<10x32x128xbf16, #tpu.memory_space<vmem>>, vector<8x32x128xbf16>
    %65 = vector.shape_cast %64 : vector<8x32x128xbf16> to vector<256x128xbf16>
    %c0_43 = arith.constant 0 : index
    %c0_44 = arith.constant 0 : index
    %c0_45 = arith.constant 0 : index
    %c0_46 = arith.constant 0 : index
    %66 = vector.load %arg11[%c0_43, %c0_44, %c0_45, %c0_46] : memref<3x3x128x128xbf16, #tpu.memory_space<vmem>>, vector<1x1x128x128xbf16>
    %67 = vector.shape_cast %66 : vector<1x1x128x128xbf16> to vector<128x128xbf16>
    %cst_47 = arith.constant dense<0.000000e+00> : vector<256x128xf32>
    %68 = tpu.matmul %65, %67, %cst_47 {dimension_numbers = #tpu.dot_dimension_numbers<[1], [0], [0], [1], [0, 0, 1, 1], [], []>} : vector<256x128xbf16>, vector<128x128xbf16>, vector<256x128xf32> -> vector<256x128xf32>
    %c0_48 = arith.constant 0 : index
    %c1 = arith.constant 1 : index
    %c0_49 = arith.constant 0 : index
    %c0_50 = arith.constant 0 : index
    %69 = vector.load %arg11[%c0_48, %c1, %c0_49, %c0_50] : memref<3x3x128x128xbf16, #tpu.memory_space<vmem>>, vector<1x1x128x128xbf16>
    %70 = vector.shape_cast %69 : vector<1x1x128x128xbf16> to vector<128x128xbf16>
    %cst_51 = arith.constant dense<0.000000e+00> : vector<256x128xf32>
    %71 = tpu.matmul %65, %70, %cst_51 {dimension_numbers = #tpu.dot_dimension_numbers<[1], [0], [0], [1], [0, 0, 1, 1], [], []>} : vector<256x128xbf16>, vector<128x128xbf16>, vector<256x128xf32> -> vector<256x128xf32>
    %c255_i32 = arith.constant 255 : i32
    %72 = tpu.dynamic_rotate %71 by %c255_i32 dim 0 : vector<256x128xf32>, i32 -> vector<256x128xf32>
    %73 = arith.addf %68, %72 : vector<256x128xf32>
    %c0_52 = arith.constant 0 : index
    %c2 = arith.constant 2 : index
    %c0_53 = arith.constant 0 : index
    %c0_54 = arith.constant 0 : index
    %74 = vector.load %arg11[%c0_52, %c2, %c0_53, %c0_54] : memref<3x3x128x128xbf16, #tpu.memory_space<vmem>>, vector<1x1x128x128xbf16>
    %75 = vector.shape_cast %74 : vector<1x1x128x128xbf16> to vector<128x128xbf16>
    %cst_55 = arith.constant dense<0.000000e+00> : vector<256x128xf32>
    %76 = tpu.matmul %65, %75, %cst_55 {dimension_numbers = #tpu.dot_dimension_numbers<[1], [0], [0], [1], [0, 0, 1, 1], [], []>} : vector<256x128xbf16>, vector<128x128xbf16>, vector<256x128xf32> -> vector<256x128xf32>
    %c254_i32 = arith.constant 254 : i32
    %77 = tpu.dynamic_rotate %76 by %c254_i32 dim 0 : vector<256x128xf32>, i32 -> vector<256x128xf32>
    %78 = arith.addf %73, %77 : vector<256x128xf32>
    %c0_56 = arith.constant 0 : index
    %c0_57 = arith.constant 0 : index
    %79 = vector.load %arg15[%c0_56, %c0_57] : memref<256x128xf32, #tpu.memory_space<vmem>>, vector<256x128xf32>
    tpu.vector_store %arg15[%c0_56, %c0_57], %78 {strides = array<i32>} : memref<256x128xf32, #tpu.memory_space<vmem>>, vector<256x128xf32>,
    %c1_58 = arith.constant 1 : index
    %c0_59 = arith.constant 0 : index
    %c0_60 = arith.constant 0 : index
    %80 = vector.load %arg14[%c1_58, %c0_59, %c0_60] : memref<10x32x128xbf16, #tpu.memory_space<vmem>>, vector<8x32x128xbf16>
    %81 = vector.shape_cast %80 : vector<8x32x128xbf16> to vector<256x128xbf16>
    %c1_61 = arith.constant 1 : index
    %c0_62 = arith.constant 0 : index
    %c0_63 = arith.constant 0 : index
    %c0_64 = arith.constant 0 : index
    %82 = vector.load %arg11[%c1_61, %c0_62, %c0_63, %c0_64] : memref<3x3x128x128xbf16, #tpu.memory_space<vmem>>, vector<1x1x128x128xbf16>
    %83 = vector.shape_cast %82 : vector<1x1x128x128xbf16> to vector<128x128xbf16>
    %cst_65 = arith.constant dense<0.000000e+00> : vector<256x128xf32>
    %84 = tpu.matmul %81, %83, %cst_65 {dimension_numbers = #tpu.dot_dimension_numbers<[1], [0], [0], [1], [0, 0, 1, 1], [], []>} : vector<256x128xbf16>, vector<128x128xbf16>, vector<256x128xf32> -> vector<256x128xf32>
    %c1_66 = arith.constant 1 : index
    %c1_67 = arith.constant 1 : index
    %c0_68 = arith.constant 0 : index
    %c0_69 = arith.constant 0 : index
    %85 = vector.load %arg11[%c1_66, %c1_67, %c0_68, %c0_69] : memref<3x3x128x128xbf16, #tpu.memory_space<vmem>>, vector<1x1x128x128xbf16>
    %86 = vector.shape_cast %85 : vector<1x1x128x128xbf16> to vector<128x128xbf16>
    %cst_70 = arith.constant dense<0.000000e+00> : vector<256x128xf32>
    %87 = tpu.matmul %81, %86, %cst_70 {dimension_numbers = #tpu.dot_dimension_numbers<[1], [0], [0], [1], [0, 0, 1, 1], [], []>} : vector<256x128xbf16>, vector<128x128xbf16>, vector<256x128xf32> -> vector<256x128xf32>
    %c255_i32_71 = arith.constant 255 : i32
    %88 = tpu.dynamic_rotate %87 by %c255_i32_71 dim 0 : vector<256x128xf32>, i32 -> vector<256x128xf32>
    %89 = arith.addf %84, %88 : vector<256x128xf32>
    %c1_72 = arith.constant 1 : index
    %c2_73 = arith.constant 2 : index
    %c0_74 = arith.constant 0 : index
    %c0_75 = arith.constant 0 : index
    %90 = vector.load %arg11[%c1_72, %c2_73, %c0_74, %c0_75] : memref<3x3x128x128xbf16, #tpu.memory_space<vmem>>, vector<1x1x128x128xbf16>
    %91 = vector.shape_cast %90 : vector<1x1x128x128xbf16> to vector<128x128xbf16>
    %cst_76 = arith.constant dense<0.000000e+00> : vector<256x128xf32>
    %92 = tpu.matmul %81, %91, %cst_76 {dimension_numbers = #tpu.dot_dimension_numbers<[1], [0], [0], [1], [0, 0, 1, 1], [], []>} : vector<256x128xbf16>, vector<128x128xbf16>, vector<256x128xf32> -> vector<256x128xf32>
    %c254_i32_77 = arith.constant 254 : i32
    %93 = tpu.dynamic_rotate %92 by %c254_i32_77 dim 0 : vector<256x128xf32>, i32 -> vector<256x128xf32>
    %94 = arith.addf %89, %93 : vector<256x128xf32>
    %c0_78 = arith.constant 0 : index
    %c0_79 = arith.constant 0 : index
    %95 = vector.load %arg15[%c0_78, %c0_79] : memref<256x128xf32, #tpu.memory_space<vmem>>, vector<256x128xf32>
    %96 = arith.addf %95, %94 : vector<256x128xf32>
    %c0_80 = arith.constant 0 : index
    %c0_81 = arith.constant 0 : index
    %97 = vector.load %arg15[%c0_80, %c0_81] : memref<256x128xf32, #tpu.memory_space<vmem>>, vector<256x128xf32>
    tpu.vector_store %arg15[%c0_80, %c0_81], %96 {strides = array<i32>} : memref<256x128xf32, #tpu.memory_space<vmem>>, vector<256x128xf32>,
    %c2_82 = arith.constant 2 : index
    %c0_83 = arith.constant 0 : index
    %c0_84 = arith.constant 0 : index
    %98 = vector.load %arg14[%c2_82, %c0_83, %c0_84] : memref<10x32x128xbf16, #tpu.memory_space<vmem>>, vector<8x32x128xbf16>
    %99 = vector.shape_cast %98 : vector<8x32x128xbf16> to vector<256x128xbf16>
    %c2_85 = arith.constant 2 : index
    %c0_86 = arith.constant 0 : index
    %c0_87 = arith.constant 0 : index
    %c0_88 = arith.constant 0 : index
    %100 = vector.load %arg11[%c2_85, %c0_86, %c0_87, %c0_88] : memref<3x3x128x128xbf16, #tpu.memory_space<vmem>>, vector<1x1x128x128xbf16>
    %101 = vector.shape_cast %100 : vector<1x1x128x128xbf16> to vector<128x128xbf16>
    %cst_89 = arith.constant dense<0.000000e+00> : vector<256x128xf32>
    %102 = tpu.matmul %99, %101, %cst_89 {dimension_numbers = #tpu.dot_dimension_numbers<[1], [0], [0], [1], [0, 0, 1, 1], [], []>} : vector<256x128xbf16>, vector<128x128xbf16>, vector<256x128xf32> -> vector<256x128xf32>
    %c2_90 = arith.constant 2 : index
    %c1_91 = arith.constant 1 : index
    %c0_92 = arith.constant 0 : index
    %c0_93 = arith.constant 0 : index
    %103 = vector.load %arg11[%c2_90, %c1_91, %c0_92, %c0_93] : memref<3x3x128x128xbf16, #tpu.memory_space<vmem>>, vector<1x1x128x128xbf16>
    %104 = vector.shape_cast %103 : vector<1x1x128x128xbf16> to vector<128x128xbf16>
    %cst_94 = arith.constant dense<0.000000e+00> : vector<256x128xf32>
    %105 = tpu.matmul %99, %104, %cst_94 {dimension_numbers = #tpu.dot_dimension_numbers<[1], [0], [0], [1], [0, 0, 1, 1], [], []>} : vector<256x128xbf16>, vector<128x128xbf16>, vector<256x128xf32> -> vector<256x128xf32>
    %c255_i32_95 = arith.constant 255 : i32
    %106 = tpu.dynamic_rotate %105 by %c255_i32_95 dim 0 : vector<256x128xf32>, i32 -> vector<256x128xf32>
    %107 = arith.addf %102, %106 : vector<256x128xf32>
    %c2_96 = arith.constant 2 : index
    %c2_97 = arith.constant 2 : index
    %c0_98 = arith.constant 0 : index
    %c0_99 = arith.constant 0 : index
    %108 = vector.load %arg11[%c2_96, %c2_97, %c0_98, %c0_99] : memref<3x3x128x128xbf16, #tpu.memory_space<vmem>>, vector<1x1x128x128xbf16>
    %109 = vector.shape_cast %108 : vector<1x1x128x128xbf16> to vector<128x128xbf16>
    %cst_100 = arith.constant dense<0.000000e+00> : vector<256x128xf32>
    %110 = tpu.matmul %99, %109, %cst_100 {dimension_numbers = #tpu.dot_dimension_numbers<[1], [0], [0], [1], [0, 0, 1, 1], [], []>} : vector<256x128xbf16>, vector<128x128xbf16>, vector<256x128xf32> -> vector<256x128xf32>
    %c254_i32_101 = arith.constant 254 : i32
    %111 = tpu.dynamic_rotate %110 by %c254_i32_101 dim 0 : vector<256x128xf32>, i32 -> vector<256x128xf32>
    %112 = arith.addf %107, %111 : vector<256x128xf32>
    %c0_102 = arith.constant 0 : index
    %c0_103 = arith.constant 0 : index
    %113 = vector.load %arg15[%c0_102, %c0_103] : memref<256x128xf32, #tpu.memory_space<vmem>>, vector<256x128xf32>
    %114 = arith.addf %113, %112 : vector<256x128xf32>
    %c0_104 = arith.constant 0 : index
    %c0_105 = arith.constant 0 : index
    %115 = vector.load %arg15[%c0_104, %c0_105] : memref<256x128xf32, #tpu.memory_space<vmem>>, vector<256x128xf32>
    tpu.vector_store %arg15[%c0_104, %c0_105], %114 {strides = array<i32>} : memref<256x128xf32, #tpu.memory_space<vmem>>, vector<256x128xf32>,
    %c0_106 = arith.constant 0 : index
    %c0_107 = arith.constant 0 : index
    %116 = vector.load %arg15[%c0_106, %c0_107] : memref<256x128xf32, #tpu.memory_space<vmem>>, vector<256x128xf32>
    %117 = vector.shape_cast %116 : vector<256x128xf32> to vector<8x32x128xf32>
    %118 = vector.extract_strided_slice %117 {offsets = [0, 0, 0], sizes = [8, 16, 128], strides = [1, 1, 1]} : vector<8x32x128xf32> to vector<8x16x128xf32>
    %c0_108 = arith.constant 0 : index
    %c0_109 = arith.constant 0 : index
    %119 = vector.load %arg12[%c0_108, %c0_109] : memref<1x128xf32, #tpu.memory_space<vmem>>, vector<1x128xf32>
    %120 = vector.shape_cast %119 : vector<1x128xf32> to vector<1x1x128xf32>
    %121 = vector.broadcast %120 : vector<1x1x128xf32> to vector<8x16x128xf32>
    %122 = arith.addf %118, %121 : vector<8x16x128xf32>
    %cst_110 = arith.constant 0.000000e+00 : f32
    %123 = vector.broadcast %cst_110 : f32 to vector<8x16x128xf32>
    %124 = arith.maximumf %122, %123 : vector<8x16x128xf32>
    %c0_111 = arith.constant 0 : index
    %c0_112 = arith.constant 0 : index
    %c0_113 = arith.constant 0 : index
    %c0_114 = arith.constant 0 : index
    %125 = vector.load %arg13[%c0_111, %c0_112, %c0_113, %c0_114] : memref<1x8x16x128xf32, #tpu.memory_space<vmem>>, vector<1x8x16x128xf32>
    %126 = vector.shape_cast %125 : vector<1x8x16x128xf32> to vector<8x16x128xf32>
    %127 = vector.shape_cast %124 : vector<8x16x128xf32> to vector<1x8x16x128xf32>
    tpu.vector_store %arg13[%c0_111, %c0_112, %c0_113, %c0_114], %127 {strides = array<i32>} : memref<1x8x16x128xf32, #tpu.memory_space<vmem>>, vector<1x8x16x128xf32>,
    return
  }
  func.func @transform_0(%arg0: i32, %arg1: i32) -> (i32, i32, i32) {
    %c0_i32 = arith.constant 0 : i32
    %c0_i32_0 = arith.constant 0 : i32
    %c0_i32_1 = arith.constant 0 : i32
    return %arg0, %c0_i32, %c0_i32_0 : i32, i32, i32
  }
  func.func @transform_1(%arg0: i32, %arg1: i32) -> (i32, i32, i32, i32) {
    %c0_i32 = arith.constant 0 : i32
    %c0_i32_0 = arith.constant 0 : i32
    %c0_i32_1 = arith.constant 0 : i32
    return %arg0, %arg1, %c0_i32, %c0_i32_0 : i32, i32, i32, i32
  }
  func.func @transform_2(%arg0: i32, %arg1: i32) -> (i32, i32, i32, i32) {
    %c1_i32 = arith.constant 1 : i32
    %0 = arith.addi %arg1, %c1_i32 : i32
    %c4_i32 = arith.constant 4 : i32
    %1 = arith.muli %0, %c4_i32 : i32
    %c0_i32 = arith.constant 0 : i32
    %c0_i32_0 = arith.constant 0 : i32
    %c0_i32_1 = arith.constant 0 : i32
    return %arg0, %1, %c0_i32, %c0_i32_0 : i32, i32, i32, i32
  }
  func.func @transform_3(%arg0: i32, %arg1: i32) -> (i32, i32, i32, i32) {
    %c0_i32 = arith.constant 0 : i32
    %c0_i32_0 = arith.constant 0 : i32
    %c0_i32_1 = arith.constant 0 : i32
    return %arg0, %arg1, %c0_i32, %c0_i32_0 : i32, i32, i32, i32
  }
  func.func @transform_4(%arg0: i32, %arg1: i32) -> (i32, i32, i32, i32) {
    %c1_i32 = arith.constant 1 : i32
    %0 = arith.addi %arg1, %c1_i32 : i32
    %c4_i32 = arith.constant 4 : i32
    %1 = arith.muli %0, %c4_i32 : i32
    %c0_i32 = arith.constant 0 : i32
    %c0_i32_0 = arith.constant 0 : i32
    %c0_i32_1 = arith.constant 0 : i32
    return %arg0, %1, %c0_i32, %c0_i32_0 : i32, i32, i32, i32
  }
  func.func @transform_5(%arg0: i32, %arg1: i32) -> (i32, i32) {
    %c0_i32 = arith.constant 0 : i32
    %c0_i32_0 = arith.constant 0 : i32
    %c0_i32_1 = arith.constant 0 : i32
    return %c0_i32, %c0_i32_0 : i32, i32
  }
  func.func @transform_6(%arg0: i32, %arg1: i32) -> (i32, i32) {
    %c0_i32 = arith.constant 0 : i32
    %c0_i32_0 = arith.constant 0 : i32
    %c0_i32_1 = arith.constant 0 : i32
    return %c0_i32, %c0_i32_0 : i32, i32
  }
  func.func @transform_7(%arg0: i32, %arg1: i32) -> (i32, i32) {
    %c0_i32 = arith.constant 0 : i32
    %c0_i32_0 = arith.constant 0 : i32
    %c0_i32_1 = arith.constant 0 : i32
    return %c0_i32, %c0_i32_0 : i32, i32
  }
  func.func @transform_8(%arg0: i32, %arg1: i32) -> (i32, i32) {
    %c0_i32 = arith.constant 0 : i32
    %c0_i32_0 = arith.constant 0 : i32
    %c0_i32_1 = arith.constant 0 : i32
    return %c0_i32, %c0_i32_0 : i32, i32
  }
  func.func @transform_9(%arg0: i32, %arg1: i32) -> (i32, i32, i32, i32) {
    %c0_i32 = arith.constant 0 : i32
    %c0_i32_0 = arith.constant 0 : i32
    %c0_i32_1 = arith.constant 0 : i32
    %c0_i32_2 = arith.constant 0 : i32
    %c0_i32_3 = arith.constant 0 : i32
    return %c0_i32, %c0_i32_0, %c0_i32_1, %c0_i32_2 : i32, i32, i32, i32
  }
  func.func @transform_10(%arg0: i32, %arg1: i32) -> (i32, i32) {
    %c0_i32 = arith.constant 0 : i32
    %c0_i32_0 = arith.constant 0 : i32
    %c0_i32_1 = arith.constant 0 : i32
    return %c0_i32, %c0_i32_0 : i32, i32
  }
  func.func @transform_11(%arg0: i32, %arg1: i32) -> (i32, i32, i32, i32) {
    %c0_i32 = arith.constant 0 : i32
    %c0_i32_0 = arith.constant 0 : i32
    %c0_i32_1 = arith.constant 0 : i32
    return %arg0, %arg1, %c0_i32, %c0_i32_0 : i32, i32, i32, i32
  }
}

</mosaic_0001>

<bundles_post_ra>
// kernel: asym_bi_cha_fuse.1
= control target key start
LH: loop header
LB: loop body
LE: loop exit
PB: predicated region body
PF: predicated region fallthrough
CT: control target
= control target key end

     0   :  { %s6310_s17 = smov 0   ;;  %s6312_s18 = smov 0   ;;  %s7828_s0 = inlined_call_operand.vmem [shape: f32[1,1,128], index: 0, kind: input, shape index: {}]   ;;  %s7829_s1 = inlined_call_operand.vmem [shape: f32[1,18,32,128], index: 1, kind: input, shape index: {}, may-alias: {1,2}]   ;;  %s7830_s2 = inlined_call_operand.vmem [shape: f32[1,18,32,128], index: 2, kind: input, shape index: {}, may-alias: {1,2}]   ;;  %s7831_s3 = inlined_call_operand.vmem [shape: f32[1,18,32,128], index: 3, kind: input, shape index: {}, may-alias: {3,4}]   ;;  %s7832_s4 = inlined_call_operand.vmem [shape: f32[1,18,32,128], index: 4, kind: input, shape index: {}, may-alias: {3,4}]   ;;  %s7833_s5 = inlined_call_operand.vmem [shape: bf16[128,32], index: 5, kind: input, shape index: {}]   ;;  %s7834_s6 = inlined_call_operand.vmem [shape: f32[1,32], index: 6, kind: input, shape index: {}]   ;;  %s7835_s7 = inlined_call_operand.vmem [shape: bf16[32,128], index: 7, kind: input, shape index: {}]   ;;  %s7836_s8 = inlined_call_operand.vmem [shape: f32[1,128], index: 8, kind: input, shape index: {}]   ;;  %s7837_s9 = inlined_call_operand.vmem [shape: bf16[3,3,128,128], index: 9, kind: input, shape index: {}]   ;;  %s7838_s10 = inlined_call_operand.vmem [shape: f32[1,128], index: 10, kind: input, shape index: {}]   ;;  %s7839_s11 = inlined_call_operand.vmem [shape: f32[1,16,16,128], index: 11, kind: output, shape index: {}]  }
   0x1   :  { %s6314_s19 = smov 0  }
   0x2 LB: > { %s30_s20 = sadd.s32 1, %s6244_s18  ;;  %p4818_p0 = scmp.ge.s32.totalorder %s6248_s19, 1  ;;  %s6248_s19 = sphi %s6314_s19, %s21_s19   ;;  %s6244_s18 = sphi %s6312_s18, %s7841_s18   ;;  %s6240_s17 = sphi %s6310_s17, %s7840_s17  }
   0x3   : > { %p31_p1 = scmp.ge.s32.totalorder %s30_s20, 2  ;;  %p457_p2 = scmp.lt.s32.totalorder %s6248_s19, 3 }
   0x5   : > { %s7843_s20 = smov (%p31_p1, %s30_s20), 0  ;;  %p458_p3 = pnand %p4818_p0, %p457_p2 }
   0x6   : > { %v6331_v0 = vld [vmem:[%s7833_s5] sm:$0xff] (!%p458_p3)   ;;  %s6333_s23 = sshll.u32 (!%p458_p3), %s6240_s17, 3  ;;  %v6338_v1 = vld [vmem:[%s7833_s5 + $0x8] sm:$0xff] (!%p458_p3)   ;;  %v6350_v2 = vld [vmem:[%s7833_s5 + $0x10] sm:$0xff] (!%p458_p3)   ;;  %vm1025_vm0 = vcmask (!%p458_p3), 261120  }
   0x7   : > { %461 = sbr.rel (%p458_p3) target bundleno = 1173 (0x495), region = 64  ;;  %p565_p4 = scmp.lt.s32.totalorder (!%p458_p3), %s6333_s23, 17  ;;  %5371 = vmatprep.subr.bf16.mxu0 (!%p458_p3), %v6331_v0  ;;  %v6365_v3 = vld [vmem:[%s7833_s5 + $0x18] sm:$0xff] (!%p458_p3)   ;;  %v6380_v7 = vld [vmem:[%s7833_s5 + $0x20] sm:$0xff] (!%p458_p3)   ;;  %v6387_v8 = vld [vmem:[%s7833_s5 + $0x28] sm:$0xff] (!%p458_p3)  }
   0x8   : > { %5372 = vmatpush3.bf16.msra.mxu0 (!%p458_p3), %v6331_v0  ;;  %v6392_v9 = vld [vmem:[%s7833_s5 + $0x30] sm:$0xff] (!%p458_p3)   ;;  %v6399_v10 = vld [vmem:[%s7833_s5 + $0x38] sm:$0xff] (!%p458_p3)   ;;  %v6499_v56 = vld [vmem:[%s7835_s7] sm:$0xff] (!%p458_p3)   ;;  %s5092_s21 = sadd.s32 (!%p458_p3), 8, %s6333_s23  ;;  %p632_p6 = scmp.lt.s32.totalorder (!%p458_p3), %s6333_s23, 15 }
   0x9   : > { %5373 = vmatprep.subr.bf16.mxu0 (!%p458_p3), %v6338_v1  ;;  %5419 = vmatprep.subr.bf16.mxu1 (!%p458_p3), %v6499_v56  ;;  %v6506_v57 = vld [vmem:[%s7835_s7 + $0x8] sm:$0xff] (!%p458_p3)   ;;  %v6514_v58 = vld [vmem:[%s7834_s6] ss:$0 sm:$0xff] (!%p458_p3)  ;;  %p583_p5 = scmp.lt.s32.totalorder (!%p458_p3), %s5092_s21, 17 }
   0xa   : > { %5420 = vmatpush3.bf16.msra.mxu1 (!%p458_p3), %v6499_v56 }
   0xb   : > { %5421 = vmatprep.subr.bf16.mxu1 (!%p458_p3), %v6506_v57 }
   0xc   : > { %5374 = vmatpush3.bf16.msra.mxu0 (!%p458_p3), %v6338_v1 }
   0xd   : > { %5375 = vmatprep.subr.bf16.mxu0 (!%p458_p3), %v6350_v2 }
   0xe   : > { %s6344_s26 = scalar_select %p565_p4, %s6333_s23, 17  ;;  %5422 = vmatpush3.bf16.msra.mxu1 %v6506_v57 }
   0xf   : > { %5455 = vmatprep.subr.bf16.mxu1 %v6331_v0  ;;  %s7845_s21 = smov (!%p583_p5, %s5092_s21), 17  ;;  %s7847_s23 = smov (!%p632_p6, %s6333_s23), 15 }
  0x10   : > { %s5080_s29 = sshll.u32 %s6344_s26, 5  ;;  %5376 = vmatpush3.bf16.msra.mxu0 %v6350_v2  ;;  %s5084_s22 = sshll.u32 %s7845_s21, 5 }
  0x11   : > { %s6358_s13 = scalar_lea.vmem %s7831_s3, %s5080_s29  ;;  %5377 = vmatprep.subr.bf16.mxu0 %v6365_v3  ;;  %s6584_s27 = scalar_lea.vmem %s7832_s4, %s5084_s22 }
  0x12   : > { %v6368_v4 = vld [vmem:[%s6358_s13] sm:$0xff]  ;;  %v6371_v5 = vld [vmem:[%s6358_s13 + $0x8] sm:$0xff]  ;;  %v6404_v11 = vld [vmem:[%s6358_s13 + $0x10] sm:$0xff]  ;;  %s6725_s25 = scalar_lea.vmem %s7829_s1, %s5080_s29  ;;  %s7203_s17 = scalar_lea.vmem %s7830_s2, %s5084_s22 }
  0x13   : > { %v728_v6 = vpack.c.bf16 %v6371_v5, %v6368_v4  ;;  %v6407_v12 = vld [vmem:[%s6358_s13 + $0x18] sm:$0xff]  ;;  %v6410_v13 = vld [vmem:[%s6358_s13 + $0x20] sm:$0xff]  ;;  %v6413_v14 = vld [vmem:[%s6358_s13 + $0x28] sm:$0xff]  ;;  %s5090_s21 = sshll.u32 %s7847_s23, 4 }
  0x14   : > { %5378 = vmatpush3.bf16.msra.mxu0 %v6365_v3  ;;  %v729_v15 = vpack.c.bf16 %v6407_v12, %v6404_v11  ;;  %v730_v16 = vpack.c.bf16 %v6413_v14, %v6410_v13  ;;  %v6423_v17 = vld [vmem:[%s6358_s13 + $0x30] sm:$0xff]  ;;  %v6426_v18 = vld [vmem:[%s6358_s13 + $0x38] sm:$0xff]  ;;  %v6429_v19 = vld [vmem:[%s6358_s13 + $0x40] sm:$0xff]  ;;  %s7732_s23 = scalar_lea.vmem %s7839_s11, %s5090_s21 }
  0x15   : > { %5387 = vmatprep.mubr.bf16.mxu0 %v728_v6  ;;  %5379 = vmatprep.subr.bf16.mxu0 %v6380_v7  ;;  %v6432_v20 = vld [vmem:[%s6358_s13 + $0x48] sm:$0xff]  ;;  %v731_v21 = vpack.c.bf16 %v6426_v18, %v6423_v17  ;;  %v6439_v23 = vld [vmem:[%s6358_s13 + $0x50] sm:$0xff]  ;;  %v6442_v24 = vld [vmem:[%s6358_s13 + $0x58] sm:$0xff] }
  0x16   : > { %v732_v22 = vpack.c.bf16 %v6432_v20, %v6429_v19  ;;  %v6445_v25 = vld [vmem:[%s6358_s13 + $0x60] sm:$0xff]  ;;  %v6448_v26 = vld [vmem:[%s6358_s13 + $0x68] sm:$0xff]  ;;  %v733_v27 = vpack.c.bf16 %v6442_v24, %v6439_v23  ;;  %v6455_v29 = vld [vmem:[%s6358_s13 + $0x70] sm:$0xff] }
  0x17   : > { %v734_v28 = vpack.c.bf16 %v6448_v26, %v6445_v25  ;;  %v6458_v30 = vld [vmem:[%s6358_s13 + $0x78] sm:$0xff]  ;;  %v6461_v31 = vld [vmem:[%s6358_s13 + $0x80] sm:$0xff]  ;;  %v6464_v32 = vld [vmem:[%s6358_s13 + $0x88] sm:$0xff] }
  0x18   : > { %5380 = vmatpush3.bf16.msra.mxu0 %v6380_v7  ;;  %v735_v33 = vpack.c.bf16 %v6458_v30, %v6455_v29  ;;  %v736_v34 = vpack.c.bf16 %v6464_v32, %v6461_v31  ;;  %v6471_v35 = vld [vmem:[%s6358_s13 + $0x90] sm:$0xff]  ;;  %v6474_v36 = vld [vmem:[%s6358_s13 + $0x98] sm:$0xff]  ;;  %v6477_v37 = vld [vmem:[%s6358_s13 + $0xa0] sm:$0xff] }
  0x19   : > { %5381 = vmatprep.subr.bf16.mxu0 %v6387_v8  ;;  %v717_v38 = vld [vmem:[%s6358_s13 + $0xa8] sm:$0xff]  ;;  %v737_v39 = vpack.c.bf16 %v6474_v36, %v6471_v35  ;;  %v6484_v41 = vld [vmem:[%s6358_s13 + $0xb0] sm:$0xff]  ;;  %v719_v42 = vld [vmem:[%s6358_s13 + $0xb8] sm:$0xff] }
  0x1a   : > { %v738_v40 = vpack.c.bf16 %v717_v38, %v6477_v37  ;;  %v720_v43 = vld [vmem:[%s6358_s13 + $0xc0] sm:$0xff]  ;;  %v721_v44 = vld [vmem:[%s6358_s13 + $0xc8] sm:$0xff]  ;;  %v739_v45 = vpack.c.bf16 %v719_v42, %v6484_v41  ;;  %v722_v47 = vld [vmem:[%s6358_s13 + $0xd0] sm:$0xff] }
  0x1b   : > { %v740_v46 = vpack.c.bf16 %v721_v44, %v720_v43  ;;  %v723_v48 = vld [vmem:[%s6358_s13 + $0xd8] sm:$0xff]  ;;  %v724_v49 = vld [vmem:[%s6358_s13 + $0xe0] sm:$0xff]  ;;  %v725_v50 = vld [vmem:[%s6358_s13 + $0xe8] sm:$0xff] }
  0x1c   : > { %5382 = vmatpush3.bf16.msra.mxu0 %v6387_v8  ;;  %v741_v51 = vpack.c.bf16 %v723_v48, %v722_v47  ;;  %v742_v52 = vpack.c.bf16 %v725_v50, %v724_v49  ;;  %v726_v53 = vld [vmem:[%s6358_s13 + $0xf0] sm:$0xff]  ;;  %v727_v54 = vld [vmem:[%s6358_s13 + $0xf8] sm:$0xff] }
  0x1d   : > { %5383 = vmatprep.subr.bf16.mxu0 %v6392_v9  ;;  %v743_v55 = vpack.c.bf16 %v727_v54, %v726_v53 }
  0x20   : > { %5384 = vmatpush3.bf16.msra.mxu0 %v6392_v9 }
  0x21   : > { %5385 = vmatprep.subr.bf16.mxu0 %v6399_v10 }
  0x24   : > { %5386 = vmatpush3.bf16.msra.mxu0 %v6399_v10 }
  0x27   : > { %5388 = vmatmul.mubr.bf16.vlgmr.msra.gmra.mrb[0].mxu0 %v729_v15 }
  0x28   : > { %5391 = vmatprep.mubr.bf16.mxu0 %v730_v16 }
  0x2f   : > { %5392 = vmatmul.mubr.bf16.gmra.mrb[4].mxu0 %v731_v21 }
  0x30   : > { %5395 = vmatprep.mubr.bf16.mxu0 %v732_v22 }
  0x37   : > { %5396 = vmatmul.mubr.bf16.gmra.mrb[8].mxu0 %v733_v27 }
  0x38   : > { %5399 = vmatprep.mubr.bf16.mxu0 %v734_v28 }
  0x3f   : > { %5400 = vmatmul.mubr.bf16.gmra.mrb[12].mxu0 %v735_v33 }
  0x40   : > { %5403 = vmatprep.mubr.bf16.mxu0 %v736_v34 }
  0x47   : > { %5404 = vmatmul.mubr.bf16.gmra.mrb[16].mxu0 %v737_v39 }
  0x48   : > { %5407 = vmatprep.mubr.bf16.mxu0 %v738_v40 }
  0x4f   : > { %5408 = vmatmul.mubr.bf16.gmra.mrb[20].mxu0 %v739_v45 }
  0x50   : > { %5411 = vmatprep.mubr.bf16.mxu0 %v740_v46 }
  0x57   : > { %5412 = vmatmul.mubr.bf16.gmra.mrb[24].mxu0 %v741_v51 }
  0x58   : > { %5415 = vmatprep.mubr.bf16.mxu0 %v742_v52 }
  0x5f   : > { %5416 = vmatmul.mubr.bf16.gmra.mrb[28].mxu0 %v743_v55 }
  0xfa   : > { %v5389_v59 = vpop.f32.mrb[0].mxu0 }
  0xfb   : > { %v841_v60 = vadd.f32 %v5389_v59, %v6514_v58  ;;  %v832_v61 = vpop.f32.mrb[1].mxu0 }
  0xfc   : > { %v833_v62 = vadd.f32 %v6514_v58, %v832_v61  ;;  %v5390_v63 = vpop.f32.mrb[2].mxu0 }
  0xfd   : > { %v844_v6 = vadd.f32 %v5390_v63, %v6514_v58  ;;  %v835_v15 = vpop.f32.mrb[3].mxu0  ;;  %v961_v21 = vmax.f32 %v841_v60, 0.0 }
  0xfe   : > { %v836_v16 = vadd.f32 %v6514_v58, %v835_v15  ;;  %v959_v27 = vmax.f32 %v833_v62, 0.0 }
  0xff   : > { %v962_v22 = vmax.f32 %v844_v6, 0.0 }
 0x100   : > { %v960_v28 = vmax.f32 %v836_v16, 0.0 }
 0x101   : > { %v992_v33 = vpack.c.bf16 %v962_v22, %v961_v21 }
 0x102   : > { %v5393_v34 = vpop.f32.mrb[4].mxu0  ;;  %v991_v38 = vpack.c.bf16 %v960_v28, %v959_v27 }
 0x103   : > { %v857_v39 = vadd.f32 %v5393_v34, %v6514_v58  ;;  %v848_v40 = vpop.f32.mrb[5].mxu0 }
 0x104   : > { %v849_v42 = vadd.f32 %v6514_v58, %v848_v40  ;;  %v5394_v43 = vpop.f32.mrb[6].mxu0  ;;  %5423 = vmatprep.mubr.msk.bf16.mxu1 %vm1025_vm0, %v991_v38 }
 0x105   : > { %v860_v44 = vadd.f32 %v5394_v43, %v6514_v58  ;;  %v851_v45 = vpop.f32.mrb[7].mxu0  ;;  %5424 = vmatmul.mubr.msk.bf16.vlgmr.msra.gmra.mrb[0].mxu1 %vm1025_vm0, %v992_v33  ;;  %v965_v47 = vmax.f32 %v857_v39, 0.0 }
 0x106   : > { %v852_v46 = vadd.f32 %v6514_v58, %v851_v45  ;;  %5456 = vmatpush3.bf16.msra.mxu1 %v6331_v0  ;;  %v963_v49 = vmax.f32 %v849_v42, 0.0 }
 0x107   : > { %v966_v48 = vmax.f32 %v860_v44, 0.0  ;;  %5457 = vmatprep.subr.bf16.mxu1 %v6338_v1 }
 0x108   : > { %v964_v50 = vmax.f32 %v852_v46, 0.0 }
 0x109   : > { %v994_v51 = vpack.c.bf16 %v966_v48, %v965_v47 }
 0x10a   : > { %v993_v52 = vpack.c.bf16 %v964_v50, %v963_v49  ;;  %v5397_v53 = vpop.f32.mrb[8].mxu0  ;;  %5458 = vmatpush3.bf16.msra.mxu1 %v6338_v1 }
 0x10b   : > { %v873_v54 = vadd.f32 %v5397_v53, %v6514_v58  ;;  %v864_v55 = vpop.f32.mrb[9].mxu0  ;;  %5459 = vmatprep.subr.bf16.mxu1 %v6350_v2 }
 0x10c   : > { %v865_v59 = vadd.f32 %v6514_v58, %v864_v55  ;;  %v5398_v60 = vpop.f32.mrb[10].mxu0  ;;  %5427 = vmatprep.mubr.msk.bf16.mxu1 %vm1025_vm0, %v993_v52 }
 0x10d   : > { %v876_v0 = vadd.f32 %v5398_v60, %v6514_v58  ;;  %v867_v61 = vpop.f32.mrb[11].mxu0  ;;  %5428 = vmatmul.mubr.msk.bf16.gmra.mrb[4].mxu1 %vm1025_vm0, %v994_v51  ;;  %v969_v1 = vmax.f32 %v873_v54, 0.0 }
 0x10e   : > { %v868_v62 = vadd.f32 %v6514_v58, %v867_v61  ;;  %5460 = vmatpush3.bf16.msra.mxu1 %v6350_v2  ;;  %v967_v6 = vmax.f32 %v865_v59, 0.0 }
 0x10f   : > { %v970_v63 = vmax.f32 %v876_v0, 0.0  ;;  %5461 = vmatprep.subr.bf16.mxu1 %v6365_v3 }
 0x110   : > { %v968_v15 = vmax.f32 %v868_v62, 0.0 }
 0x111   : > { %v996_v16 = vpack.c.bf16 %v970_v63, %v969_v1 }
 0x112   : > { %v995_v21 = vpack.c.bf16 %v968_v15, %v967_v6  ;;  %v5401_v22 = vpop.f32.mrb[12].mxu0  ;;  %5462 = vmatpush3.bf16.msra.mxu1 %v6365_v3 }
 0x113   : > { %v889_v27 = vadd.f32 %v5401_v22, %v6514_v58  ;;  %v880_v28 = vpop.f32.mrb[13].mxu0  ;;  %5463 = vmatprep.subr.bf16.mxu1 %v6380_v7 }
 0x114   : > { %v881_v33 = vadd.f32 %v6514_v58, %v880_v28  ;;  %v5402_v34 = vpop.f32.mrb[14].mxu0  ;;  %5431 = vmatprep.mubr.msk.bf16.mxu1 %vm1025_vm0, %v995_v21 }
 0x115   : > { %v892_v2 = vadd.f32 %v5402_v34, %v6514_v58  ;;  %v883_v38 = vpop.f32.mrb[15].mxu0  ;;  %5432 = vmatmul.mubr.msk.bf16.gmra.mrb[8].mxu1 %vm1025_vm0, %v996_v16  ;;  %v973_v3 = vmax.f32 %v889_v27, 0.0 }
 0x116   : > { %v884_v39 = vadd.f32 %v6514_v58, %v883_v38  ;;  %5464 = vmatpush3.bf16.msra.mxu1 %v6380_v7  ;;  %v971_v42 = vmax.f32 %v881_v33, 0.0 }
 0x117   : > { %v974_v40 = vmax.f32 %v892_v2, 0.0  ;;  %5465 = vmatprep.subr.bf16.mxu1 %v6387_v8 }
 0x118   : > { %v972_v43 = vmax.f32 %v884_v39, 0.0 }
 0x119   : > { %v998_v44 = vpack.c.bf16 %v974_v40, %v973_v3 }
 0x11a   : > { %v997_v45 = vpack.c.bf16 %v972_v43, %v971_v42  ;;  %v5405_v46 = vpop.f32.mrb[16].mxu0  ;;  %5466 = vmatpush3.bf16.msra.mxu1 %v6387_v8 }
 0x11b   : > { %v905_v47 = vadd.f32 %v5405_v46, %v6514_v58  ;;  %v896_v48 = vpop.f32.mrb[17].mxu0  ;;  %5467 = vmatprep.subr.bf16.mxu1 %v6392_v9 }
 0x11c   : > { %v897_v49 = vadd.f32 %v6514_v58, %v896_v48  ;;  %v5406_v50 = vpop.f32.mrb[18].mxu0  ;;  %5435 = vmatprep.mubr.msk.bf16.mxu1 %vm1025_vm0, %v997_v45 }
 0x11d   : > { %v908_v7 = vadd.f32 %v5406_v50, %v6514_v58  ;;  %v899_v51 = vpop.f32.mrb[19].mxu0  ;;  %5436 = vmatmul.mubr.msk.bf16.gmra.mrb[12].mxu1 %vm1025_vm0, %v998_v44  ;;  %v977_v8 = vmax.f32 %v905_v47, 0.0 }
 0x11e   : > { %v900_v52 = vadd.f32 %v6514_v58, %v899_v51  ;;  %5468 = vmatpush3.bf16.msra.mxu1 %v6392_v9  ;;  %v975_v54 = vmax.f32 %v897_v49, 0.0 }
 0x11f   : > { %v978_v53 = vmax.f32 %v908_v7, 0.0  ;;  %5469 = vmatprep.subr.bf16.mxu1 %v6399_v10 }
 0x120   : > { %v976_v55 = vmax.f32 %v900_v52, 0.0 }
 0x121   : > { %v1000_v59 = vpack.c.bf16 %v978_v53, %v977_v8 }
 0x122   : > { %v999_v60 = vpack.c.bf16 %v976_v55, %v975_v54  ;;  %v5409_v0 = vpop.f32.mrb[20].mxu0  ;;  %5470 = vmatpush3.bf16.msra.mxu1 %v6399_v10 }
 0x123   : > { %v921_v61 = vadd.f32 %v5409_v0, %v6514_v58  ;;  %v912_v62 = vpop.f32.mrb[21].mxu0  ;;  %5479 = vmatprep.subr.bf16.mxu1 %v6499_v56  ;;  %v1538_v0 = vld [vmem:[%s6584_s27 + $0x8] sm:$0xff] }
 0x124   : > { %v913_v1 = vadd.f32 %v6514_v58, %v912_v62  ;;  %v5410_v9 = vpop.f32.mrb[22].mxu0  ;;  %5439 = vmatprep.mubr.msk.bf16.mxu1 %vm1025_vm0, %v999_v60  ;;  %v1537_v60 = vld [vmem:[%s6584_s27] sm:$0xff] }
 0x125   : > { %v924_v63 = vadd.f32 %v5410_v9, %v6514_v58  ;;  %v915_v6 = vpop.f32.mrb[23].mxu0  ;;  %5440 = vmatmul.mubr.msk.bf16.gmra.mrb[16].mxu1 %vm1025_vm0, %v1000_v59  ;;  %v981_v16 = vmax.f32 %v921_v61, 0.0 }
 0x126   : > { %v916_v15 = vadd.f32 %v6514_v58, %v915_v6  ;;  %v979_v21 = vmax.f32 %v913_v1, 0.0  ;;  %v1539_v6 = vld [vmem:[%s6584_s27 + $0x10] sm:$0xff] }
 0x127   : > { %v982_v10 = vmax.f32 %v924_v63, 0.0  ;;  %v1545_v63 = vpack.c.bf16 %v1538_v0, %v1537_v60 }
 0x128   : > { %v980_v22 = vmax.f32 %v916_v15, 0.0  ;;  %v1540_v15 = vld [vmem:[%s6584_s27 + $0x18] sm:$0xff] }
 0x129   : > { %v1002_v27 = vpack.c.bf16 %v982_v10, %v981_v16  ;;  %v1542_v16 = vld [vmem:[%s6584_s27 + $0x28] sm:$0xff]  ;;  %v1546_v10 = vpack.c.bf16 %v1540_v15, %v1539_v6 }
 0x12a   : > { %v1001_v28 = vpack.c.bf16 %v980_v22, %v979_v21  ;;  %v5413_v33 = vpop.f32.mrb[24].mxu0  ;;  %v1543_v22 = vld [vmem:[%s6584_s27 + $0x30] sm:$0xff] }
 0x12b   : > { %v937_v34 = vadd.f32 %v5413_v33, %v6514_v58  ;;  %v928_v2 = vpop.f32.mrb[25].mxu0  ;;  %v5973_v33 = vld [vmem:[%s7837_s9 + $0x40] sm:$0xff]  }
 0x12c   : > { %v929_v38 = vadd.f32 %v6514_v58, %v928_v2  ;;  %v5414_v39 = vpop.f32.mrb[26].mxu0  ;;  %5443 = vmatprep.mubr.msk.bf16.mxu1 %vm1025_vm0, %v1001_v28  ;;  %5491 = vmatprep.subr.bf16.mxu0 %v5973_v33  ;;  %v5977_v2 = vld [vmem:[%s7837_s9 + $0x60] sm:$0xff]  }
 0x12d   : > { %v940_v3 = vadd.f32 %v5414_v39, %v6514_v58  ;;  %v931_v40 = vpop.f32.mrb[27].mxu0  ;;  %5444 = vmatmul.mubr.msk.bf16.gmra.mrb[20].mxu1 %vm1025_vm0, %v1002_v27  ;;  %v985_v43 = vmax.f32 %v937_v34, 0.0  ;;  %v1544_v27 = vld [vmem:[%s6584_s27 + $0x38] sm:$0xff]  ;;  %5492 = vmatpush3.bf16.msra.mxu0 %v5973_v33  ;;  %v5974_v34 = vld [vmem:[%s7837_s9 + $0x48] sm:$0xff]   ;;  %v5979_v39 = vld [vmem:[%s7837_s9 + $0x70] sm:$0xff]  }
 0x12e   : > { %v932_v42 = vadd.f32 %v6514_v58, %v931_v40  ;;  %v983_v45 = vmax.f32 %v929_v38, 0.0  ;;  %v1548_v28 = vpack.c.bf16 %v1544_v27, %v1543_v22  ;;  %5493 = vmatprep.subr.bf16.mxu0 %v5974_v34  ;;  %v5978_v38 = vld [vmem:[%s7837_s9 + $0x68] sm:$0xff]   ;;  %v6629_v40 = vld [vmem:[%s7837_s9 + $0x80] sm:$0xff]  }
 0x12f   : > { %v986_v44 = vmax.f32 %v940_v3, 0.0  ;;  %v5980_v3 = vld [vmem:[%s7837_s9 + $0x78] sm:$0xff]  }
 0x130   : > { %v984_v46 = vmax.f32 %v932_v42, 0.0  ;;  %v6634_v42 = vld [vmem:[%s7837_s9] sm:$0xff]  }
 0x131   : > { %v1004_v47 = vpack.c.bf16 %v986_v44, %v985_v43  ;;  %5494 = vmatpush3.bf16.msra.mxu0 %v5974_v34  ;;  %v6641_v43 = vld [vmem:[%s7836_s8] ss:$0 sm:$0xff] }
 0x132   : > { %v1003_v48 = vpack.c.bf16 %v984_v46, %v983_v45  ;;  %v5417_v49 = vpop.f32.mrb[28].mxu0 }
 0x133   : > { %v953_v50 = vadd.f32 %v5417_v49, %v6514_v58  ;;  %v944_v7 = vpop.f32.mrb[29].mxu0 }
 0x134   : > { %v945_v51 = vadd.f32 %v6514_v58, %v944_v7  ;;  %v5418_v52 = vpop.f32.mrb[30].mxu0  ;;  %5447 = vmatprep.mubr.msk.bf16.mxu1 %vm1025_vm0, %v1003_v48 }
 0x135   : > { %v956_v8 = vadd.f32 %v5418_v52, %v6514_v58  ;;  %v947_v53 = vpop.f32.mrb[31].mxu0  ;;  %5448 = vmatmul.mubr.msk.bf16.gmra.mrb[24].mxu1 %vm1025_vm0, %v1004_v47  ;;  %v989_v55 = vmax.f32 %v953_v50, 0.0 }
 0x136   : > { %v948_v54 = vadd.f32 %v6514_v58, %v947_v53  ;;  %v987_v61 = vmax.f32 %v945_v51, 0.0  ;;  %v1541_v58 = vld [vmem:[%s6584_s27 + $0x20] sm:$0xff] }
 0x137   : > { %v990_v59 = vmax.f32 %v956_v8, 0.0  ;;  %v1547_v21 = vpack.c.bf16 %v1542_v16, %v1541_v58 }
 0x138   : > { %v988_v62 = vmax.f32 %v948_v54, 0.0 }
 0x139   : > { %v1006_v1 = vpack.c.bf16 %v990_v59, %v989_v55 }
 0x13a   : > { %v1005_v9 = vpack.c.bf16 %v988_v62, %v987_v61 }
 0x13c   : > { %5451 = vmatprep.mubr.msk.bf16.mxu1 %vm1025_vm0, %v1005_v9 }
 0x13d   : > { %5452 = vmatmul.mubr.msk.bf16.gmra.mrb[28].mxu1 %vm1025_vm0, %v1006_v1 }
 0x13e   : > { %5471 = vmatprep.mubr.bf16.mxu1 %v1545_v63  ;;  %v6652_v63 = vld [vmem:[%s7828_s0] ss:$0 sm:$0xff] }
 0x13f   : > { %v6658_v27 = vmul.f32 %v6652_v63, %v6368_v4  ;;  %v6674_v4 = vmul.f32 %v6652_v63, %v6410_v13 }
 0x145   : > { %5472 = vmatmul.mubr.bf16.vlgmr.msra.gmra.mrb[32].mxu1 %v1546_v10 }
 0x146   : > { %5475 = vmatprep.mubr.bf16.mxu1 %v1547_v21  ;;  %5480 = vmatpush3.bf16.msra.mxu1 %v6499_v56  ;;  %v5975_v56 = vld [vmem:[%s7837_s9 + $0x50] sm:$0xff]  }
 0x147   : > { %5481 = vmatprep.subr.bf16.mxu1 %v6506_v57  ;;  %5495 = vmatprep.subr.bf16.mxu0 %v5975_v56 }
 0x148   : > { %5496 = vmatpush3.bf16.msra.mxu0 %v5975_v56  ;;  %v6666_v56 = vmul.f32 %v6652_v63, %v6404_v11  ;;  %v6682_v11 = vmul.f32 %v6652_v63, %v6423_v17 }
 0x14a   : > { %5482 = vmatpush3.bf16.msra.mxu1 %v6506_v57  ;;  %v5976_v57 = vld [vmem:[%s7837_s9 + $0x58] sm:$0xff]  }
 0x14b   : > { %5497 = vmatprep.subr.bf16.mxu0 %v5976_v57  ;;  %5539 = vmatprep.subr.bf16.mxu1 %v6634_v42 }
 0x14c   : > { %5498 = vmatpush3.bf16.msra.mxu0 %v5976_v57  ;;  %v6670_v57 = vmul.f32 %v6652_v63, %v6407_v12  ;;  %v6686_v12 = vmul.f32 %v6652_v63, %v6426_v18 }
 0x14d   : > { %5476 = vmatmul.mubr.bf16.gmra.mrb[36].mxu1 %v1548_v28  ;;  %5499 = vmatprep.subr.bf16.mxu0 %v5977_v2  ;;  %v6662_v28 = vmul.f32 %v6652_v63, %v6371_v5  ;;  %v6678_v5 = vmul.f32 %v6652_v63, %v6413_v14  ;;  %v6691_v14 = vmul.f32 %v6652_v63, %v6429_v19 }
 0x150   : > { %5500 = vmatpush3.bf16.msra.mxu0 %v5977_v2 }
 0x151   : > { %5501 = vmatprep.subr.bf16.mxu0 %v5978_v38 }
 0x154   : > { %5502 = vmatpush3.bf16.msra.mxu0 %v5978_v38 }
 0x155   : > { %5503 = vmatprep.subr.bf16.mxu0 %v5979_v39 }
 0x158   : > { %5504 = vmatpush3.bf16.msra.mxu0 %v5979_v39 }
 0x159   : > { %5505 = vmatprep.subr.bf16.mxu0 %v5980_v3 }
 0x15c   : > { %5506 = vmatpush3.bf16.msra.mxu0 %v5980_v3 }
 0x15d   : > { %5587 = vmatprep.subr.bf16.mxu0 %v6629_v40 }
 0x1d8   : > { %v5425_v44 = vpop.f32.mrb[0].mxu1 }
 0x1d9   : > { %v1117_v45 = vadd.f32 %v5425_v44, %v6641_v43  ;;  %v1108_v46 = vpop.f32.mrb[1].mxu1 }
 0x1da   : > { %v1109_v47 = vadd.f32 %v6641_v43, %v1108_v46  ;;  %v5426_v48 = vpop.f32.mrb[2].mxu1 }
 0x1db   : > { %v1237_v49 = vsub.f32 0.0, %v1117_v45  ;;  %v1120_v50 = vadd.f32 %v5426_v48, %v6641_v43  ;;  %v1111_v7 = vpop.f32.mrb[3].mxu1 }
 0x1dc   : > { %v1235_v51 = vsub.f32 0.0, %v1109_v47  ;;  %v1112_v52 = vadd.f32 %v6641_v43, %v1111_v7 }
 0x1dd   : > { %v1271_v8 = vmul.f32 1.442695, %v1237_v49  ;;  %v1238_v53 = vsub.f32 0.0, %v1120_v50  ;;  %v6696_v49 = vmul.f32 %v6652_v63, %v6432_v20  ;;  %v6702_v20 = vmul.f32 %v6652_v63, %v6439_v23 }
 0x1de   : > { %v1267_v54 = vmul.f32 1.442695, %v1235_v51  ;;  %v1236_v55 = vsub.f32 0.0, %v1112_v52  ;;  %v6718_v23 = vmul.f32 %v6652_v63, %v6455_v29 }
 0x1df   : > { %6045 = vpow2.f32 %v1271_v8  ;;  %v1273_v59 = vmul.f32 1.442695, %v1238_v53 }
 0x1e0   : > { %6047 = vpow2.f32 %v1267_v54  ;;  %v1269_v60 = vmul.f32 1.442695, %v1236_v55  ;;  %v5429_v0 = vpop.f32.mrb[4].mxu1 }
 0x1e1   : > { %6049 = vpow2.f32 %v1273_v59  ;;  %v1133_v61 = vadd.f32 %v5429_v0, %v6641_v43  ;;  %v1124_v62 = vpop.f32.mrb[5].mxu1 }
 0x1e2   : > { %6051 = vpow2.f32 %v1269_v60  ;;  %v1125_v1 = vadd.f32 %v6641_v43, %v1124_v62  ;;  %v5430_v9 = vpop.f32.mrb[6].mxu1  ;;  %v6710_v62 = vmul.f32 %v6652_v63, %v6445_v25  ;;  %v6733_v25 = vmul.f32 %v6652_v63, %v6461_v31 }
 0x1e3   : > { %v1241_v6 = vsub.f32 0.0, %v1133_v61  ;;  %v1136_v15 = vadd.f32 %v5430_v9, %v6641_v43  ;;  %v1127_v58 = vpop.f32.mrb[7].mxu1  ;;  %v6706_v61 = vmul.f32 %v6652_v63, %v6442_v24  ;;  %v6714_v9 = vmul.f32 %v6652_v63, %v6448_v26 }
 0x1e4   : > { %v1239_v16 = vsub.f32 0.0, %v1125_v1  ;;  %v1128_v10 = vadd.f32 %v6641_v43, %v1127_v58  ;;  %v6729_v24 = vmul.f32 %v6652_v63, %v6458_v30 }
 0x1e5   : > { %v1279_v21 = vmul.f32 1.442695, %v1241_v6  ;;  %v1242_v22 = vsub.f32 0.0, %v1136_v15 }
 0x1e6   : > { %v1275_v33 = vmul.f32 1.442695, %v1239_v16  ;;  %v1240_v34 = vsub.f32 0.0, %v1128_v10  ;;  %v6738_v10 = vmul.f32 %v6652_v63, %v6464_v32 }
 0x1e7   : > { %6053 = vpow2.f32 %v1279_v21  ;;  %v1281_v2 = vmul.f32 1.442695, %v1242_v22 }
 0x1e8   : > { %6055 = vpow2.f32 %v1275_v33  ;;  %v1277_v38 = vmul.f32 1.442695, %v1240_v34  ;;  %v5433_v39 = vpop.f32.mrb[8].mxu1 }
 0x1e9   : > { %v6046_v3 = vpop.eup %6045  ;;  %6057 = vpow2.f32 %v1281_v2  ;;  %v1149_v13 = vadd.f32 %v5433_v39, %v6641_v43  ;;  %v1140_v44 = vpop.f32.mrb[9].mxu1 }
 0x1ea   : > { %v6048_v45 = vpop.eup %6047  ;;  %v1333_v46 = vadd.f32 1.0, %v6046_v3  ;;  %6059 = vpow2.f32 %v1277_v38  ;;  %v1141_v47 = vadd.f32 %v6641_v43, %v1140_v44  ;;  %v5434_v48 = vpop.f32.mrb[10].mxu1  ;;  %v666_v44 = vld [vmem:[%s6725_s25 + $0x10] sm:$0xff] }
 0x1eb   : > { %v6050_v17 = vpop.eup %6049  ;;  %v1331_v18 = vadd.f32 1.0, %v6048_v45  ;;  %v1245_v50 = vsub.f32 0.0, %v1149_v13  ;;  %v1152_v7 = vadd.f32 %v5434_v48, %v6641_v43  ;;  %v1143_v51 = vpop.f32.mrb[11].mxu1  ;;  %v664_v48 = vld [vmem:[%s6725_s25] sm:$0xff] }
 0x1ec   : > { %v6052_v52 = vpop.eup %6051  ;;  %6061 = vrcp.f32 %v1333_v46  ;;  %v1334_v8 = vadd.f32 1.0, %v6050_v17  ;;  %v1243_v19 = vsub.f32 0.0, %v1141_v47  ;;  %v1144_v53 = vadd.f32 %v6641_v43, %v1143_v51  ;;  %v667_v51 = vld [vmem:[%s6725_s25 + $0x18] sm:$0xff] }
 0x1ed   : > { %6063 = vrcp.f32 %v1331_v18  ;;  %v1332_v54 = vadd.f32 1.0, %v6052_v52  ;;  %v1287_v55 = vmul.f32 1.442695, %v1245_v50  ;;  %v1246_v59 = vsub.f32 0.0, %v1152_v7 }
 0x1ee   : > { %6065 = vrcp.f32 %v1334_v8  ;;  %v1283_v60 = vmul.f32 1.442695, %v1243_v19  ;;  %v1244_v0 = vsub.f32 0.0, %v1144_v53  ;;  %v6747_v18 = vmul.f32 %v6652_v63, %v6471_v35  ;;  %v665_v53 = vld [vmem:[%s6725_s25 + $0x8] sm:$0xff] }
 0x1ef   : > { %6067 = vrcp.f32 %v1332_v54  ;;  %v1289_v1 = vmul.f32 1.442695, %v1246_v59  ;;  %v6752_v8 = vmul.f32 %v6652_v63, %v6474_v36  ;;  %v6757_v59 = vmul.f32 %v6652_v63, %v6477_v37 }
 0x1f0   : > { %6069 = vpow2.f32 %v1287_v55  ;;  %v1285_v6 = vmul.f32 1.442695, %v1244_v0  ;;  %v5437_v15 = vpop.f32.mrb[12].mxu1 }
 0x1f1   : > { %v6054_v58 = vpop.eup %6053  ;;  %6071 = vpow2.f32 %v1283_v60  ;;  %v1165_v26 = vadd.f32 %v5437_v15, %v6641_v43  ;;  %v1156_v29 = vpop.f32.mrb[13].mxu1 }
 0x1f2   : > { %v6056_v16 = vpop.eup %6055  ;;  %v1337_v21 = vadd.f32 1.0, %v6054_v58  ;;  %6073 = vpow2.f32 %v1289_v1  ;;  %v1157_v22 = vadd.f32 %v6641_v43, %v1156_v29  ;;  %v5438_v30 = vpop.f32.mrb[14].mxu1 }
 0x1f3   : > { %v6058_v33 = vpop.eup %6057  ;;  %v1335_v34 = vadd.f32 1.0, %v6056_v16  ;;  %6075 = vpow2.f32 %v1285_v6  ;;  %v1249_v31 = vsub.f32 0.0, %v1165_v26  ;;  %v1168_v2 = vadd.f32 %v5438_v30, %v6641_v43  ;;  %v1159_v38 = vpop.f32.mrb[15].mxu1 }
 0x1f4   : > { %v6060_v39 = vpop.eup %6059  ;;  %6077 = vrcp.f32 %v1337_v21  ;;  %v1338_v3 = vadd.f32 1.0, %v6058_v33  ;;  %v1247_v32 = vsub.f32 0.0, %v1157_v22  ;;  %v1160_v13 = vadd.f32 %v6641_v43, %v1159_v38 }
 0x1f5   : > { %6079 = vrcp.f32 %v1335_v34  ;;  %v1336_v45 = vadd.f32 1.0, %v6060_v39  ;;  %v1295_v46 = vmul.f32 1.442695, %v1249_v31  ;;  %v1250_v47 = vsub.f32 0.0, %v1168_v2 }
 0x1f6   : > { %v6062_v17 = vpop.eup %6061  ;;  %6081 = vrcp.f32 %v1338_v3  ;;  %v1291_v50 = vmul.f32 1.442695, %v1247_v32  ;;  %v1248_v7 = vsub.f32 0.0, %v1160_v13 }
 0x1f7   : > { %v6064_v52 = vpop.eup %6063  ;;  %6083 = vrcp.f32 %v1336_v45  ;;  %v1297_v19 = vmul.f32 1.442695, %v1250_v47  ;;  %v1435_v54 = vmul.f32 %v6062_v17, %v666_v44  ;;  %v668_v44 = vld [vmem:[%s6725_s25 + $0x20] sm:$0xff] }
 0x1f8   : > { %v6066_v55 = vpop.eup %6065  ;;  %6085 = vpow2.f32 %v1295_v46  ;;  %v1293_v35 = vmul.f32 1.442695, %v1248_v7  ;;  %v5441_v60 = vpop.f32.mrb[16].mxu1  ;;  %v1433_v0 = vmul.f32 %v6064_v52, %v664_v48  ;;  %v671_v48 = vld [vmem:[%s6725_s25 + $0x38] sm:$0xff] }
 0x1f9   : > { %v6068_v1 = vpop.eup %6067  ;;  %6087 = vpow2.f32 %v1291_v50  ;;  %v1181_v6 = vadd.f32 %v5441_v60, %v6641_v43  ;;  %v1172_v15 = vpop.f32.mrb[17].mxu1  ;;  %v1436_v36 = vmul.f32 %v6066_v55, %v667_v51  ;;  %v6761_v58 = vadd.f32 %v1435_v54, %v6666_v56  ;;  %v670_v56 = vld [vmem:[%s6725_s25 + $0x30] sm:$0xff] }
 0x1fa   : > { %v6070_v26 = vpop.eup %6069  ;;  %6089 = vpow2.f32 %v1297_v19  ;;  %v1173_v29 = vadd.f32 %v6641_v43, %v1172_v15  ;;  %v5442_v37 = vpop.f32.mrb[18].mxu1  ;;  %v1434_v16 = vmul.f32 %v6068_v1, %v665_v53  ;;  %v1465_v21 = vadd.f32 %v1433_v0, %v6658_v27  ;;  %v669_v19 = vld [vmem:[%s6725_s25 + $0x28] sm:$0xff] }
 0x1fb   : > { %v6072_v22 = vpop.eup %6071  ;;  %v1341_v30 = vadd.f32 1.0, %v6070_v26  ;;  %6091 = vpow2.f32 %v1293_v35  ;;  %v1253_v33 = vsub.f32 0.0, %v1181_v6  ;;  %v1184_v34 = vadd.f32 %v5442_v37, %v6641_v43  ;;  %v1175_v31 = vpop.f32.mrb[19].mxu1 }
 0x1fc   : > { %v6074_v2 = vpop.eup %6073  ;;  %v1339_v38 = vadd.f32 1.0, %v6072_v22  ;;  %v1251_v39 = vsub.f32 0.0, %v1173_v29  ;;  %v1176_v3 = vadd.f32 %v6641_v43, %v1175_v31  ;;  %v1466_v32 = vadd.f32 %v1434_v16, %v6662_v28 }
 0x1fd   : > { %v6076_v13 = vpop.eup %6075  ;;  %6093 = vrcp.f32 %v1341_v30  ;;  %v1342_v27 = vadd.f32 1.0, %v6074_v2  ;;  %v1303_v45 = vmul.f32 1.442695, %v1253_v33  ;;  %v1254_v46 = vsub.f32 0.0, %v1184_v34 }
 0x1fe   : > { %v6078_v47 = vpop.eup %6077  ;;  %6095 = vrcp.f32 %v1339_v38  ;;  %v1340_v17 = vadd.f32 1.0, %v6076_v13  ;;  %v1299_v50 = vmul.f32 1.442695, %v1251_v39  ;;  %v1252_v7 = vsub.f32 0.0, %v1176_v3  ;;  %v674_v39 = vld [vmem:[%s6725_s25 + $0x50] sm:$0xff] }
 0x1ff   : > { %v6080_v51 = vpop.eup %6079  ;;  %v1439_v52 = vmul.f32 %v6078_v47, %v670_v56  ;;  %6097 = vrcp.f32 %v1342_v27  ;;  %v1305_v53 = vmul.f32 1.442695, %v1254_v46  ;;  %v6772_v54 = vpack.c.bf16 %v1466_v32, %v1465_v21  ;;  %v675_v47 = vld [vmem:[%s6725_s25 + $0x58] sm:$0xff] }
 0x200   : > { %v6082_v28 = vpop.eup %6081  ;;  %v1437_v55 = vmul.f32 %v6080_v51, %v668_v44  ;;  %6099 = vrcp.f32 %v1340_v17  ;;  %v1301_v35 = vmul.f32 1.442695, %v1252_v7  ;;  %v5445_v60 = vpop.f32.mrb[20].mxu1  ;;  %v1468_v0 = vadd.f32 %v1436_v36, %v6670_v57  ;;  %v672_v44 = vld [vmem:[%s6725_s25 + $0x40] sm:$0xff] }
 0x201   : > { %v6084_v1 = vpop.eup %6083  ;;  %v1471_v6 = vadd.f32 %v1439_v52, %v6682_v11  ;;  %v1440_v15 = vmul.f32 %v6082_v28, %v671_v48  ;;  %6101 = vpow2.f32 %v1303_v45  ;;  %v1197_v26 = vadd.f32 %v5445_v60, %v6641_v43  ;;  %5507 = vmatprep.mubr.bf16.mxu0 %v6772_v54  ;;  %v1188_v29 = vpop.f32.mrb[21].mxu1  ;;  %v673_v52 = vld [vmem:[%s6725_s25 + $0x48] sm:$0xff] }
 0x202   : > { %v6086_v37 = vpop.eup %6085  ;;  %v1469_v16 = vadd.f32 %v1437_v55, %v6674_v4  ;;  %v1438_v21 = vmul.f32 %v6084_v1, %v669_v19  ;;  %6103 = vpow2.f32 %v1299_v50  ;;  %v1189_v22 = vadd.f32 %v6641_v43, %v1188_v29  ;;  %v5446_v30 = vpop.f32.mrb[22].mxu1 }
 0x203   : > { %v6088_v57 = vpop.eup %6087  ;;  %v1472_v36 = vadd.f32 %v1440_v15, %v6686_v12  ;;  %v1345_v11 = vadd.f32 1.0, %v6086_v37  ;;  %6105 = vpow2.f32 %v1305_v53  ;;  %v1257_v33 = vsub.f32 0.0, %v1197_v26  ;;  %v1191_v34 = vpop.f32.mrb[23].mxu1  ;;  %v5983_v12 = vld [vmem:[%s7837_s9 + $0x88] sm:$0xff]  }
 0x204   : > { %v6090_v31 = vpop.eup %6089  ;;  %v1470_v2 = vadd.f32 %v1438_v21, %v6678_v5  ;;  %v1343_v56 = vadd.f32 1.0, %v6088_v57  ;;  %6107 = vpow2.f32 %v1301_v35  ;;  %v1255_v4 = vsub.f32 0.0, %v1189_v22 }
 0x205   : > { %v6092_v38 = vpop.eup %6091  ;;  %6109 = vrcp.f32 %v1345_v11  ;;  %v1346_v3 = vadd.f32 1.0, %v6090_v31  ;;  %v1311_v32 = vmul.f32 1.442695, %v1257_v33  ;;  %v6784_v13 = vpack.c.bf16 %v1468_v0, %v6761_v58  ;;  %v678_v31 = vld [vmem:[%s6725_s25 + $0x70] sm:$0xff] }
 0x206   : > { %6111 = vrcp.f32 %v1343_v56  ;;  %v1344_v5 = vadd.f32 1.0, %v6092_v38  ;;  %v1307_v27 = vmul.f32 1.442695, %v1255_v4  ;;  %v1200_v45 = vadd.f32 %v5446_v30, %v6641_v43  ;;  %v5987_v56 = vld [vmem:[%s7837_s9 + $0x98] sm:$0xff]   ;;  %v676_v38 = vld [vmem:[%s6725_s25 + $0x60] sm:$0xff] }
 0x207   : > { %v6094_v46 = vpop.eup %6093  ;;  %6113 = vrcp.f32 %v1346_v3  ;;  %5508 = vmatmul.mubr.bf16.vlgmr.msra.gmra.mrb[32].mxu0 %v6784_v13  ;;  %v1192_v48 = vadd.f32 %v6641_v43, %v1191_v34  ;;  %v6794_v58 = vpack.c.bf16 %v1470_v2, %v1469_v16  ;;  %v6796_v17 = vpack.c.bf16 %v1472_v36, %v1471_v6 }
 0x208   : > { %v6096_v50 = vpop.eup %6095  ;;  %v6800_v7 = vmul.f32 %v6652_v63, %v6484_v41  ;;  %v1443_v51 = vmul.f32 %v6094_v46, %v674_v39  ;;  %6115 = vrcp.f32 %v1344_v5  ;;  %v1258_v19 = vsub.f32 0.0, %v1200_v45  ;;  %v5449_v53 = vpop.f32.mrb[24].mxu1  ;;  %5588 = vmatpush3.bf16.msra.mxu0 %v6629_v40  ;;  %v5985_v41 = vld [vmem:[%s7837_s9 + $0x90] sm:$0xff]   ;;  %v677_v46 = vld [vmem:[%s6725_s25 + $0x68] sm:$0xff] }
 0x209   : > { %v6098_v28 = vpop.eup %6097  ;;  %v1441_v55 = vmul.f32 %v6096_v50, %v672_v44  ;;  %6117 = vpow2.f32 %v1311_v32  ;;  %v1256_v35 = vsub.f32 0.0, %v1192_v48  ;;  %v1213_v60 = vadd.f32 %v5449_v53, %v6641_v43  ;;  %5511 = vmatprep.mubr.bf16.mxu0 %v6794_v58  ;;  %v1204_v0 = vpop.f32.mrb[25].mxu1  ;;  %5589 = vmatprep.subr.bf16.mxu0 %v5983_v12 }
 0x20a   : > { %v6100_v1 = vpop.eup %6099  ;;  %v1475_v6 = vadd.f32 %v1443_v51, %v6702_v20  ;;  %v1444_v15 = vmul.f32 %v6098_v28, %v675_v47  ;;  %6119 = vpow2.f32 %v1307_v27  ;;  %v1313_v40 = vmul.f32 1.442695, %v1258_v19  ;;  %v5450_v26 = vpop.f32.mrb[26].mxu1 }
 0x20b   : > { %v6102_v29 = vpop.eup %6101  ;;  %v1473_v37 = vadd.f32 %v1441_v55, %v6691_v14  ;;  %v1442_v16 = vmul.f32 %v6100_v1, %v673_v52  ;;  %v1309_v21 = vmul.f32 1.442695, %v1256_v35  ;;  %v1261_v22 = vsub.f32 0.0, %v1213_v60  ;;  %v1207_v30 = vpop.f32.mrb[27].mxu1  ;;  %v5989_v55 = vld [vmem:[%s7837_s9 + $0xa0] sm:$0xff]  }
 0x20c   : > { %v6104_v57 = vpop.eup %6103  ;;  %v1476_v36 = vadd.f32 %v1444_v15, %v6706_v61  ;;  %v1349_v11 = vadd.f32 1.0, %v6102_v29  ;;  %6121 = vpow2.f32 %v1313_v40  ;;  %v1205_v20 = vadd.f32 %v6641_v43, %v1204_v0  ;;  %5590 = vmatpush3.bf16.msra.mxu0 %v5983_v12 }
 0x20d   : > { %v6106_v33 = vpop.eup %6105  ;;  %v1474_v34 = vadd.f32 %v1442_v16, %v6696_v49  ;;  %v1347_v2 = vadd.f32 1.0, %v6104_v57  ;;  %6123 = vpow2.f32 %v1309_v21  ;;  %v1319_v14 = vmul.f32 1.442695, %v1261_v22  ;;  %5591 = vmatprep.subr.bf16.mxu0 %v5985_v41  ;;  %v679_v49 = vld [vmem:[%s6725_s25 + $0x78] sm:$0xff] }
 0x20e   : > { %v6108_v61 = vpop.eup %6107  ;;  %v6818_v4 = vpack.c.bf16 %v1476_v36, %v1475_v6  ;;  %6125 = vrcp.f32 %v1349_v11  ;;  %v1350_v39 = vadd.f32 1.0, %v6106_v33  ;;  %v1259_v3 = vsub.f32 0.0, %v1205_v20 }
 0x20f   : > { %v6110_v32 = vpop.eup %6109  ;;  %v6821_v12 = vpack.c.bf16 %v1474_v34, %v1473_v37  ;;  %6127 = vrcp.f32 %v1347_v2  ;;  %v1348_v44 = vadd.f32 1.0, %v6108_v61  ;;  %5512 = vmatmul.mubr.bf16.gmra.mrb[36].mxu0 %v6796_v17  ;;  %v1216_v5 = vadd.f32 %v5450_v26, %v6641_v43  ;;  %v680_v2 = vld [vmem:[%s6725_s25 + $0x80] sm:$0xff] }
 0x210   : > { %v6112_v27 = vpop.eup %6111  ;;  %v1447_v45 = vmul.f32 %v6110_v32, %v678_v31  ;;  %6129 = vrcp.f32 %v1350_v39  ;;  %v1315_v47 = vmul.f32 1.442695, %v1259_v3  ;;  %v1208_v48 = vadd.f32 %v6641_v43, %v1207_v30  ;;  %v5453_v50 = vpop.f32.mrb[28].mxu1  ;;  %5592 = vmatpush3.bf16.msra.mxu0 %v5985_v41 }
 0x211   : > { %v6114_v51 = vpop.eup %6113  ;;  %v1445_v52 = vmul.f32 %v6112_v27, %v676_v38  ;;  %6131 = vrcp.f32 %v1348_v44  ;;  %v1262_v19 = vsub.f32 0.0, %v1216_v5  ;;  %v1229_v53 = vadd.f32 %v5453_v50, %v6641_v43  ;;  %5515 = vmatprep.mubr.bf16.mxu0 %v6821_v12  ;;  %v1220_v28 = vpop.f32.mrb[29].mxu1  ;;  %5593 = vmatprep.subr.bf16.mxu0 %v5987_v56  ;;  %v683_v38 = vld [vmem:[%s6725_s25 + $0x98] sm:$0xff]  ;;  %v5993_v50 = vld [vmem:[%s7837_s9 + $0xb0] sm:$0xff]  }
 0x212   : > { %v6116_v35 = vpop.eup %6115  ;;  %v1479_v60 = vadd.f32 %v1447_v45, %v6718_v23  ;;  %v1448_v0 = vmul.f32 %v6114_v51, %v679_v49  ;;  %6133 = vpow2.f32 %v1319_v14  ;;  %v1260_v41 = vsub.f32 0.0, %v1208_v48  ;;  %v5454_v1 = vpop.f32.mrb[30].mxu1  ;;  %v6205_v5 = vld [vmem:[%s6358_s13 + $0xb8] sm:$0xff] }
 0x213   : > { %v6118_v6 = vpop.eup %6117  ;;  %v1477_v15 = vadd.f32 %v1445_v52, %v6710_v62  ;;  %v1446_v40 = vmul.f32 %v6116_v35, %v677_v46  ;;  %6135 = vpow2.f32 %v1315_v47  ;;  %v1321_v26 = vmul.f32 1.442695, %v1262_v19  ;;  %v1223_v29 = vpop.f32.mrb[31].mxu1  ;;  %v5991_v62 = vld [vmem:[%s7837_s9 + $0xa8] sm:$0xff]  }
 0x214   : > { %v6120_v37 = vpop.eup %6119  ;;  %v1480_v16 = vadd.f32 %v1448_v0, %v6729_v24  ;;  %v1353_v21 = vadd.f32 1.0, %v6118_v6  ;;  %v1317_v22 = vmul.f32 1.442695, %v1260_v41  ;;  %v1265_v30 = vsub.f32 0.0, %v1229_v53  ;;  %5594 = vmatpush3.bf16.msra.mxu0 %v5987_v56  ;;  %v682_v24 = vld [vmem:[%s6725_s25 + $0x90] sm:$0xff]  ;;  %v681_v46 = vld [vmem:[%s6725_s25 + $0x88] sm:$0xff] }
 0x215   : > { %v1478_v23 = vadd.f32 %v1446_v40, %v6714_v9  ;;  %v1351_v57 = vadd.f32 1.0, %v6120_v37  ;;  %6137 = vpow2.f32 %v1321_v26  ;;  %v1221_v36 = vadd.f32 %v6641_v43, %v1220_v28  ;;  %5595 = vmatprep.subr.bf16.mxu0 %v5989_v55 }
 0x216   : > { %v6122_v11 = vpop.eup %6121  ;;  %v6841_v20 = vpack.c.bf16 %v1480_v16, %v1479_v60  ;;  %6139 = vrcp.f32 %v1353_v21  ;;  %v1327_v33 = vmul.f32 1.442695, %v1265_v30  ;;  %v1232_v34 = vadd.f32 %v5454_v1, %v6641_v43  ;;  %v6864_v60 = vld [vmem:[%s7834_s6] ss:$0 sm:$0xff]  ;;  %v5995_v16 = vld [vmem:[%s7837_s9 + $0xb8] sm:$0xff]  }
 0x217   : > { %v6124_v31 = vpop.eup %6123  ;;  %v6845_v9 = vpack.c.bf16 %v1478_v23, %v1477_v15  ;;  %6141 = vrcp.f32 %v1351_v57  ;;  %v1354_v14 = vadd.f32 1.0, %v6122_v11  ;;  %v1263_v56 = vsub.f32 0.0, %v1221_v36  ;;  %5516 = vmatmul.mubr.bf16.gmra.mrb[40].mxu0 %v6818_v4 }
 0x218   : > { %v6126_v61 = vpop.eup %6125  ;;  %v1352_v39 = vadd.f32 1.0, %v6124_v31  ;;  %6143 = vpow2.f32 %v1317_v22  ;;  %v1266_v3 = vsub.f32 0.0, %v1232_v34  ;;  %v1224_v32 = vadd.f32 %v6641_v43, %v1223_v29  ;;  %v5473_v49 = vpop.f32.mrb[32].mxu1  ;;  %5596 = vmatpush3.bf16.msra.mxu0 %v5989_v55 }
 0x219   : > { %v6128_v44 = vpop.eup %6127  ;;  %v6853_v27 = vmul.f32 %v6205_v5, %v6652_v63  ;;  %v1451_v45 = vmul.f32 %v6126_v61, %v682_v24  ;;  %6145 = vrcp.f32 %v1354_v14  ;;  %v1323_v47 = vmul.f32 1.442695, %v1263_v56  ;;  %5519 = vmatprep.mubr.bf16.mxu0 %v6845_v9  ;;  %v1583_v48 = vpop.f32.mrb[33].mxu1  ;;  %5597 = vmatprep.subr.bf16.mxu0 %v5991_v62  ;;  %v687_v14 = vld [vmem:[%s6725_s25 + $0xb8] sm:$0xff] }
 0x21a   : > { %v6130_v43 = vpop.eup %6129  ;;  %v1449_v51 = vmul.f32 %v6128_v44, %v680_v2  ;;  %6147 = vrcp.f32 %v1352_v39  ;;  %v1329_v52 = vmul.f32 1.442695, %v1266_v3  ;;  %v1264_v19 = vsub.f32 0.0, %v1224_v32  ;;  %v5474_v53 = vpop.f32.mrb[34].mxu1  ;;  %v6888_v3 = vld [vmem:[%s7837_s9 + $0xc0] sm:$0xff]   ;;  %v685_v44 = vld [vmem:[%s6725_s25 + $0xa8] sm:$0xff] }
 0x21b   : > { %v6132_v28 = vpop.eup %6131  ;;  %v1483_v55 = vadd.f32 %v1451_v45, %v6747_v18  ;;  %v1452_v35 = vmul.f32 %v6130_v43, %v683_v38  ;;  %6149 = vpow2.f32 %v1327_v33  ;;  %v1592_v0 = vadd.f32 %v6864_v60, %v5473_v49  ;;  %v1586_v41 = vpop.f32.mrb[35].mxu1 }
 0x21c   : > { %v6134_v1 = vpop.eup %6133  ;;  %v1481_v6 = vadd.f32 %v1449_v51, %v6733_v25  ;;  %v1450_v15 = vmul.f32 %v6132_v28, %v681_v46  ;;  %6151 = vpow2.f32 %v1323_v47  ;;  %v1325_v40 = vmul.f32 1.442695, %v1264_v19  ;;  %5598 = vmatpush3.bf16.msra.mxu0 %v5991_v62  ;;  %v686_v25 = vld [vmem:[%s6725_s25 + $0xb0] sm:$0xff] }
 0x21d   : > { %v6136_v18 = vpop.eup %6135  ;;  %v1484_v26 = vadd.f32 %v1452_v35, %v6752_v8  ;;  %v1357_v29 = vadd.f32 1.0, %v6134_v1  ;;  %6153 = vpow2.f32 %v1329_v52  ;;  %v1584_v37 = vadd.f32 %v6864_v60, %v1583_v48  ;;  %5599 = vmatprep.subr.bf16.mxu0 %v5993_v50  ;;  %v684_v8 = vld [vmem:[%s6725_s25 + $0xa0] sm:$0xff]  ;;  %v6207_v48 = vld [vmem:[%s6358_s13 + $0xa8] sm:$0xff] }
 0x21e   : > { %v1482_v21 = vadd.f32 %v1450_v15, %v6738_v10  ;;  %v1355_v22 = vadd.f32 1.0, %v6136_v18  ;;  %6155 = vpow2.f32 %v1325_v40  ;;  %v1595_v30 = vadd.f32 %v6864_v60, %v5474_v53  ;;  %v6208_v40 = vld [vmem:[%s6358_s13 + $0xc0] sm:$0xff] }
 0x21f   : > { %v6138_v23 = vpop.eup %6137  ;;  %v6876_v57 = vpack.c.bf16 %v1484_v26, %v1483_v55  ;;  %6157 = vrcp.f32 %v1357_v29  ;;  %v1616_v36 = vmax.f32 %v1592_v0, 0.0  ;;  %5520 = vmatmul.mubr.bf16.gmra.mrb[44].mxu0 %v6841_v20  ;;  %v1587_v62 = vadd.f32 %v6864_v60, %v1586_v41  ;;  %v5984_v41 = vld [vmem:[%s7837_s9 + $0x8] sm:$0xff]  }
 0x220   : > { %v6140_v11 = vpop.eup %6139  ;;  %v6881_v24 = vpack.c.bf16 %v1482_v21, %v1481_v6  ;;  %6159 = vrcp.f32 %v1355_v22  ;;  %v1358_v10 = vadd.f32 1.0, %v6138_v23  ;;  %v1617_v33 = vmax.f32 %v1595_v30, 0.0  ;;  %v5477_v34 = vpop.f32.mrb[36].mxu1  ;;  %5600 = vmatpush3.bf16.msra.mxu0 %v5993_v50  ;;  %v6209_v21 = vld [vmem:[%s6358_s13 + $0xd0] sm:$0xff] }
 0x221   : > { %v6142_v31 = vpop.eup %6141  ;;  %v1455_v2 = vmul.f32 %v6140_v11, %v686_v25  ;;  %v1614_v56 = vmax.f32 %v1584_v37, 0.0  ;;  %v1615_v61 = vmax.f32 %v1587_v62, 0.0  ;;  %v1608_v38 = vadd.f32 %v6864_v60, %v5477_v34  ;;  %v1599_v39 = vpop.f32.mrb[37].mxu1  ;;  %5601 = vmatprep.subr.bf16.mxu0 %v5995_v16  ;;  %v690_v30 = vld [vmem:[%s6725_s25 + $0xd0] sm:$0xff] }
 0x222   : > { %v6144_v32 = vpop.eup %6143  ;;  %v1453_v49 = vmul.f32 %v6142_v31, %v684_v8  ;;  %6161 = vrcp.f32 %v1358_v10  ;;  %v1623_v5 = vpack.c.bf16 %v1617_v33, %v1616_v36  ;;  %5523 = vmatprep.mubr.bf16.mxu0 %v6881_v24  ;;  %v1600_v45 = vadd.f32 %v6864_v60, %v1599_v39  ;;  %v5478_v46 = vpop.f32.mrb[38].mxu1  ;;  %v5986_v10 = vld [vmem:[%s7837_s9 + $0x10] sm:$0xff]  }
 0x223   : > { %v6146_v47 = vpop.eup %6145  ;;  %v1422_v50 = vmul.f32 %v6207_v48, %v6652_v63  ;;  %v1487_v43 = vadd.f32 %v1455_v2, %v6800_v7  ;;  %v1356_v51 = vadd.f32 1.0, %v6144_v32  ;;  %v1622_v52 = vpack.c.bf16 %v1615_v61, %v1614_v56  ;;  %v1602_v19 = vpop.f32.mrb[39].mxu1  ;;  %v691_v56 = vld [vmem:[%s6725_s25 + $0xd8] sm:$0xff] }
 0x224   : > { %v6148_v53 = vpop.eup %6147  ;;  %v1485_v28 = vadd.f32 %v1453_v49, %v6757_v59  ;;  %v1456_v55 = vmul.f32 %v6146_v47, %v687_v14  ;;  %v1620_v35 = vmax.f32 %v1608_v38, 0.0  ;;  %v1611_v0 = vadd.f32 %v6864_v60, %v5478_v46  ;;  %5602 = vmatpush3.bf16.msra.mxu0 %v5995_v16  ;;  %v6210_v61 = vld [vmem:[%s6358_s13 + $0xd8] sm:$0xff]  ;;  %v689_v46 = vld [vmem:[%s6725_s25 + $0xc8] sm:$0xff] }
 0x225   : > { %v6150_v1 = vpop.eup %6149  ;;  %v1454_v6 = vmul.f32 %v6148_v53, %v685_v44  ;;  %6163 = vrcp.f32 %v1356_v51  ;;  %v1618_v7 = vmax.f32 %v1600_v45, 0.0  ;;  %5483 = vmatprep.mubr.msk.bf16.mxu1 %vm1025_vm0, %v1622_v52  ;;  %v1603_v15 = vadd.f32 %v6864_v60, %v1602_v19  ;;  %5683 = vmatprep.subr.bf16.mxu0 %v6888_v3  ;;  %v5988_v44 = vld [vmem:[%s7837_s9 + $0x18] sm:$0xff]   ;;  %v6211_v47 = vld [vmem:[%s6358_s13 + $0xc8] sm:$0xff]  ;;  %v694_v52 = vld [vmem:[%s6725_s25 + $0xf0] sm:$0xff] }
 0x226   : > { %v6152_v59 = vpop.eup %6151  ;;  %v1425_v18 = vmul.f32 %v6208_v40, %v6652_v63  ;;  %v1488_v26 = vadd.f32 %v1456_v55, %v6853_v27  ;;  %v1361_v29 = vadd.f32 1.0, %v6150_v1  ;;  %v1621_v37 = vmax.f32 %v1611_v0, 0.0  ;;  %5484 = vmatmul.mubr.msk.bf16.vlgmr.msra.gmra.mrb[40].mxu1 %vm1025_vm0, %v1623_v5  ;;  %v688_v27 = vld [vmem:[%s6725_s25 + $0xc0] sm:$0xff]  ;;  %v6212_v53 = vld [vmem:[%s6358_s13 + $0xf0] sm:$0xff] }
 0x227   : > { %v6154_v16 = vpop.eup %6153  ;;  %v1427_v25 = vmul.f32 %v6209_v21, %v6652_v63  ;;  %v1486_v22 = vadd.f32 %v1454_v6, %v1422_v50  ;;  %v1359_v60 = vadd.f32 1.0, %v6152_v59  ;;  %5524 = vmatmul.mubr.bf16.gmra.mrb[48].mxu0 %v6876_v57  ;;  %v1619_v23 = vmax.f32 %v1603_v15, 0.0  ;;  %5540 = vmatpush3.bf16.msra.mxu1 %v6634_v42  ;;  %v5990_v19 = vld [vmem:[%s7837_s9 + $0x20] sm:$0xff]   ;;  %v6214_v59 = vld [vmem:[%s6358_s13 + $0xf8] sm:$0xff] }
 0x228   : > { %v6156_v8 = vpop.eup %6155  ;;  %v6913_v36 = vpack.c.bf16 %v1488_v26, %v1487_v43  ;;  %6165 = vrcp.f32 %v1361_v29  ;;  %v1362_v62 = vadd.f32 1.0, %v6154_v16  ;;  %v1625_v11 = vpack.c.bf16 %v1621_v37, %v1620_v35  ;;  %5541 = vmatprep.subr.bf16.mxu1 %v5984_v41  ;;  %v692_v35 = vld [vmem:[%s6725_s25 + $0xe0] sm:$0xff]  ;;  %v693_v26 = vld [vmem:[%s6725_s25 + $0xe8] sm:$0xff] }
 0x229   : > { %v6158_v33 = vpop.eup %6157  ;;  %v6919_v34 = vpack.c.bf16 %v1486_v22, %v1485_v28  ;;  %6167 = vrcp.f32 %v1359_v60  ;;  %v1360_v31 = vadd.f32 1.0, %v6156_v8  ;;  %v1624_v42 = vpack.c.bf16 %v1619_v23, %v1618_v7  ;;  %v695_v7 = vld [vmem:[%s6725_s25 + $0xf8] sm:$0xff]  ;;  %v6215_v37 = vld [vmem:[%s6358_s13 + $0xe8] sm:$0xff] }
 0x22a   : > { %v6160_v2 = vpop.eup %6159  ;;  %v1459_v14 = vmul.f32 %v6158_v33, %v690_v30  ;;  %6169 = vrcp.f32 %v1362_v62  ;;  %v1428_v38 = vmul.f32 %v6210_v61, %v6652_v63  ;;  %v1426_v48 = vmul.f32 %v6211_v47, %v6652_v63  ;;  %v5992_v22 = vld [vmem:[%s7837_s9 + $0x28] sm:$0xff]   ;;  %v6005_v61 = vld [vmem:[%s7837_s9 + $0xe0] sm:$0xff]  }
 0x22b   : > { %v1457_v39 = vmul.f32 %v6160_v2, %v688_v27  ;;  %6171 = vrcp.f32 %v1360_v31  ;;  %5542 = vmatpush3.bf16.msra.mxu1 %v5984_v41  ;;  %5527 = vmatprep.mubr.bf16.mxu0 %v6919_v34  ;;  %v1431_v28 = vmul.f32 %v6212_v53, %v6652_v63  ;;  %v6213_v41 = vld [vmem:[%s6358_s13 + $0xe0] sm:$0xff]  ;;  %v1432_v40 = vmul.f32 %v6214_v59, %v6652_v63  ;;  %v5996_v31 = vld [vmem:[%s7837_s9 + $0x38] sm:$0xff]   ;;  %v5999_v2 = vld [vmem:[%s7837_s9 + $0xc8] sm:$0xff]  }
 0x22c   : > { %v6162_v32 = vpop.eup %6161  ;;  %v1491_v49 = vadd.f32 %v1459_v14, %v1427_v25  ;;  %5487 = vmatprep.mubr.msk.bf16.mxu1 %vm1025_vm0, %v1624_v42  ;;  %5543 = vmatprep.subr.bf16.mxu1 %v5986_v10  ;;  %v1429_v1 = vmul.f32 %v6213_v41, %v6652_v63  ;;  %v1430_v16 = vmul.f32 %v6215_v37, %v6652_v63  ;;  %v5998_v42 = vld [vmem:[%s7837_s9 + $0x100] sm:$0xff]   ;;  %v6000_v14 = vld [vmem:[%s7837_s9 + $0x108] sm:$0xff]   ;;  %v6023_v41 = vld [vmem:[%s7837_s9 + $0x170] sm:$0xff]  }
 0x22d   : > { %v1489_v5 = vadd.f32 %v1457_v39, %v1425_v18  ;;  %v1460_v45 = vmul.f32 %v6162_v32, %v691_v56  ;;  %v6002_v56 = vld [vmem:[%s7837_s9 + $0x110] sm:$0xff]   ;;  %v6007_v39 = vld [vmem:[%s7837_s9 + $0xe8] sm:$0xff]   ;;  %v6017_v53 = vld [vmem:[%s7837_s9 + $0x160] sm:$0xff]  }
 0x22e   : > { %5488 = vmatmul.mubr.msk.bf16.gmra.mrb[44].mxu1 %vm1025_vm0, %v1625_v11  ;;  %v5994_v11 = vld [vmem:[%s7837_s9 + $0x30] sm:$0xff]   ;;  %v6008_v32 = vld [vmem:[%s7837_s9 + $0x128] sm:$0xff]   ;;  %v7133_v59 = vld [vmem:[%s7837_s9 + $0x200] sm:$0xff]  }
 0x22f   : > { %v6164_v50 = vpop.eup %6163  ;;  %v1492_v43 = vadd.f32 %v1460_v45, %v1428_v38  ;;  %5528 = vmatmul.mubr.bf16.gmra.mrb[52].mxu0 %v6913_v36  ;;  %5544 = vmatpush3.bf16.msra.mxu1 %v5986_v10  ;;  %v6006_v38 = vld [vmem:[%s7837_s9 + $0x120] sm:$0xff]   ;;  %v6012_v45 = vld [vmem:[%s7837_s9 + $0x138] sm:$0xff]   ;;  %v6014_v47 = vld [vmem:[%s7837_s9 + $0x148] sm:$0xff]  }
 0x230   : > { %v1458_v51 = vmul.f32 %v6164_v50, %v689_v46  ;;  %5555 = vmatprep.mubr.bf16.mxu1 %v6772_v54  ;;  %5545 = vmatprep.subr.bf16.mxu1 %v5988_v44  ;;  %v6013_v46 = vld [vmem:[%s7837_s9 + $0x140] sm:$0xff]   ;;  %v6019_v50 = vld [vmem:[%s7837_s9 + $0x1c8] sm:$0xff]  }
 0x231   : > { %v6941_v55 = vpack.c.bf16 %v1492_v43, %v1491_v49  ;;  %v6009_v49 = vld [vmem:[%s7837_s9 + $0xf0] sm:$0xff]  }
 0x232   : > { %v6166_v0 = vpop.eup %6165  ;;  %v1490_v6 = vadd.f32 %v1458_v51, %v1426_v48  ;;  %v6018_v48 = vld [vmem:[%s7837_s9 + $0x1c0] sm:$0xff]   ;;  %v6015_v43 = vld [vmem:[%s7837_s9 + $0x150] sm:$0xff]  }
 0x233   : > { %v6168_v15 = vpop.eup %6167  ;;  %v1463_v18 = vmul.f32 %v6166_v0, %v694_v52  ;;  %5546 = vmatpush3.bf16.msra.mxu1 %v5988_v44  ;;  %v6010_v44 = vld [vmem:[%s7837_s9 + $0x130] sm:$0xff]   ;;  %v6016_v52 = vld [vmem:[%s7837_s9 + $0x158] sm:$0xff]   ;;  %v6025_v0 = vld [vmem:[%s7837_s9 + $0x1e8] sm:$0xff]  }
 0x234   : > { %v6170_v29 = vpop.eup %6169  ;;  %v6952_v21 = vpack.c.bf16 %v1490_v6, %v1489_v5  ;;  %v1461_v25 = vmul.f32 %v6168_v15, %v692_v35  ;;  %5547 = vmatprep.subr.bf16.mxu1 %v5990_v19  ;;  %v6011_v5 = vld [vmem:[%s7837_s9 + $0xf8] sm:$0xff]   ;;  %v6021_v51 = vld [vmem:[%s7837_s9 + $0x1d0] sm:$0xff]   ;;  %v6024_v35 = vld [vmem:[%s7837_s9 + $0x1e0] sm:$0xff]  }
 0x235   : > { %v6172_v30 = vpop.eup %6171  ;;  %v1495_v60 = vadd.f32 %v1463_v18, %v1431_v28  ;;  %v1464_v23 = vmul.f32 %v6170_v29, %v695_v7  ;;  %v6020_v28 = vld [vmem:[%s7837_s9 + $0x168] sm:$0xff]   ;;  %v6026_v6 = vld [vmem:[%s7837_s9 + $0x178] sm:$0xff]   ;;  %v7121_v15 = vld [vmem:[%s7837_s9 + $0x180] sm:$0xff]  }
 0x236   : > { %v1493_v8 = vadd.f32 %v1461_v25, %v1429_v1  ;;  %v1462_v27 = vmul.f32 %v6172_v30, %v693_v26  ;;  %5531 = vmatprep.mubr.bf16.mxu0 %v6952_v21  ;;  %v6027_v1 = vld [vmem:[%s7837_s9 + $0x1f0] sm:$0xff]   ;;  %v6028_v7 = vld [vmem:[%s7837_s9 + $0x1f8] sm:$0xff]  }
 0x237   : > { %v1496_v62 = vadd.f32 %v1464_v23, %v1432_v40  ;;  %5532 = vmatmul.mubr.bf16.gmra.mrb[56].mxu0 %v6941_v55  ;;  %5548 = vmatpush3.bf16.msra.mxu1 %v5990_v19  ;;  %v6022_v19 = vld [vmem:[%s7837_s9 + $0x1d8] sm:$0xff]   ;;  %v2066_v40 = vlaneseq }
 0x238   : > { %v1494_v63 = vadd.f32 %v1462_v27, %v1430_v16  ;;  %5549 = vmatprep.subr.bf16.mxu1 %v5992_v22 }
 0x239   : > { %v6962_v10 = vpack.c.bf16 %v1496_v62, %v1495_v60  ;;  %v7136_v18 = vshrl.u32 %v2066_v40, 7 }
 0x23a   : > { %v6964_v33 = vpack.c.bf16 %v1494_v63, %v1493_v8 }
 0x23b   : > { %5550 = vmatpush3.bf16.msra.mxu1 %v5992_v22  ;;  %vm2068_vm1 = vcmp.lt.s32.totalorder %v7136_v18, 7  ;;  %vm2568_vm2 = vcmp.lt.s32.totalorder %v7136_v18, 6 }
 0x23c   : > { %5535 = vmatprep.mubr.bf16.mxu0 %v6964_v33  ;;  %5551 = vmatprep.subr.bf16.mxu1 %v5994_v11 }
 0x23f   : > { %5536 = vmatmul.mubr.bf16.gmra.mrb[60].mxu0 %v6962_v10  ;;  %5552 = vmatpush3.bf16.msra.mxu1 %v5994_v11 }
 0x240   : > { %5603 = vmatprep.mubr.bf16.mxu0 %v6772_v54  ;;  %5553 = vmatprep.subr.bf16.mxu1 %v5996_v31  ;;  %v6001_v54 = vld [vmem:[%s7837_s9 + $0xd0] sm:$0xff]  }
 0x243   : > { %5554 = vmatpush3.bf16.msra.mxu1 %v5996_v31 }
 0x244   : > { %5635 = vmatprep.subr.bf16.mxu1 %v5998_v42 }
 0x246   : > { %5556 = vmatmul.mubr.bf16.vlgmr.msra.gmra.mrb[48].mxu1 %v6784_v13 }
 0x247   : > { %5604 = vmatmul.mubr.bf16.vlgmr.msra.gmra.mrb[64].mxu0 %v6784_v13  ;;  %5559 = vmatprep.mubr.bf16.mxu1 %v6794_v58  ;;  %v6003_v13 = vld [vmem:[%s7837_s9 + $0xd8] sm:$0xff]  }
 0x248   : > { %5607 = vmatprep.mubr.bf16.mxu0 %v6794_v58  ;;  %5684 = vmatpush3.bf16.msra.mxu0 %v6888_v3  ;;  %v6004_v3 = vld [vmem:[%s7837_s9 + $0x118] sm:$0xff]  }
 0x249   : > { %5636 = vmatpush3.bf16.msra.mxu1 %v5998_v42  ;;  %5685 = vmatprep.subr.bf16.mxu0 %v5999_v2 }
 0x24a   : > { %5637 = vmatprep.subr.bf16.mxu1 %v6000_v14 }
 0x24c   : > { %5686 = vmatpush3.bf16.msra.mxu0 %v5999_v2 }
 0x24d   : > { %5638 = vmatpush3.bf16.msra.mxu1 %v6000_v14  ;;  %5687 = vmatprep.subr.bf16.mxu0 %v6001_v54 }
 0x24e   : > { %5560 = vmatmul.mubr.bf16.gmra.mrb[52].mxu1 %v6796_v17  ;;  %5639 = vmatprep.subr.bf16.mxu1 %v6002_v56 }
 0x24f   : > { %5608 = vmatmul.mubr.bf16.gmra.mrb[68].mxu0 %v6796_v17  ;;  %5563 = vmatprep.mubr.bf16.mxu1 %v6821_v12 }
 0x250   : > { %5611 = vmatprep.mubr.bf16.mxu0 %v6821_v12  ;;  %5688 = vmatpush3.bf16.msra.mxu0 %v6001_v54 }
 0x251   : > { %5640 = vmatpush3.bf16.msra.mxu1 %v6002_v56  ;;  %5689 = vmatprep.subr.bf16.mxu0 %v6003_v13 }
 0x252   : > { %5641 = vmatprep.subr.bf16.mxu1 %v6004_v3 }
 0x254   : > { %5690 = vmatpush3.bf16.msra.mxu0 %v6003_v13 }
 0x255   : > { %5642 = vmatpush3.bf16.msra.mxu1 %v6004_v3  ;;  %5691 = vmatprep.subr.bf16.mxu0 %v6005_v61 }
 0x256   : > { %5564 = vmatmul.mubr.bf16.gmra.mrb[56].mxu1 %v6818_v4  ;;  %5643 = vmatprep.subr.bf16.mxu1 %v6006_v38 }
 0x257   : > { %5612 = vmatmul.mubr.bf16.gmra.mrb[72].mxu0 %v6818_v4  ;;  %5567 = vmatprep.mubr.bf16.mxu1 %v6845_v9 }
 0x258   : > { %5615 = vmatprep.mubr.bf16.mxu0 %v6845_v9  ;;  %5692 = vmatpush3.bf16.msra.mxu0 %v6005_v61 }
 0x259   : > { %5644 = vmatpush3.bf16.msra.mxu1 %v6006_v38  ;;  %5693 = vmatprep.subr.bf16.mxu0 %v6007_v39 }
 0x25a   : > { %5645 = vmatprep.subr.bf16.mxu1 %v6008_v32 }
 0x25c   : > { %5694 = vmatpush3.bf16.msra.mxu0 %v6007_v39 }
 0x25d   : > { %5646 = vmatpush3.bf16.msra.mxu1 %v6008_v32  ;;  %5695 = vmatprep.subr.bf16.mxu0 %v6009_v49 }
 0x25e   : > { %5568 = vmatmul.mubr.bf16.gmra.mrb[60].mxu1 %v6841_v20  ;;  %5647 = vmatprep.subr.bf16.mxu1 %v6010_v44 }
 0x25f   : > { %5616 = vmatmul.mubr.bf16.gmra.mrb[76].mxu0 %v6841_v20  ;;  %5571 = vmatprep.mubr.bf16.mxu1 %v6881_v24 }
 0x260   : > { %5619 = vmatprep.mubr.bf16.mxu0 %v6881_v24  ;;  %5696 = vmatpush3.bf16.msra.mxu0 %v6009_v49 }
 0x261   : > { %5648 = vmatpush3.bf16.msra.mxu1 %v6010_v44  ;;  %5697 = vmatprep.subr.bf16.mxu0 %v6011_v5 }
 0x262   : > { %5649 = vmatprep.subr.bf16.mxu1 %v6012_v45 }
 0x264   : > { %5698 = vmatpush3.bf16.msra.mxu0 %v6011_v5 }
 0x265   : > { %5650 = vmatpush3.bf16.msra.mxu1 %v6012_v45  ;;  %5779 = vmatprep.subr.bf16.mxu0 %v6018_v48 }
 0x266   : > { %5572 = vmatmul.mubr.bf16.gmra.mrb[64].mxu1 %v6876_v57  ;;  %5731 = vmatprep.subr.bf16.mxu1 %v6013_v46 }
 0x267   : > { %5620 = vmatmul.mubr.bf16.gmra.mrb[80].mxu0 %v6876_v57  ;;  %5575 = vmatprep.mubr.bf16.mxu1 %v6919_v34 }
 0x268   : > { %5623 = vmatprep.mubr.bf16.mxu0 %v6919_v34 }
 0x26e   : > { %5576 = vmatmul.mubr.bf16.gmra.mrb[68].mxu1 %v6913_v36 }
 0x26f   : > { %5624 = vmatmul.mubr.bf16.gmra.mrb[84].mxu0 %v6913_v36  ;;  %5579 = vmatprep.mubr.bf16.mxu1 %v6952_v21 }
 0x270   : > { %5627 = vmatprep.mubr.bf16.mxu0 %v6952_v21 }
 0x276   : > { %5580 = vmatmul.mubr.bf16.gmra.mrb[72].mxu1 %v6941_v55 }
 0x277   : > { %5628 = vmatmul.mubr.bf16.gmra.mrb[88].mxu0 %v6941_v55  ;;  %5583 = vmatprep.mubr.bf16.mxu1 %v6964_v33 }
 0x278   : > { %5631 = vmatprep.mubr.bf16.mxu0 %v6964_v33 }
 0x27e   : > { %5584 = vmatmul.mubr.bf16.gmra.mrb[76].mxu1 %v6962_v10 }
 0x27f   : > { %5632 = vmatmul.mubr.bf16.gmra.mrb[92].mxu0 %v6962_v10  ;;  %5651 = vmatprep.mubr.bf16.mxu1 %v6794_v58 }
 0x280   : > { %5699 = vmatprep.mubr.bf16.mxu0 %v6794_v58 }
 0x286   : > { %5652 = vmatmul.mubr.bf16.vlgmr.msra.gmra.mrb[80].mxu1 %v6796_v17 }
 0x287   : > { %5700 = vmatmul.mubr.bf16.vlgmr.msra.gmra.mrb[96].mxu0 %v6796_v17  ;;  %5655 = vmatprep.mubr.bf16.mxu1 %v6821_v12 }
 0x288   : > { %5703 = vmatprep.mubr.bf16.mxu0 %v6821_v12  ;;  %5732 = vmatpush3.bf16.msra.mxu1 %v6013_v46 }
 0x289   : > { %5733 = vmatprep.subr.bf16.mxu1 %v6014_v47  ;;  %5780 = vmatpush3.bf16.msra.mxu0 %v6018_v48 }
 0x28a   : > { %5781 = vmatprep.subr.bf16.mxu0 %v6019_v50 }
 0x28c   : > { %5734 = vmatpush3.bf16.msra.mxu1 %v6014_v47 }
 0x28d   : > { %5782 = vmatpush3.bf16.msra.mxu0 %v6019_v50  ;;  %5735 = vmatprep.subr.bf16.mxu1 %v6015_v43 }
 0x28e   : > { %5656 = vmatmul.mubr.bf16.gmra.mrb[84].mxu1 %v6818_v4  ;;  %5783 = vmatprep.subr.bf16.mxu0 %v6021_v51 }
 0x28f   : > { %5704 = vmatmul.mubr.bf16.gmra.mrb[100].mxu0 %v6818_v4  ;;  %5659 = vmatprep.mubr.bf16.mxu1 %v6845_v9 }
 0x290   : > { %5707 = vmatprep.mubr.bf16.mxu0 %v6845_v9  ;;  %5736 = vmatpush3.bf16.msra.mxu1 %v6015_v43 }
 0x291   : > { %5784 = vmatpush3.bf16.msra.mxu0 %v6021_v51  ;;  %5737 = vmatprep.subr.bf16.mxu1 %v6016_v52 }
 0x292   : > { %5785 = vmatprep.subr.bf16.mxu0 %v6022_v19 }
 0x294   : > { %5738 = vmatpush3.bf16.msra.mxu1 %v6016_v52 }
 0x295   : > { %5786 = vmatpush3.bf16.msra.mxu0 %v6022_v19  ;;  %5739 = vmatprep.subr.bf16.mxu1 %v6017_v53 }
 0x296   : > { %5660 = vmatmul.mubr.bf16.gmra.mrb[88].mxu1 %v6841_v20  ;;  %5787 = vmatprep.subr.bf16.mxu0 %v6024_v35 }
 0x297   : > { %5708 = vmatmul.mubr.bf16.gmra.mrb[104].mxu0 %v6841_v20  ;;  %5663 = vmatprep.mubr.bf16.mxu1 %v6881_v24 }
 0x298   : > { %5711 = vmatprep.mubr.bf16.mxu0 %v6881_v24  ;;  %5740 = vmatpush3.bf16.msra.mxu1 %v6017_v53  ;;  %v6216_v53 = vld [vmem:[%s7836_s8] ss:$0 sm:$0xff] }
 0x299   : > { %5741 = vmatprep.subr.bf16.mxu1 %v6020_v28  ;;  %5788 = vmatpush3.bf16.msra.mxu0 %v6024_v35 }
 0x29a   : > { %5789 = vmatprep.subr.bf16.mxu0 %v6025_v0 }
 0x29c   : > { %5742 = vmatpush3.bf16.msra.mxu1 %v6020_v28 }
 0x29d   : > { %5743 = vmatprep.subr.bf16.mxu1 %v6023_v41  ;;  %5790 = vmatpush3.bf16.msra.mxu0 %v6025_v0 }
 0x29e   : > { %5664 = vmatmul.mubr.bf16.gmra.mrb[92].mxu1 %v6876_v57  ;;  %5791 = vmatprep.subr.bf16.mxu0 %v6027_v1 }
 0x29f   : > { %5712 = vmatmul.mubr.bf16.gmra.mrb[108].mxu0 %v6876_v57  ;;  %5667 = vmatprep.mubr.bf16.mxu1 %v6919_v34 }
 0x2a0   : > { %5715 = vmatprep.mubr.bf16.mxu0 %v6919_v34  ;;  %5744 = vmatpush3.bf16.msra.mxu1 %v6023_v41 }
 0x2a1   : > { %5745 = vmatprep.subr.bf16.mxu1 %v6026_v6  ;;  %5792 = vmatpush3.bf16.msra.mxu0 %v6027_v1 }
 0x2a2   : > { %5793 = vmatprep.subr.bf16.mxu0 %v6028_v7 }
 0x2a4   : > { %5746 = vmatpush3.bf16.msra.mxu1 %v6026_v6 }
 0x2a5   : > { %5827 = vmatprep.subr.bf16.mxu1 %v7121_v15  ;;  %5794 = vmatpush3.bf16.msra.mxu0 %v6028_v7 }
 0x2a6   : > { %5668 = vmatmul.mubr.bf16.gmra.mrb[96].mxu1 %v6913_v36  ;;  %5875 = vmatprep.subr.bf16.mxu0 %v7133_v59 }
 0x2a7   : > { %5716 = vmatmul.mubr.bf16.gmra.mrb[112].mxu0 %v6913_v36  ;;  %5671 = vmatprep.mubr.bf16.mxu1 %v6952_v21 }
 0x2a8   : > { %5719 = vmatprep.mubr.bf16.mxu0 %v6952_v21 }
 0x2ae   : > { %5672 = vmatmul.mubr.bf16.gmra.mrb[100].mxu1 %v6941_v55 }
 0x2af   : > { %5720 = vmatmul.mubr.bf16.gmra.mrb[116].mxu0 %v6941_v55  ;;  %5675 = vmatprep.mubr.bf16.mxu1 %v6964_v33 }
 0x2b0   : > { %5723 = vmatprep.mubr.bf16.mxu0 %v6964_v33 }
 0x2b6   : > { %5676 = vmatmul.mubr.bf16.gmra.mrb[104].mxu1 %v6962_v10 }
 0x2b7   : > { %5724 = vmatmul.mubr.bf16.gmra.mrb[120].mxu0 %v6962_v10 }
 0x2da   : > { %v5509_v26 = vpop.f32.mrb[32].mxu0 }
 0x2db   : > { %v1907_v29 = vpop.f32.mrb[33].mxu0  ;;  %v2036_v25 = vrot.slane %v5509_v26, 1 }
 0x2dc   : > { %v5510_v37 = vpop.f32.mrb[34].mxu0  ;;  %v2034_v22 = vrot.slane %v1907_v29, 1 }
 0x2dd   : > { %v1910_v16 = vpop.f32.mrb[35].mxu0 }
 0x2de   : > { %v2035_v30 = vrot.slane %v1910_v16, 1 }
 0x2e0   : > { %v7141_v60 = vsel %vm2068_vm1, %v2034_v22, %v2035_v30  ;;  %v7145_v23 = vsel %vm2068_vm1, %v2035_v30, %v2036_v25 }
 0x2e2   : > { %v5513_v8 = vpop.f32.mrb[36].mxu0 }
 0x2e3   : > { %v1923_v27 = vpop.f32.mrb[37].mxu0  ;;  %v2040_v11 = vrot.slane %v5513_v8, 1 }
 0x2e4   : > { %v5514_v62 = vpop.f32.mrb[38].mxu0  ;;  %v2038_v31 = vrot.slane %v1923_v27, 1 }
 0x2e5   : > { %v1926_v63 = vpop.f32.mrb[39].mxu0 }
 0x2e6   : > { %v2039_v42 = vrot.slane %v1926_v63, 1 }
 0x2e8   : > { %v7149_v2 = vsel %vm2068_vm1, %v2038_v31, %v2039_v42  ;;  %v7153_v14 = vsel %vm2068_vm1, %v2039_v42, %v2040_v11 }
 0x2ea   : > { %v5517_v54 = vpop.f32.mrb[40].mxu0 }
 0x2eb   : > { %v1939_v56 = vpop.f32.mrb[41].mxu0  ;;  %v2044_v61 = vrot.slane %v5517_v54, 1 }
 0x2ec   : > { %v5518_v13 = vpop.f32.mrb[42].mxu0  ;;  %v2042_v38 = vrot.slane %v1939_v56, 1 }
 0x2ed   : > { %v1942_v3 = vpop.f32.mrb[43].mxu0 }
 0x2ee   : > { %v2043_v39 = vrot.slane %v1942_v3, 1 }
 0x2f0   : > { %v7157_v32 = vsel %vm2068_vm1, %v2042_v38, %v2043_v39  ;;  %v7161_v49 = vsel %vm2068_vm1, %v2043_v39, %v2044_v61 }
 0x2f2   : > { %v5521_v44 = vpop.f32.mrb[44].mxu0 }
 0x2f3   : > { %v1955_v5 = vpop.f32.mrb[45].mxu0  ;;  %v2048_v47 = vrot.slane %v5521_v44, 1 }
 0x2f4   : > { %v5522_v45 = vpop.f32.mrb[46].mxu0  ;;  %v2046_v48 = vrot.slane %v1955_v5, 1 }
 0x2f5   : > { %v1958_v46 = vpop.f32.mrb[47].mxu0 }
 0x2f6   : > { %v2047_v50 = vrot.slane %v1958_v46, 1 }
 0x2f8   : > { %v7165_v43 = vsel %vm2068_vm1, %v2046_v48, %v2047_v50  ;;  %v7169_v51 = vsel %vm2068_vm1, %v2047_v50, %v2048_v47 }
 0x2f9   : > { %v5485_v52 = vpop.f32.mrb[40].mxu1 }
 0x2fa   : > { %v5525_v19 = vpop.f32.mrb[48].mxu0  ;;  %v1681_v28 = vadd.f32 %v6216_v53, %v5485_v52  ;;  %v1672_v35 = vpop.f32.mrb[41].mxu1 }
 0x2fb   : > { %v1971_v0 = vpop.f32.mrb[49].mxu0  ;;  %v1673_v41 = vadd.f32 %v6216_v53, %v1672_v35  ;;  %v5486_v1 = vpop.f32.mrb[42].mxu1  ;;  %v2052_v29 = vrot.slane %v5525_v19, 1 }
 0x2fc   : > { %v1705_v6 = vsub.f32 0.0, %v1681_v28  ;;  %v5526_v7 = vpop.f32.mrb[50].mxu0  ;;  %v1684_v40 = vadd.f32 %v6216_v53, %v5486_v1  ;;  %v1675_v26 = vpop.f32.mrb[43].mxu1  ;;  %v2050_v22 = vrot.slane %v1971_v0, 1 }
 0x2fd   : > { %v1703_v37 = vsub.f32 0.0, %v1673_v41  ;;  %v1974_v16 = vpop.f32.mrb[51].mxu0  ;;  %v1676_v25 = vadd.f32 %v6216_v53, %v1675_v26 }
 0x2fe   : > { %v1715_v30 = vmul.f32 1.442695, %v1705_v6  ;;  %v2051_v8 = vrot.slane %v1974_v16, 1  ;;  %v1706_v27 = vsub.f32 0.0, %v1684_v40 }
 0x2ff   : > { %v1711_v62 = vmul.f32 1.442695, %v1703_v37  ;;  %v1704_v63 = vsub.f32 0.0, %v1676_v25 }
 0x300   : > { %6173 = vpow2.f32 %v1715_v30  ;;  %v1717_v11 = vmul.f32 1.442695, %v1706_v27  ;;  %v7176_v31 = vsel %vm2068_vm1, %v2050_v22, %v2051_v8  ;;  %v7180_v42 = vsel %vm2068_vm1, %v2051_v8, %v2052_v29 }
 0x301   : > { %6175 = vpow2.f32 %v1711_v62  ;;  %v1713_v54 = vmul.f32 1.442695, %v1704_v63  ;;  %v5489_v56 = vpop.f32.mrb[44].mxu1 }
 0x302   : > { %6177 = vpow2.f32 %v1717_v11  ;;  %v5529_v13 = vpop.f32.mrb[52].mxu0  ;;  %v1697_v3 = vadd.f32 %v6216_v53, %v5489_v56  ;;  %v1688_v61 = vpop.f32.mrb[45].mxu1 }
 0x303   : > { %6179 = vpow2.f32 %v1713_v54  ;;  %v1987_v38 = vpop.f32.mrb[53].mxu0  ;;  %v1689_v39 = vadd.f32 %v6216_v53, %v1688_v61  ;;  %v5490_v44 = vpop.f32.mrb[46].mxu1  ;;  %v2056_v48 = vrot.slane %v5529_v13, 1 }
 0x304   : > { %v5530_v5 = vpop.f32.mrb[54].mxu0  ;;  %v1709_v45 = vsub.f32 0.0, %v1697_v3  ;;  %v1700_v46 = vadd.f32 %v6216_v53, %v5490_v44  ;;  %v1691_v47 = vpop.f32.mrb[47].mxu1  ;;  %v2054_v28 = vrot.slane %v1987_v38, 1 }
 0x305   : > { %v1990_v50 = vpop.f32.mrb[55].mxu0  ;;  %v1707_v52 = vsub.f32 0.0, %v1689_v39  ;;  %v1692_v19 = vadd.f32 %v6216_v53, %v1691_v47 }
 0x306   : > { %v2055_v35 = vrot.slane %v1990_v50, 1  ;;  %v1723_v0 = vmul.f32 1.442695, %v1709_v45  ;;  %v1710_v41 = vsub.f32 0.0, %v1700_v46 }
 0x307   : > { %v1719_v1 = vmul.f32 1.442695, %v1707_v52  ;;  %v1708_v6 = vsub.f32 0.0, %v1692_v19  ;;  %v6217_v19 = vld [vmem:[%s6584_s27 + $0x10] sm:$0xff] }
 0x308   : > { %6181 = vpow2.f32 %v1723_v0  ;;  %v1725_v7 = vmul.f32 1.442695, %v1710_v41  ;;  %v7184_v40 = vsel %vm2068_vm1, %v2054_v28, %v2055_v35  ;;  %v7188_v26 = vsel %vm2068_vm1, %v2055_v35, %v2056_v48  ;;  %v7209_v28 = vld [vmem:[%s7828_s0] ss:$0 sm:$0xff]  ;;  %v1531_v0 = vld [vmem:[%s7203_s17 + $0x10] sm:$0xff] }
 0x309   : > { %6183 = vpow2.f32 %v1719_v1  ;;  %v1721_v29 = vmul.f32 1.442695, %v1708_v6  ;;  %v1745_v35 = vmul.f32 %v7209_v28, %v6217_v19 }
 0x30a   : > { %v6174_v37 = vpop.eup %6173  ;;  %v5533_v53 = vpop.f32.mrb[56].mxu0  ;;  %6185 = vpow2.f32 %v1725_v7  ;;  %v1529_v7 = vld [vmem:[%s7203_s17] sm:$0xff] }
 0x30b   : > { %v6176_v16 = vpop.eup %6175  ;;  %v1729_v25 = vadd.f32 1.0, %v6174_v37  ;;  %v2003_v22 = vpop.f32.mrb[57].mxu0  ;;  %6187 = vpow2.f32 %v1721_v29  ;;  %v2060_v11 = vrot.slane %v5533_v53, 1 }
 0x30c   : > { %v6178_v30 = vpop.eup %6177  ;;  %v1727_v8 = vadd.f32 1.0, %v6176_v16  ;;  %v5534_v27 = vpop.f32.mrb[58].mxu0  ;;  %v2058_v13 = vrot.slane %v2003_v22, 1 }
 0x30d   : > { %v6180_v62 = vpop.eup %6179  ;;  %6189 = vrcp.f32 %v1729_v25  ;;  %v1730_v63 = vadd.f32 1.0, %v6178_v30  ;;  %v2006_v54 = vpop.f32.mrb[59].mxu0  ;;  %v6219_v25 = vld [vmem:[%s6584_s27] sm:$0xff]  ;;  %v6220_v30 = vld [vmem:[%s6584_s27 + $0x18] sm:$0xff] }
 0x30e   : > { %6191 = vrcp.f32 %v1727_v8  ;;  %v1728_v56 = vadd.f32 1.0, %v6180_v62  ;;  %v2059_v3 = vrot.slane %v2006_v54, 1  ;;  %v1743_v22 = vmul.f32 %v6219_v25, %v7209_v28  ;;  %v1532_v27 = vld [vmem:[%s7203_s17 + $0x18] sm:$0xff] }
 0x30f   : > { %6193 = vrcp.f32 %v1730_v63  ;;  %v1746_v8 = vmul.f32 %v6220_v30, %v7209_v28 }
 0x310   : > { %6195 = vrcp.f32 %v1728_v56  ;;  %v7192_v61 = vsel %vm2068_vm1, %v2058_v13, %v2059_v3  ;;  %v7196_v38 = vsel %vm2068_vm1, %v2059_v3, %v2060_v11  ;;  %v1530_v11 = vld [vmem:[%s7203_s17 + $0x8] sm:$0xff] }
 0x311   : > { %v6221_v3 = vld [vmem:[%s6584_s27 + $0x8] sm:$0xff] }
 0x312   : > { %v6182_v39 = vpop.eup %6181  ;;  %v5537_v44 = vpop.f32.mrb[60].mxu0 }
 0x313   : > { %v6184_v5 = vpop.eup %6183  ;;  %v2019_v45 = vpop.f32.mrb[61].mxu0  ;;  %v1733_v46 = vadd.f32 1.0, %v6182_v39  ;;  %v2064_v41 = vrot.slane %v5537_v44, 1  ;;  %v1744_v39 = vmul.f32 %v6221_v3, %v7209_v28  ;;  %v6224_v3 = vld [vmem:[%s6584_s27 + $0x28] sm:$0xff] }
 0x314   : > { %v6186_v47 = vpop.eup %6185  ;;  %v5538_v48 = vpop.f32.mrb[62].mxu0  ;;  %v1731_v50 = vadd.f32 1.0, %v6184_v5  ;;  %v2062_v29 = vrot.slane %v2019_v45, 1 }
 0x315   : > { %v6188_v52 = vpop.eup %6187  ;;  %v2022_v1 = vpop.f32.mrb[63].mxu0  ;;  %6197 = vrcp.f32 %v1733_v46  ;;  %v1734_v6 = vadd.f32 1.0, %v6186_v47 }
 0x316   : > { %v2063_v37 = vrot.slane %v2022_v1, 1  ;;  %6199 = vrcp.f32 %v1731_v50  ;;  %v1732_v53 = vadd.f32 1.0, %v6188_v52 }
 0x317   : > { %v6190_v16 = vpop.eup %6189  ;;  %6201 = vrcp.f32 %v1734_v6 }
 0x318   : > { %v6192_v62 = vpop.eup %6191  ;;  %v1753_v63 = vmul.f32 %v6190_v16, %v1531_v0  ;;  %6203 = vrcp.f32 %v1732_v53  ;;  %v7222_v54 = vsel %vm2068_vm1, %v2062_v29, %v2063_v37  ;;  %v7226_v56 = vsel %vm2068_vm1, %v2063_v37, %v2064_v41 }
 0x319   : > { %v6194_v13 = vpop.eup %6193  ;;  %v1751_v44 = vmul.f32 %v6192_v62, %v1529_v7  ;;  %v5557_v5 = vpop.f32.mrb[48].mxu1  ;;  %v6222_v7 = vld [vmem:[%s6584_s27 + $0x30] sm:$0xff]  ;;  %v1533_v62 = vld [vmem:[%s7203_s17 + $0x20] sm:$0xff] }
 0x31a   : > { %v6196_v45 = vpop.eup %6195  ;;  %v1761_v46 = vadd.f32 %v1753_v63, %v1745_v35  ;;  %v1754_v47 = vmul.f32 %v6194_v13, %v1532_v27  ;;  %v5605_v48 = vpop.f32.mrb[64].mxu0  ;;  %v1749_v53 = vmul.f32 %v6222_v7, %v7209_v28  ;;  %v1536_v5 = vld [vmem:[%s7203_s17 + $0x38] sm:$0xff] }
 0x31b   : > { %v2183_v50 = vpop.f32.mrb[49].mxu1  ;;  %v1759_v52 = vadd.f32 %v1751_v44, %v1743_v22  ;;  %v1752_v19 = vmul.f32 %v6196_v45, %v1530_v11  ;;  %v2409_v0 = vpop.f32.mrb[65].mxu0  ;;  %v1535_v22 = vld [vmem:[%s7203_s17 + $0x30] sm:$0xff]  ;;  %v6223_v11 = vld [vmem:[%s6584_s27 + $0x20] sm:$0xff] }
 0x31c   : > { %v2184_v1 = vadd.f32 %v2183_v50, %v7141_v60  ;;  %v5558_v41 = vpop.f32.mrb[50].mxu1  ;;  %v1762_v6 = vadd.f32 %v1754_v47, %v1746_v8  ;;  %v5606_v29 = vpop.f32.mrb[66].mxu0  ;;  %v2538_v60 = vrot.slane %v5605_v48, 2  ;;  %v2536_v30 = vrot.slane %v2409_v0, 2  ;;  %v1534_v50 = vld [vmem:[%s7203_s17 + $0x28] sm:$0xff] }
 0x31d   : > { %v2186_v37 = vpop.f32.mrb[51].mxu1  ;;  %v1760_v35 = vadd.f32 %v1752_v19, %v1744_v39  ;;  %v2412_v16 = vpop.f32.mrb[67].mxu0  ;;  %v1747_v13 = vmul.f32 %v6223_v11, %v7209_v28  ;;  %v1748_v39 = vmul.f32 %v6224_v3, %v7209_v28 }
 0x31e   : > { %v2187_v25 = vadd.f32 %v2186_v37, %v7145_v23  ;;  %v2537_v8 = vrot.slane %v2412_v16, 2  ;;  %v7236_v27 = vpack.c.bf16 %v1762_v6, %v1761_v46  ;;  %v6225_v23 = vld [vmem:[%s6584_s27 + $0x38] sm:$0xff] }
 0x31f   : > { %v6198_v63 = vpop.eup %6197  ;;  %v7243_v44 = vpack.c.bf16 %v1760_v35, %v1759_v52  ;;  %v1750_v47 = vmul.f32 %v6225_v23, %v7209_v28 }
 0x320   : > { %v6200_v45 = vpop.eup %6199  ;;  %v2599_v48 = vsel %vm2568_vm2, %v2536_v30, %v2537_v8  ;;  %v2598_v46 = vsel %vm2568_vm2, %v2537_v8, %v2538_v60  ;;  %v1757_v19 = vmul.f32 %v6198_v63, %v1535_v22 }
 0x321   : > { %v6202_v0 = vpop.eup %6201  ;;  %v7253_v41 = vadd.f32 %v2599_v48, %v2184_v1  ;;  %v7255_v6 = vadd.f32 %v2598_v46, %v2187_v25  ;;  %v5561_v52 = vpop.f32.mrb[52].mxu1  ;;  %5679 = vmatprep.mubr.bf16.mxu1 %v7243_v44  ;;  %5727 = vmatprep.mubr.bf16.mxu0 %v7243_v44  ;;  %v1755_v29 = vmul.f32 %v6200_v45, %v1533_v62 }
 0x322   : > { %v6204_v28 = vpop.eup %6203  ;;  %v5609_v37 = vpop.f32.mrb[68].mxu0  ;;  %5680 = vmatmul.mubr.bf16.gmra.mrb[108].mxu1 %v7236_v27  ;;  %5728 = vmatmul.mubr.bf16.gmra.mrb[124].mxu0 %v7236_v27  ;;  %v1758_v35 = vmul.f32 %v6202_v0, %v1536_v5  ;;  %v1765_v16 = vadd.f32 %v1757_v19, %v1749_v53  ;;  %v7285_v0 = vld [vmem:[%s7837_s9 + $0x208] sm:$0xff]  }
 0x323   : > { %v2199_v7 = vpop.f32.mrb[53].mxu1  ;;  %v2425_v22 = vpop.f32.mrb[69].mxu0  ;;  %5747 = vmatprep.mubr.bf16.mxu1 %v6794_v58  ;;  %5795 = vmatprep.mubr.bf16.mxu0 %v6821_v12  ;;  %v1756_v60 = vmul.f32 %v6204_v28, %v1534_v50  ;;  %v1763_v30 = vadd.f32 %v1755_v29, %v1747_v13  ;;  %v2542_v23 = vrot.slane %v5609_v37, 2 }
 0x324   : > { %v2200_v1 = vadd.f32 %v2199_v7, %v7149_v2  ;;  %v5562_v25 = vpop.f32.mrb[54].mxu1  ;;  %v5610_v8 = vpop.f32.mrb[70].mxu0  ;;  %v1766_v63 = vadd.f32 %v1758_v35, %v1750_v47  ;;  %v2540_v5 = vrot.slane %v2425_v22, 2  ;;  %v6030_v47 = vld [vmem:[%s7837_s9 + $0x188] sm:$0xff]  }
 0x325   : > { %v2202_v62 = vpop.f32.mrb[55].mxu1  ;;  %v2428_v11 = vpop.f32.mrb[71].mxu0  ;;  %v1764_v45 = vadd.f32 %v1756_v60, %v1748_v39  ;;  %v7304_v60 = vld [vmem:[%s7837_s9 + $0x210] sm:$0xff]  }
 0x326   : > { %v2203_v3 = vadd.f32 %v2202_v62, %v7153_v14  ;;  %v2541_v53 = vrot.slane %v2428_v11, 2  ;;  %v7265_v48 = vpack.c.bf16 %v1766_v63, %v1765_v16  ;;  %v6032_v62 = vld [vmem:[%s7837_s9 + $0x198] sm:$0xff]  }
 0x327   : > { %v7267_v2 = vpack.c.bf16 %v1764_v45, %v1763_v30 }
 0x328   : > { %v2595_v58 = vsel %vm2568_vm2, %v2540_v5, %v2541_v53  ;;  %v2594_v13 = vsel %vm2568_vm2, %v2541_v53, %v2542_v23 }
 0x329   : > { %v7276_v46 = vadd.f32 %v2595_v58, %v2200_v1  ;;  %v7278_v14 = vadd.f32 %v2594_v13, %v2203_v3  ;;  %v5565_v39 = vpop.f32.mrb[56].mxu1  ;;  %v7319_v3 = vld [vmem:[%s7837_s9 + $0x218] sm:$0xff]  }
 0x32a   : > { %v5613_v50 = vpop.f32.mrb[72].mxu0  ;;  %v2215_v19 = vpop.f32.mrb[57].mxu1  ;;  %5748 = vmatmul.mubr.bf16.vlgmr.msra.gmra.mrb[112].mxu1 %v6796_v17  ;;  %5796 = vmatmul.mubr.bf16.vlgmr.msra.gmra.mrb[128].mxu0 %v6818_v4  ;;  %v6031_v17 = vld [vmem:[%s7837_s9 + $0x190] sm:$0xff]   ;;  %v6033_v39 = vld [vmem:[%s7837_s9 + $0x1a0] sm:$0xff]  }
 0x32b   : > { %v2441_v52 = vpop.f32.mrb[73].mxu0  ;;  %v2216_v29 = vadd.f32 %v2215_v19, %v7157_v32  ;;  %v5566_v28 = vpop.f32.mrb[58].mxu1  ;;  %5828 = vmatpush3.bf16.msra.mxu1 %v7121_v15  ;;  %5751 = vmatprep.mubr.bf16.mxu1 %v6821_v12  ;;  %v2546_v32 = vrot.slane %v5613_v50, 2 }
 0x32c   : > { %v5614_v37 = vpop.f32.mrb[74].mxu0  ;;  %v2218_v7 = vpop.f32.mrb[59].mxu1  ;;  %5799 = vmatprep.mubr.bf16.mxu0 %v6845_v9  ;;  %5829 = vmatprep.subr.bf16.mxu1 %v6030_v47  ;;  %v2544_v22 = vrot.slane %v2441_v52, 2 }
 0x32d   : > { %v2444_v35 = vpop.f32.mrb[75].mxu0  ;;  %v2219_v16 = vadd.f32 %v2218_v7, %v7161_v49  ;;  %5876 = vmatpush3.bf16.msra.mxu0 %v7133_v59 }
 0x32e   : > { %v2545_v1 = vrot.slane %v2444_v35, 2  ;;  %5877 = vmatprep.subr.bf16.mxu0 %v7285_v0 }
 0x32f   : > { %5830 = vmatpush3.bf16.msra.mxu1 %v6030_v47 }
 0x330   : > { %v2591_v15 = vsel %vm2568_vm2, %v2544_v22, %v2545_v1  ;;  %v2590_v25 = vsel %vm2568_vm2, %v2545_v1, %v2546_v32  ;;  %5831 = vmatprep.subr.bf16.mxu1 %v6031_v17  ;;  %v7353_v32 = vld [vmem:[%s7837_s9 + $0x228] sm:$0xff]  }
 0x331   : > { %v7306_v49 = vadd.f32 %v2591_v15, %v2216_v29  ;;  %v7308_v30 = vadd.f32 %v2590_v25, %v2219_v16  ;;  %v5569_v8 = vpop.f32.mrb[60].mxu1  ;;  %5878 = vmatpush3.bf16.msra.mxu0 %v7285_v0 }
 0x332   : > { %v5617_v63 = vpop.f32.mrb[76].mxu0  ;;  %v2231_v11 = vpop.f32.mrb[61].mxu1  ;;  %5752 = vmatmul.mubr.bf16.gmra.mrb[116].mxu1 %v6818_v4  ;;  %5800 = vmatmul.mubr.bf16.gmra.mrb[132].mxu0 %v6841_v20 }
 0x333   : > { %v2457_v45 = vpop.f32.mrb[77].mxu0  ;;  %v2232_v23 = vadd.f32 %v2231_v11, %v7165_v43  ;;  %v5570_v5 = vpop.f32.mrb[62].mxu1  ;;  %5755 = vmatprep.mubr.bf16.mxu1 %v6845_v9  ;;  %5803 = vmatprep.mubr.bf16.mxu0 %v6881_v24  ;;  %v2550_v43 = vrot.slane %v5617_v63, 2  ;;  %v6039_v11 = vld [vmem:[%s7837_s9 + $0x1b0] sm:$0xff]  }
 0x334   : > { %v5618_v53 = vpop.f32.mrb[78].mxu0  ;;  %v2234_v58 = vpop.f32.mrb[63].mxu1  ;;  %5832 = vmatpush3.bf16.msra.mxu1 %v6031_v17  ;;  %5879 = vmatprep.subr.bf16.mxu0 %v7304_v60  ;;  %v2548_v50 = vrot.slane %v2457_v45, 2  ;;  %v6036_v17 = vld [vmem:[%s7837_s9 + $0x1a8] sm:$0xff]  }
 0x335   : > { %v2460_v13 = vpop.f32.mrb[79].mxu0  ;;  %v2235_v47 = vadd.f32 %v2234_v58, %v7169_v51  ;;  %5833 = vmatprep.subr.bf16.mxu1 %v6032_v62  ;;  %5880 = vmatpush3.bf16.msra.mxu0 %v7304_v60  ;;  %v7338_v51 = vld [vmem:[%s7837_s9 + $0x220] sm:$0xff]  }
 0x336   : > { %v2549_v19 = vrot.slane %v2460_v13, 2  ;;  %5881 = vmatprep.subr.bf16.mxu0 %v7319_v3 }
 0x338   : > { %v2587_v52 = vsel %vm2568_vm2, %v2548_v50, %v2549_v19  ;;  %v2586_v29 = vsel %vm2568_vm2, %v2549_v19, %v2550_v43  ;;  %5834 = vmatpush3.bf16.msra.mxu1 %v6032_v62  ;;  %v7387_v19 = vld [vmem:[%s7837_s9 + $0x238] sm:$0xff]  }
 0x339   : > { %v7340_v28 = vadd.f32 %v2587_v52, %v2232_v23  ;;  %v7342_v37 = vadd.f32 %v2586_v29, %v2235_v47  ;;  %v5573_v7 = vpop.f32.mrb[64].mxu1  ;;  %5835 = vmatprep.subr.bf16.mxu1 %v6033_v39  ;;  %5882 = vmatpush3.bf16.msra.mxu0 %v7319_v3 }
 0x33a   : > { %v5621_v35 = vpop.f32.mrb[80].mxu0  ;;  %v2247_v16 = vpop.f32.mrb[65].mxu1  ;;  %5756 = vmatmul.mubr.bf16.gmra.mrb[120].mxu1 %v6841_v20  ;;  %5804 = vmatmul.mubr.bf16.gmra.mrb[136].mxu0 %v6876_v57 }
 0x33b   : > { %v2473_v22 = vpop.f32.mrb[81].mxu0  ;;  %v2248_v1 = vadd.f32 %v2247_v16, %v7176_v31  ;;  %v5574_v15 = vpop.f32.mrb[66].mxu1  ;;  %5759 = vmatprep.mubr.bf16.mxu1 %v6881_v24  ;;  %5807 = vmatprep.mubr.bf16.mxu0 %v6919_v34  ;;  %v2554_v31 = vrot.slane %v5621_v35, 2 }
 0x33c   : > { %v5622_v25 = vpop.f32.mrb[82].mxu0  ;;  %v2250_v8 = vpop.f32.mrb[67].mxu1  ;;  %5836 = vmatpush3.bf16.msra.mxu1 %v6033_v39  ;;  %5883 = vmatprep.subr.bf16.mxu0 %v7338_v51  ;;  %v2552_v45 = vrot.slane %v2473_v22, 2  ;;  %v6042_v39 = vld [vmem:[%s7837_s9 + $0x1b8] sm:$0xff]  }
 0x33d   : > { %v2476_v62 = vpop.f32.mrb[83].mxu0  ;;  %v2251_v63 = vadd.f32 %v2250_v8, %v7180_v42  ;;  %5837 = vmatprep.subr.bf16.mxu1 %v6036_v17  ;;  %5884 = vmatpush3.bf16.msra.mxu0 %v7338_v51  ;;  %v7372_v42 = vld [vmem:[%s7837_s9 + $0x230] sm:$0xff]  }
 0x33e   : > { %v2553_v23 = vrot.slane %v2476_v62, 2  ;;  %5885 = vmatprep.subr.bf16.mxu0 %v7353_v32 }
 0x340   : > { %v2583_v5 = vsel %vm2568_vm2, %v2552_v45, %v2553_v23  ;;  %v2582_v53 = vsel %vm2568_vm2, %v2553_v23, %v2554_v31  ;;  %5838 = vmatpush3.bf16.msra.mxu1 %v6036_v17 }
 0x341   : > { %v7374_v58 = vadd.f32 %v2583_v5, %v2248_v1  ;;  %v7376_v13 = vadd.f32 %v2582_v53, %v2251_v63  ;;  %v5577_v47 = vpop.f32.mrb[68].mxu1  ;;  %5839 = vmatprep.subr.bf16.mxu1 %v6039_v11  ;;  %5886 = vmatpush3.bf16.msra.mxu0 %v7353_v32 }
 0x342   : > { %v5625_v43 = vpop.f32.mrb[84].mxu0  ;;  %v2263_v50 = vpop.f32.mrb[69].mxu1  ;;  %5760 = vmatmul.mubr.bf16.gmra.mrb[124].mxu1 %v6876_v57  ;;  %5808 = vmatmul.mubr.bf16.gmra.mrb[140].mxu0 %v6913_v36 }
 0x343   : > { %v2489_v52 = vpop.f32.mrb[85].mxu0  ;;  %v2264_v29 = vadd.f32 %v2263_v50, %v7184_v40  ;;  %v5578_v7 = vpop.f32.mrb[70].mxu1  ;;  %5763 = vmatprep.mubr.bf16.mxu1 %v6919_v34  ;;  %5811 = vmatprep.mubr.bf16.mxu0 %v6952_v21  ;;  %v2558_v1 = vrot.slane %v5625_v43, 2 }
 0x344   : > { %v5626_v17 = vpop.f32.mrb[86].mxu0  ;;  %v2266_v35 = vpop.f32.mrb[71].mxu1  ;;  %5840 = vmatpush3.bf16.msra.mxu1 %v6039_v11  ;;  %5887 = vmatprep.subr.bf16.mxu0 %v7372_v42  ;;  %v2556_v15 = vrot.slane %v2489_v52, 2 }
 0x345   : > { %v2492_v16 = vpop.f32.mrb[87].mxu0  ;;  %v2267_v22 = vadd.f32 %v2266_v35, %v7188_v26  ;;  %5841 = vmatprep.subr.bf16.mxu1 %v6042_v39  ;;  %5888 = vmatpush3.bf16.msra.mxu0 %v7372_v42 }
 0x346   : > { %v2557_v25 = vrot.slane %v2492_v16, 2  ;;  %5889 = vmatprep.subr.bf16.mxu0 %v7387_v19 }
 0x348   : > { %v2579_v40 = vsel %vm2568_vm2, %v2556_v15, %v2557_v25  ;;  %v2578_v8 = vsel %vm2568_vm2, %v2557_v25, %v2558_v1  ;;  %5842 = vmatpush3.bf16.msra.mxu1 %v6042_v39 }
 0x349   : > { %v7400_v62 = vadd.f32 %v2579_v40, %v2264_v29  ;;  %v7402_v63 = vadd.f32 %v2578_v8, %v2267_v22  ;;  %v5581_v26 = vpop.f32.mrb[72].mxu1  ;;  %5890 = vmatpush3.bf16.msra.mxu0 %v7387_v19  ;;  %5923 = vmatprep.subr.bf16.mxu1 %v7133_v59 }
 0x34a   : > { %v5629_v11 = vpop.f32.mrb[88].mxu0  ;;  %v2279_v31 = vpop.f32.mrb[73].mxu1  ;;  %5764 = vmatmul.mubr.bf16.gmra.mrb[128].mxu1 %v6913_v36  ;;  %5812 = vmatmul.mubr.bf16.gmra.mrb[144].mxu0 %v6941_v55 }
 0x34b   : > { %v2505_v45 = vpop.f32.mrb[89].mxu0  ;;  %v2280_v23 = vadd.f32 %v2279_v31, %v7192_v61  ;;  %v5582_v5 = vpop.f32.mrb[74].mxu1  ;;  %5767 = vmatprep.mubr.bf16.mxu1 %v6952_v21  ;;  %5815 = vmatprep.mubr.bf16.mxu0 %v6964_v33  ;;  %v2562_v50 = vrot.slane %v5629_v11, 2 }
 0x34c   : > { %v5630_v53 = vpop.f32.mrb[90].mxu0  ;;  %v2282_v47 = vpop.f32.mrb[75].mxu1  ;;  %v2560_v52 = vrot.slane %v2505_v45, 2 }
 0x34d   : > { %v2508_v39 = vpop.f32.mrb[91].mxu0  ;;  %v2283_v43 = vadd.f32 %v2282_v47, %v7196_v38 }
 0x34e   : > { %v2561_v29 = vrot.slane %v2508_v39, 2 }
 0x350   : > { %v2575_v7 = vsel %vm2568_vm2, %v2560_v52, %v2561_v29  ;;  %v2574_v17 = vsel %vm2568_vm2, %v2561_v29, %v2562_v50 }
 0x351   : > { %v7416_v61 = vadd.f32 %v2575_v7, %v2280_v23  ;;  %v7418_v35 = vadd.f32 %v2574_v17, %v2283_v43  ;;  %v5585_v16 = vpop.f32.mrb[76].mxu1 }
 0x352   : > { %v5633_v22 = vpop.f32.mrb[92].mxu0  ;;  %v2295_v1 = vpop.f32.mrb[77].mxu1  ;;  %5768 = vmatmul.mubr.bf16.gmra.mrb[132].mxu1 %v6941_v55  ;;  %5816 = vmatmul.mubr.bf16.gmra.mrb[148].mxu0 %v6962_v10 }
 0x353   : > { %v2521_v38 = vpop.f32.mrb[93].mxu0  ;;  %v2296_v15 = vadd.f32 %v2295_v1, %v7222_v54  ;;  %v5586_v25 = vpop.f32.mrb[78].mxu1  ;;  %5771 = vmatprep.mubr.bf16.mxu1 %v6964_v33  ;;  %5819 = vmatprep.mubr.bf16.mxu0 %v7243_v44  ;;  %v2566_v31 = vrot.slane %v5633_v22, 2 }
 0x354   : > { %v5634_v40 = vpop.f32.mrb[94].mxu0  ;;  %v2298_v8 = vpop.f32.mrb[79].mxu1  ;;  %v2564_v45 = vrot.slane %v2521_v38, 2 }
 0x355   : > { %v2524_v26 = vpop.f32.mrb[95].mxu0  ;;  %v2299_v11 = vadd.f32 %v2298_v8, %v7226_v56 }
 0x356   : > { %v2565_v23 = vrot.slane %v2524_v26, 2 }
 0x358   : > { %v2571_v5 = vsel %vm2568_vm2, %v2564_v45, %v2565_v23  ;;  %v2570_v53 = vsel %vm2568_vm2, %v2565_v23, %v2566_v31 }
 0x359   : > { %v7430_v54 = vadd.f32 %v2571_v5, %v2296_v15  ;;  %v7432_v47 = vadd.f32 %v2570_v53, %v2299_v11  ;;  %v5653_v39 = vpop.f32.mrb[80].mxu1 }
 0x35a   : > { %v5701_v43 = vpop.f32.mrb[96].mxu0  ;;  %v2798_v50 = vpop.f32.mrb[81].mxu1  ;;  %5772 = vmatmul.mubr.bf16.gmra.mrb[136].mxu1 %v6962_v10  ;;  %5820 = vmatmul.mubr.bf16.gmra.mrb[152].mxu0 %v7236_v27  ;;  %v2927_v17 = vrot.slane %v5653_v39, 1 }
 0x35b   : > { %v3071_v56 = vpop.f32.mrb[97].mxu0  ;;  %v5654_v52 = vpop.f32.mrb[82].mxu1  ;;  %5775 = vmatprep.mubr.bf16.mxu1 %v7243_v44  ;;  %5823 = vmatprep.mubr.bf16.mxu0 %v7267_v2  ;;  %v2925_v16 = vrot.slane %v2798_v50, 1 }
 0x35c   : > { %v5702_v29 = vpop.f32.mrb[98].mxu0  ;;  %v2801_v7 = vpop.f32.mrb[83].mxu1 }
 0x35d   : > { %v3074_v22 = vpop.f32.mrb[99].mxu0  ;;  %v2926_v1 = vrot.slane %v2801_v7, 1 }
 0x35f   : > { %v2986_v38 = vsel %vm2068_vm1, %v2926_v1, %v2927_v17  ;;  %v2987_v15 = vsel %vm2068_vm1, %v2925_v16, %v2926_v1 }
 0x360   : > { %v7442_v25 = vadd.f32 %v3071_v56, %v2987_v15  ;;  %v7444_v40 = vadd.f32 %v3074_v22, %v2986_v38 }
 0x361   : > { %v5657_v8 = vpop.f32.mrb[84].mxu1 }
 0x362   : > { %v5705_v26 = vpop.f32.mrb[100].mxu0  ;;  %v2814_v11 = vpop.f32.mrb[85].mxu1  ;;  %5776 = vmatmul.mubr.bf16.gmra.mrb[140].mxu1 %v7236_v27  ;;  %5824 = vmatmul.mubr.bf16.gmra.mrb[156].mxu0 %v7265_v48  ;;  %v2931_v53 = vrot.slane %v5657_v8, 1 }
 0x363   : > { %v3087_v31 = vpop.f32.mrb[101].mxu0  ;;  %v5658_v45 = vpop.f32.mrb[86].mxu1  ;;  %5843 = vmatprep.mubr.bf16.mxu1 %v6821_v12  ;;  %5891 = vmatprep.mubr.bf16.mxu0 %v6821_v12  ;;  %v2929_v39 = vrot.slane %v2814_v11, 1 }
 0x364   : > { %v5706_v23 = vpop.f32.mrb[102].mxu0  ;;  %v2817_v5 = vpop.f32.mrb[87].mxu1 }
 0x365   : > { %v3090_v43 = vpop.f32.mrb[103].mxu0  ;;  %v2930_v50 = vrot.slane %v2817_v5, 1 }
 0x367   : > { %v2982_v56 = vsel %vm2068_vm1, %v2930_v50, %v2931_v53  ;;  %v2983_v52 = vsel %vm2068_vm1, %v2929_v39, %v2930_v50 }
 0x368   : > { %v7454_v29 = vadd.f32 %v3087_v31, %v2983_v52  ;;  %v7456_v7 = vadd.f32 %v3090_v43, %v2982_v56 }
 0x369   : > { %v5661_v17 = vpop.f32.mrb[88].mxu1 }
 0x36a   : > { %v5709_v16 = vpop.f32.mrb[104].mxu0  ;;  %v2830_v22 = vpop.f32.mrb[89].mxu1  ;;  %5844 = vmatmul.mubr.bf16.vlgmr.msra.gmra.mrb[144].mxu1 %v6818_v4  ;;  %5892 = vmatmul.mubr.bf16.vlgmr.msra.gmra.mrb[160].mxu0 %v6818_v4  ;;  %v2935_v8 = vrot.slane %v5661_v17, 1 }
 0x36b   : > { %v3103_v12 = vpop.f32.mrb[105].mxu0  ;;  %v5662_v1 = vpop.f32.mrb[90].mxu1  ;;  %5931 = vmatpush3.bf16.msra.mxu1 %v7133_v59  ;;  %5847 = vmatprep.mubr.bf16.mxu1 %v6845_v9  ;;  %v2933_v26 = vrot.slane %v2830_v22, 1 }
 0x36c   : > { %v5710_v38 = vpop.f32.mrb[106].mxu0  ;;  %v2833_v15 = vpop.f32.mrb[91].mxu1  ;;  %5895 = vmatprep.mubr.bf16.mxu0 %v6845_v9  ;;  %5924 = vmatprep.subr.bf16.mxu1 %v7285_v0 }
 0x36d   : > { %v3106_v11 = vpop.f32.mrb[107].mxu0  ;;  %v2934_v31 = vrot.slane %v2833_v15, 1 }
 0x36f   : > { %v2978_v45 = vsel %vm2068_vm1, %v2934_v31, %v2935_v8  ;;  %v2979_v4 = vsel %vm2068_vm1, %v2933_v26, %v2934_v31  ;;  %5932 = vmatpush3.bf16.msra.mxu1 %v7285_v0 }
 0x370   : > { %v7469_v59 = vadd.f32 %v3103_v12, %v2979_v4  ;;  %v7471_v23 = vadd.f32 %v3106_v11, %v2978_v45  ;;  %5925 = vmatprep.subr.bf16.mxu1 %v7304_v60 }
 0x371   : > { %v5665_v9 = vpop.f32.mrb[92].mxu1 }
 0x372   : > { %v5713_v5 = vpop.f32.mrb[108].mxu0  ;;  %v2846_v53 = vpop.f32.mrb[93].mxu1  ;;  %5848 = vmatmul.mubr.bf16.gmra.mrb[148].mxu1 %v6841_v20  ;;  %5896 = vmatmul.mubr.bf16.gmra.mrb[164].mxu0 %v6841_v20  ;;  %v2939_v56 = vrot.slane %v5665_v9, 1 }
 0x373   : > { %v3119_v39 = vpop.f32.mrb[109].mxu0  ;;  %v5666_v43 = vpop.f32.mrb[94].mxu1  ;;  %5851 = vmatprep.mubr.bf16.mxu1 %v6881_v24  ;;  %5899 = vmatprep.mubr.bf16.mxu0 %v6881_v24  ;;  %v2937_v52 = vrot.slane %v2846_v53, 1 }
 0x374   : > { %v5714_v0 = vpop.f32.mrb[110].mxu0  ;;  %v2849_v50 = vpop.f32.mrb[95].mxu1  ;;  %5933 = vmatpush3.bf16.msra.mxu1 %v7304_v60 }
 0x375   : > { %v3122_v17 = vpop.f32.mrb[111].mxu0  ;;  %v2938_v16 = vrot.slane %v2849_v50, 1  ;;  %5926 = vmatprep.subr.bf16.mxu1 %v7319_v3 }
 0x377   : > { %v2974_v22 = vsel %vm2068_vm1, %v2938_v16, %v2939_v56  ;;  %v2975_v20 = vsel %vm2068_vm1, %v2937_v52, %v2938_v16 }
 0x378   : > { %v7484_v12 = vadd.f32 %v3119_v39, %v2975_v20  ;;  %v7486_v1 = vadd.f32 %v3122_v17, %v2974_v22  ;;  %5934 = vmatpush3.bf16.msra.mxu1 %v7319_v3 }
 0x379   : > { %v5669_v24 = vpop.f32.mrb[96].mxu1  ;;  %5927 = vmatprep.subr.bf16.mxu1 %v7338_v51 }
 0x37a   : > { %v5717_v60 = vpop.f32.mrb[112].mxu0  ;;  %v2862_v38 = vpop.f32.mrb[97].mxu1  ;;  %5852 = vmatmul.mubr.bf16.gmra.mrb[152].mxu1 %v6876_v57  ;;  %5900 = vmatmul.mubr.bf16.gmra.mrb[168].mxu0 %v6876_v57  ;;  %v2943_v3 = vrot.slane %v5669_v24, 1 }
 0x37b   : > { %v3135_v15 = vpop.f32.mrb[113].mxu0  ;;  %v5670_v8 = vpop.f32.mrb[98].mxu1  ;;  %5855 = vmatprep.mubr.bf16.mxu1 %v6919_v34  ;;  %5903 = vmatprep.mubr.bf16.mxu0 %v6919_v34  ;;  %v2941_v31 = vrot.slane %v2862_v38, 1 }
 0x37c   : > { %v5718_v26 = vpop.f32.mrb[114].mxu0  ;;  %v2865_v11 = vpop.f32.mrb[99].mxu1  ;;  %5935 = vmatpush3.bf16.msra.mxu1 %v7338_v51 }
 0x37d   : > { %v3138_v45 = vpop.f32.mrb[115].mxu0  ;;  %v2942_v4 = vrot.slane %v2865_v11, 1  ;;  %5928 = vmatprep.subr.bf16.mxu1 %v7353_v32 }
 0x37f   : > { %v2970_v9 = vsel %vm2068_vm1, %v2942_v4, %v2943_v3  ;;  %v2971_v57 = vsel %vm2068_vm1, %v2941_v31, %v2942_v4 }
 0x380   : > { %v7500_v5 = vadd.f32 %v3135_v15, %v2971_v57  ;;  %v7502_v53 = vadd.f32 %v3138_v45, %v2970_v9  ;;  %5936 = vmatpush3.bf16.msra.mxu1 %v7353_v32 }
 0x381   : > { %v5673_v34 = vpop.f32.mrb[100].mxu1  ;;  %5929 = vmatprep.subr.bf16.mxu1 %v7372_v42 }
 0x382   : > { %v5721_v51 = vpop.f32.mrb[116].mxu0  ;;  %v2878_v39 = vpop.f32.mrb[101].mxu1  ;;  %5856 = vmatmul.mubr.bf16.gmra.mrb[156].mxu1 %v6913_v36  ;;  %5904 = vmatmul.mubr.bf16.gmra.mrb[172].mxu0 %v6913_v36  ;;  %v2947_v32 = vrot.slane %v5673_v34, 1 }
 0x383   : > { %v3151_v43 = vpop.f32.mrb[117].mxu0  ;;  %v5674_v0 = vpop.f32.mrb[102].mxu1  ;;  %5859 = vmatprep.mubr.bf16.mxu1 %v6952_v21  ;;  %5907 = vmatprep.mubr.bf16.mxu0 %v6952_v21  ;;  %v2945_v52 = vrot.slane %v2878_v39, 1 }
 0x384   : > { %v5722_v50 = vpop.f32.mrb[118].mxu0  ;;  %v2881_v56 = vpop.f32.mrb[103].mxu1  ;;  %5937 = vmatpush3.bf16.msra.mxu1 %v7372_v42 }
 0x385   : > { %v3154_v17 = vpop.f32.mrb[119].mxu0  ;;  %v2946_v16 = vrot.slane %v2881_v56, 1  ;;  %5930 = vmatprep.subr.bf16.mxu1 %v7387_v19 }
 0x387   : > { %v2966_v22 = vsel %vm2068_vm1, %v2946_v16, %v2947_v32  ;;  %v2967_v36 = vsel %vm2068_vm1, %v2945_v52, %v2946_v16 }
 0x388   : > { %v7516_v20 = vadd.f32 %v3151_v43, %v2967_v36  ;;  %v7518_v24 = vadd.f32 %v3154_v17, %v2966_v22  ;;  %5938 = vmatpush3.bf16.msra.mxu1 %v7387_v19 }
 0x389   : > { %v5677_v21 = vpop.f32.mrb[104].mxu1 }
 0x38a   : > { %v5725_v42 = vpop.f32.mrb[120].mxu0  ;;  %v2894_v60 = vpop.f32.mrb[105].mxu1  ;;  %5860 = vmatmul.mubr.bf16.gmra.mrb[160].mxu1 %v6941_v55  ;;  %5908 = vmatmul.mubr.bf16.gmra.mrb[176].mxu0 %v6941_v55  ;;  %v2951_v11 = vrot.slane %v5677_v21, 1 }
 0x38b   : > { %v3167_v38 = vpop.f32.mrb[121].mxu0  ;;  %v5678_v15 = vpop.f32.mrb[106].mxu1  ;;  %5863 = vmatprep.mubr.bf16.mxu1 %v6964_v33  ;;  %5911 = vmatprep.mubr.bf16.mxu0 %v6964_v33  ;;  %v2949_v3 = vrot.slane %v2894_v60, 1 }
 0x38c   : > { %v5726_v8 = vpop.f32.mrb[122].mxu0  ;;  %v2897_v26 = vpop.f32.mrb[107].mxu1 }
 0x38d   : > { %v3170_v31 = vpop.f32.mrb[123].mxu0  ;;  %v2950_v45 = vrot.slane %v2897_v26, 1 }
 0x38f   : > { %v2962_v19 = vsel %vm2068_vm1, %v2950_v45, %v2951_v11  ;;  %v2963_v4 = vsel %vm2068_vm1, %v2949_v3, %v2950_v45 }
 0x390   : > { %v7529_v9 = vadd.f32 %v3167_v38, %v2963_v4  ;;  %v7531_v55 = vadd.f32 %v3170_v31, %v2962_v19 }
 0x392   : > { %5864 = vmatmul.mubr.bf16.gmra.mrb[164].mxu1 %v6962_v10  ;;  %5912 = vmatmul.mubr.bf16.gmra.mrb[180].mxu0 %v6962_v10 }
 0x393   : > { %5867 = vmatprep.mubr.bf16.mxu1 %v7243_v44 }
 0x39a   : > { %5868 = vmatmul.mubr.bf16.gmra.mrb[168].mxu1 %v7236_v27 }
 0x39b   : > { %5871 = vmatprep.mubr.bf16.mxu1 %v7267_v2 }
 0x3a2   : > { %5872 = vmatmul.mubr.bf16.gmra.mrb[172].mxu1 %v7265_v48 }
 0x3a3   : > { %5915 = vmatprep.mubr.bf16.mxu1 %v7243_v44 }
 0x3aa   : > { %5916 = vmatmul.mubr.bf16.vlgmr.msra.gmra.mrb[176].mxu1 %v7236_v27 }
 0x3ab   : > { %5919 = vmatprep.mubr.bf16.mxu1 %v7267_v2 }
 0x3b2   : > { %5920 = vmatmul.mubr.bf16.gmra.mrb[180].mxu1 %v7265_v48 }
 0x3f5   : > { %v5681_v33 = vpop.f32.mrb[108].mxu1  ;;  %v5729_v57 = vpop.f32.mrb[124].mxu0 }
 0x3f6   : > { %v2910_v34 = vpop.f32.mrb[109].mxu1  ;;  %v3183_v10 = vpop.f32.mrb[125].mxu0  ;;  %v2955_v50 = vrot.slane %v5681_v33, 1 }
 0x3f7   : > { %v5682_v51 = vpop.f32.mrb[110].mxu1  ;;  %v5730_v39 = vpop.f32.mrb[126].mxu0  ;;  %v2953_v56 = vrot.slane %v2910_v34, 1 }
 0x3f8   : > { %v2913_v43 = vpop.f32.mrb[111].mxu1  ;;  %v3186_v0 = vpop.f32.mrb[127].mxu0 }
 0x3f9   : > { %v2954_v32 = vrot.slane %v2913_v43, 1 }
 0x3fb   : > { %v2959_v44 = vsel %vm2068_vm1, %v2953_v56, %v2954_v32  ;;  %v2958_v27 = vsel %vm2068_vm1, %v2954_v32, %v2955_v50 }
 0x3fc   : > { %v7547_v2 = vadd.f32 %v3183_v10, %v2959_v44  ;;  %v7549_v48 = vadd.f32 %v3186_v0, %v2958_v27 }
 0x3fd   : > { %v5749_v52 = vpop.f32.mrb[112].mxu1  ;;  %v5797_v17 = vpop.f32.mrb[128].mxu0 }
 0x3fe   : > { %v3297_v16 = vpop.f32.mrb[113].mxu1  ;;  %v3749_v22 = vpop.f32.mrb[129].mxu0  ;;  %v3426_v42 = vrot.slane %v5749_v52, 2  ;;  %v3878_v60 = vrot.slane %v5797_v17, 1 }
 0x3ff   : > { %v5750_v36 = vpop.f32.mrb[114].mxu1  ;;  %v5798_v21 = vpop.f32.mrb[130].mxu0  ;;  %v3424_v8 = vrot.slane %v3297_v16, 2  ;;  %v3876_v26 = vrot.slane %v3749_v22, 1 }
 0x400   : > { %v3300_v38 = vpop.f32.mrb[115].mxu1  ;;  %v3752_v15 = vpop.f32.mrb[131].mxu0 }
 0x401   : > { %v3425_v11 = vrot.slane %v3300_v38, 2  ;;  %v3877_v3 = vrot.slane %v3752_v15, 1 }
 0x403   : > { %v3485_v31 = vsel %vm2568_vm2, %v3425_v11, %v3426_v42  ;;  %v3486_v45 = vsel %vm2568_vm2, %v3424_v8, %v3425_v11  ;;  %v7557_v19 = vsel %vm2068_vm1, %v3876_v26, %v3877_v3  ;;  %v7561_v4 = vsel %vm2068_vm1, %v3877_v3, %v3878_v60 }
 0x404   : > { %v3488_v33 = vadd.f32 %v3486_v45, %v7442_v25  ;;  %v3489_v57 = vadd.f32 %v3485_v31, %v7444_v40 }
 0x405   : > { %v5753_v34 = vpop.f32.mrb[116].mxu1  ;;  %v5801_v10 = vpop.f32.mrb[132].mxu0 }
 0x406   : > { %v7566_v51 = vadd.f32 %v3488_v33, %v7253_v41  ;;  %v7569_v39 = vadd.f32 %v3489_v57, %v7255_v6  ;;  %v3313_v43 = vpop.f32.mrb[117].mxu1  ;;  %v3765_v0 = vpop.f32.mrb[133].mxu0  ;;  %v3430_v32 = vrot.slane %v5753_v34, 2  ;;  %v3882_v44 = vrot.slane %v5801_v10, 1 }
 0x407   : > { %v5754_v50 = vpop.f32.mrb[118].mxu1  ;;  %v5802_v56 = vpop.f32.mrb[134].mxu0  ;;  %v3428_v17 = vrot.slane %v3313_v43, 2  ;;  %v3880_v25 = vrot.slane %v3765_v0, 1 }
 0x408   : > { %v3316_v27 = vpop.f32.mrb[119].mxu1  ;;  %v3768_v52 = vpop.f32.mrb[135].mxu0 }
 0x409   : > { %v3429_v16 = vrot.slane %v3316_v27, 2  ;;  %v3881_v40 = vrot.slane %v3768_v52, 1 }
 0x40b   : > { %v3481_v22 = vsel %vm2568_vm2, %v3429_v16, %v3430_v32  ;;  %v3482_v41 = vsel %vm2568_vm2, %v3428_v17, %v3429_v16  ;;  %v7577_v6 = vsel %vm2068_vm1, %v3880_v25, %v3881_v40  ;;  %v7581_v36 = vsel %vm2068_vm1, %v3881_v40, %v3882_v44 }
 0x40c   : > { %v3492_v21 = vadd.f32 %v3482_v41, %v7454_v29  ;;  %v3493_v42 = vadd.f32 %v3481_v22, %v7456_v7 }
 0x40d   : > { %v5757_v60 = vpop.f32.mrb[120].mxu1  ;;  %v5805_v38 = vpop.f32.mrb[136].mxu0 }
 0x40e   : > { %v7586_v15 = vadd.f32 %v3492_v21, %v7276_v46  ;;  %v7589_v8 = vadd.f32 %v3493_v42, %v7278_v14  ;;  %v3329_v26 = vpop.f32.mrb[121].mxu1  ;;  %v3781_v11 = vpop.f32.mrb[137].mxu0  ;;  %v3434_v45 = vrot.slane %v5757_v60, 2  ;;  %v3886_v33 = vrot.slane %v5805_v38, 1 }
 0x40f   : > { %v5758_v3 = vpop.f32.mrb[122].mxu1  ;;  %v5806_v31 = vpop.f32.mrb[138].mxu0  ;;  %v3432_v10 = vrot.slane %v3329_v26, 2  ;;  %v3884_v29 = vrot.slane %v3781_v11, 1 }
 0x410   : > { %v3332_v57 = vpop.f32.mrb[123].mxu1  ;;  %v3784_v34 = vpop.f32.mrb[139].mxu0 }
 0x411   : > { %v3433_v43 = vrot.slane %v3332_v57, 2  ;;  %v3885_v7 = vrot.slane %v3784_v34, 1 }
 0x413   : > { %v3477_v0 = vsel %vm2568_vm2, %v3433_v43, %v3434_v45  ;;  %v3478_v46 = vsel %vm2568_vm2, %v3432_v10, %v3433_v43  ;;  %v7597_v14 = vsel %vm2068_vm1, %v3884_v29, %v3885_v7  ;;  %v7601_v50 = vsel %vm2068_vm1, %v3885_v7, %v3886_v33 }
 0x414   : > { %v3496_v56 = vadd.f32 %v3478_v46, %v7469_v59  ;;  %v3497_v32 = vadd.f32 %v3477_v0, %v7471_v23 }
 0x415   : > { %v5761_v44 = vpop.f32.mrb[124].mxu1  ;;  %v5809_v27 = vpop.f32.mrb[140].mxu0 }
 0x416   : > { %v7606_v52 = vadd.f32 %v3496_v56, %v7306_v49  ;;  %v7609_v17 = vadd.f32 %v3497_v32, %v7308_v30  ;;  %v3345_v25 = vpop.f32.mrb[125].mxu1  ;;  %v3797_v16 = vpop.f32.mrb[141].mxu0  ;;  %v3438_v41 = vrot.slane %v5761_v44, 2  ;;  %v3890_v21 = vrot.slane %v5809_v27, 1 }
 0x417   : > { %v5762_v40 = vpop.f32.mrb[126].mxu1  ;;  %v5810_v22 = vpop.f32.mrb[142].mxu0  ;;  %v3436_v38 = vrot.slane %v3345_v25, 2  ;;  %v3888_v59 = vrot.slane %v3797_v16, 1 }
 0x418   : > { %v3348_v42 = vpop.f32.mrb[127].mxu1  ;;  %v3800_v60 = vpop.f32.mrb[143].mxu0 }
 0x419   : > { %v3437_v26 = vrot.slane %v3348_v42, 2  ;;  %v3889_v23 = vrot.slane %v3800_v60, 1 }
 0x41b   : > { %v3473_v11 = vsel %vm2568_vm2, %v3437_v26, %v3438_v41  ;;  %v3474_v49 = vsel %vm2568_vm2, %v3436_v38, %v3437_v26  ;;  %v7617_v30 = vsel %vm2068_vm1, %v3888_v59, %v3889_v23  ;;  %v7621_v3 = vsel %vm2068_vm1, %v3889_v23, %v3890_v21 }
 0x41c   : > { %v3500_v31 = vadd.f32 %v3474_v49, %v7484_v12  ;;  %v3501_v45 = vadd.f32 %v3473_v11, %v7486_v1 }
 0x41d   : > { %v5765_v33 = vpop.f32.mrb[128].mxu1  ;;  %v5813_v57 = vpop.f32.mrb[144].mxu0 }
 0x41e   : > { %v7626_v34 = vadd.f32 %v3500_v31, %v7340_v28  ;;  %v7629_v10 = vadd.f32 %v3501_v45, %v7342_v37  ;;  %v3361_v29 = vpop.f32.mrb[129].mxu1  ;;  %v3813_v43 = vpop.f32.mrb[145].mxu0  ;;  %v3442_v46 = vrot.slane %v5765_v33, 2  ;;  %v3894_v56 = vrot.slane %v5813_v57, 1 }
 0x41f   : > { %v5766_v7 = vpop.f32.mrb[130].mxu1  ;;  %v5814_v0 = vpop.f32.mrb[146].mxu0  ;;  %v3440_v27 = vrot.slane %v3361_v29, 2  ;;  %v3892_v12 = vrot.slane %v3813_v43, 1 }
 0x420   : > { %v3364_v32 = vpop.f32.mrb[131].mxu1  ;;  %v3816_v44 = vpop.f32.mrb[147].mxu0 }
 0x421   : > { %v3441_v25 = vrot.slane %v3364_v32, 2  ;;  %v3893_v1 = vrot.slane %v3816_v44, 1 }
 0x423   : > { %v3469_v16 = vsel %vm2568_vm2, %v3441_v25, %v3442_v46  ;;  %v3470_v28 = vsel %vm2568_vm2, %v3440_v27, %v3441_v25  ;;  %v7637_v37 = vsel %vm2068_vm1, %v3892_v12, %v3893_v1  ;;  %v7641_v40 = vsel %vm2068_vm1, %v3893_v1, %v3894_v56 }
 0x424   : > { %v3504_v22 = vadd.f32 %v3470_v28, %v7500_v5  ;;  %v3505_v41 = vadd.f32 %v3469_v16, %v7502_v53 }
 0x425   : > { %v5769_v21 = vpop.f32.mrb[132].mxu1  ;;  %v5817_v42 = vpop.f32.mrb[148].mxu0 }
 0x426   : > { %v7646_v60 = vadd.f32 %v3504_v22, %v7374_v58  ;;  %v7649_v38 = vadd.f32 %v3505_v41, %v7376_v13  ;;  %v3377_v59 = vpop.f32.mrb[133].mxu1  ;;  %v3829_v26 = vpop.f32.mrb[149].mxu0  ;;  %v3446_v49 = vrot.slane %v5769_v21, 2  ;;  %v3898_v31 = vrot.slane %v5817_v42, 1 }
 0x427   : > { %v5770_v23 = vpop.f32.mrb[134].mxu1  ;;  %v5818_v11 = vpop.f32.mrb[150].mxu0  ;;  %v3444_v57 = vrot.slane %v3377_v59, 2  ;;  %v3896_v5 = vrot.slane %v3829_v26, 1 }
 0x428   : > { %v3380_v45 = vpop.f32.mrb[135].mxu1  ;;  %v3832_v33 = vpop.f32.mrb[151].mxu0 }
 0x429   : > { %v3445_v29 = vrot.slane %v3380_v45, 2  ;;  %v3897_v53 = vrot.slane %v3832_v33, 1 }
 0x42b   : > { %v3465_v43 = vsel %vm2568_vm2, %v3445_v29, %v3446_v49  ;;  %v3466_v58 = vsel %vm2568_vm2, %v3444_v57, %v3445_v29  ;;  %v7657_v13 = vsel %vm2068_vm1, %v3896_v5, %v3897_v53  ;;  %v7661_v7 = vsel %vm2068_vm1, %v3897_v53, %v3898_v31 }
 0x42c   : > { %v3508_v0 = vadd.f32 %v3466_v58, %v7516_v20  ;;  %v3509_v46 = vadd.f32 %v3465_v43, %v7518_v24 }
 0x42d   : > { %v5773_v56 = vpop.f32.mrb[136].mxu1  ;;  %v5821_v32 = vpop.f32.mrb[152].mxu0 }
 0x42e   : > { %v7666_v44 = vadd.f32 %v3508_v0, %v7400_v62  ;;  %v7669_v27 = vadd.f32 %v3509_v46, %v7402_v63  ;;  %v3393_v12 = vpop.f32.mrb[137].mxu1  ;;  %v3845_v25 = vpop.f32.mrb[153].mxu0  ;;  %v3450_v28 = vrot.slane %v5773_v56, 2  ;;  %v3902_v22 = vrot.slane %v5821_v32, 1 }
 0x42f   : > { %v5774_v1 = vpop.f32.mrb[138].mxu1  ;;  %v5822_v16 = vpop.f32.mrb[154].mxu0  ;;  %v3448_v42 = vrot.slane %v3393_v12, 2  ;;  %v3900_v20 = vrot.slane %v3845_v25, 1 }
 0x430   : > { %v3396_v41 = vpop.f32.mrb[139].mxu1  ;;  %v3848_v21 = vpop.f32.mrb[155].mxu0 }
 0x431   : > { %v3449_v59 = vrot.slane %v3396_v41, 2  ;;  %v3901_v24 = vrot.slane %v3848_v21, 1 }
 0x433   : > { %v3461_v26 = vsel %vm2568_vm2, %v3449_v59, %v3450_v28  ;;  %v3462_v62 = vsel %vm2568_vm2, %v3448_v42, %v3449_v59  ;;  %v7677_v63 = vsel %vm2068_vm1, %v3900_v20, %v3901_v24  ;;  %v7681_v23 = vsel %vm2068_vm1, %v3901_v24, %v3902_v22 }
 0x434   : > { %v3512_v11 = vadd.f32 %v3462_v62, %v7529_v9  ;;  %v3513_v49 = vadd.f32 %v3461_v26, %v7531_v55 }
 0x435   : > { %v5777_v31 = vpop.f32.mrb[140].mxu1  ;;  %v5825_v45 = vpop.f32.mrb[156].mxu0 }
 0x436   : > { %v7686_v33 = vadd.f32 %v3512_v11, %v7416_v61  ;;  %v7689_v57 = vadd.f32 %v3513_v49, %v7418_v35  ;;  %v3409_v5 = vpop.f32.mrb[141].mxu1  ;;  %v3861_v29 = vpop.f32.mrb[157].mxu0  ;;  %v3906_v43 = vrot.slane %v5825_v45, 1  ;;  %v3454_v32 = vrot.slane %v5777_v31, 2 }
 0x437   : > { %v5778_v53 = vpop.f32.mrb[142].mxu1  ;;  %v3904_v58 = vrot.slane %v3861_v29, 1  ;;  %v5826_v0 = vpop.f32.mrb[158].mxu0  ;;  %v3452_v9 = vrot.slane %v3409_v5, 2 }
 0x438   : > { %v3412_v46 = vpop.f32.mrb[143].mxu1  ;;  %v3864_v56 = vpop.f32.mrb[159].mxu0 }
 0x439   : > { %v3453_v55 = vrot.slane %v3412_v46, 2  ;;  %v3905_v12 = vrot.slane %v3864_v56, 1 }
 0x43b   : > { %v3457_v61 = vsel %vm2568_vm2, %v3453_v55, %v3454_v32  ;;  %v3458_v35 = vsel %vm2568_vm2, %v3452_v9, %v3453_v55  ;;  %v7697_v25 = vsel %vm2068_vm1, %v3904_v58, %v3905_v12  ;;  %v7701_v1 = vsel %vm2068_vm1, %v3905_v12, %v3906_v43 }
 0x43c   : > { %v3516_v16 = vadd.f32 %v3458_v35, %v7547_v2  ;;  %v3517_v28 = vadd.f32 %v3457_v61, %v7549_v48 }
 0x43d   : > { %v5845_v22 = vpop.f32.mrb[144].mxu1  ;;  %v5893_v41 = vpop.f32.mrb[160].mxu0 }
 0x43e   : > { %v7706_v21 = vadd.f32 %v3516_v16, %v7430_v54  ;;  %v7709_v42 = vadd.f32 %v3517_v28, %v7432_v47  ;;  %v4022_v20 = vpop.f32.mrb[145].mxu1  ;;  %v4248_v59 = vpop.f32.mrb[161].mxu0  ;;  %v4377_v49 = vrot.slane %v5893_v41, 2 }
 0x43f   : > { %v4023_v24 = vadd.f32 %v4022_v20, %v7557_v19  ;;  %v5846_v26 = vpop.f32.mrb[146].mxu1  ;;  %v5894_v62 = vpop.f32.mrb[162].mxu0  ;;  %v4375_v48 = vrot.slane %v4248_v59, 2  ;;  %v7722_v19 = vld [vmem:[%s7838_s10] ss:$0 sm:$0xff] }
 0x440   : > { %v4025_v11 = vpop.f32.mrb[147].mxu1  ;;  %v4251_v2 = vpop.f32.mrb[163].mxu0 }
 0x441   : > { %v4026_v31 = vadd.f32 %v4025_v11, %v7561_v4  ;;  %v4376_v45 = vrot.slane %v4251_v2, 2 }
 0x443   : > { %v4436_v54 = vsel %vm2568_vm2, %v4376_v45, %v4377_v49  ;;  %v4437_v47 = vsel %vm2568_vm2, %v4375_v48, %v4376_v45 }
 0x444   : > { %v4439_v5 = vadd.f32 %v4437_v47, %v4023_v24  ;;  %v4440_v29 = vadd.f32 %v4436_v54, %v4026_v31 }
 0x445   : > { %v5849_v53 = vpop.f32.mrb[148].mxu1  ;;  %v5897_v43 = vpop.f32.mrb[164].mxu0 }
 0x446   : > { %v4503_v4 = vadd.f32 %v4439_v5, %v7566_v51  ;;  %v4504_v58 = vadd.f32 %v4440_v29, %v7569_v39  ;;  %v4038_v0 = vpop.f32.mrb[149].mxu1  ;;  %v4264_v46 = vpop.f32.mrb[165].mxu0  ;;  %v4381_v51 = vrot.slane %v5897_v43, 2 }
 0x447   : > { %v4039_v56 = vadd.f32 %v4038_v0, %v7577_v6  ;;  %v5850_v32 = vpop.f32.mrb[150].mxu1  ;;  %v5898_v9 = vpop.f32.mrb[166].mxu0  ;;  %v4379_v39 = vrot.slane %v4264_v46, 2 }
 0x448   : > { %v4590_v55 = vadd.f32 %v7722_v19, %v4503_v4  ;;  %v4591_v12 = vadd.f32 %v7722_v19, %v4504_v58  ;;  %v4041_v61 = vpop.f32.mrb[151].mxu1  ;;  %v4267_v35 = vpop.f32.mrb[167].mxu0 }
 0x449   : > { %v4042_v16 = vadd.f32 %v4041_v61, %v7581_v36  ;;  %v4380_v6 = vrot.slane %v4267_v35, 2 }
 0x44a   : > { %v4606_v28 = vmax.f32 %v4590_v55, 0.0  ;;  %v4607_v22 = vmax.f32 %v4591_v12, 0.0 }
 0x44b   : > { %v4432_v41 = vsel %vm2568_vm2, %v4380_v6, %v4381_v51  ;;  %v4433_v20 = vsel %vm2568_vm2, %v4379_v39, %v4380_v6 }
 0x44c   : > { %4622 = vst [vmem:[%s7732_s23] sm:$0xff] %v4606_v28  ;;  %4623 = vst [vmem:[%s7732_s23 + $0x8] sm:$0xff] %v4607_v22  ;;  %v4443_v59 = vadd.f32 %v4433_v20, %v4039_v56  ;;  %v4444_v24 = vadd.f32 %v4432_v41, %v4042_v16 }
 0x44d   : > { %v5853_v26 = vpop.f32.mrb[152].mxu1  ;;  %v5901_v62 = vpop.f32.mrb[168].mxu0 }
 0x44e   : > { %v4507_v11 = vadd.f32 %v4443_v59, %v7586_v15  ;;  %v4508_v2 = vadd.f32 %v4444_v24, %v7589_v8  ;;  %v4054_v36 = vpop.f32.mrb[153].mxu1  ;;  %v4280_v49 = vpop.f32.mrb[169].mxu0  ;;  %v4385_v53 = vrot.slane %v5901_v62, 2 }
 0x44f   : > { %v4055_v48 = vadd.f32 %v4054_v36, %v7597_v14  ;;  %v5854_v31 = vpop.f32.mrb[154].mxu1  ;;  %v5902_v45 = vpop.f32.mrb[170].mxu0  ;;  %v4383_v43 = vrot.slane %v4280_v49, 2 }
 0x450   : > { %v4592_v54 = vadd.f32 %v7722_v19, %v4507_v11  ;;  %v4593_v47 = vadd.f32 %v7722_v19, %v4508_v2  ;;  %v4057_v5 = vpop.f32.mrb[155].mxu1  ;;  %v4283_v29 = vpop.f32.mrb[171].mxu0 }
 0x451   : > { %v4058_v15 = vadd.f32 %v4057_v5, %v7601_v50  ;;  %v4384_v4 = vrot.slane %v4283_v29, 2 }
 0x452   : > { %v4608_v8 = vmax.f32 %v4592_v54, 0.0  ;;  %v4609_v58 = vmax.f32 %v4593_v47, 0.0 }
 0x453   : > { %v4428_v0 = vsel %vm2568_vm2, %v4384_v4, %v4385_v53  ;;  %v4429_v14 = vsel %vm2568_vm2, %v4383_v43, %v4384_v4 }
 0x454   : > { %4624 = vst [vmem:[%s7732_s23 + $0x10] sm:$0xff] %v4608_v8  ;;  %4625 = vst [vmem:[%s7732_s23 + $0x18] sm:$0xff] %v4609_v58  ;;  %v4447_v46 = vadd.f32 %v4429_v14, %v4055_v48  ;;  %v4448_v56 = vadd.f32 %v4428_v0, %v4058_v15 }
 0x455   : > { %v5857_v32 = vpop.f32.mrb[156].mxu1  ;;  %v5905_v9 = vpop.f32.mrb[172].mxu0 }
 0x456   : > { %v4511_v55 = vadd.f32 %v4447_v46, %v7606_v52  ;;  %v4512_v12 = vadd.f32 %v4448_v56, %v7609_v17  ;;  %v4070_v50 = vpop.f32.mrb[157].mxu1  ;;  %v4296_v61 = vpop.f32.mrb[173].mxu0  ;;  %v4389_v41 = vrot.slane %v5905_v9, 2 }
 0x457   : > { %v4071_v35 = vadd.f32 %v4070_v50, %v7617_v30  ;;  %v5858_v51 = vpop.f32.mrb[158].mxu1  ;;  %v5906_v39 = vpop.f32.mrb[174].mxu0  ;;  %v4387_v20 = vrot.slane %v4296_v61, 2 }
 0x458   : > { %v4594_v16 = vadd.f32 %v7722_v19, %v4511_v55  ;;  %v4595_v6 = vadd.f32 %v7722_v19, %v4512_v12  ;;  %v4073_v28 = vpop.f32.mrb[159].mxu1  ;;  %v4299_v22 = vpop.f32.mrb[175].mxu0 }
 0x459   : > { %v4074_v52 = vadd.f32 %v4073_v28, %v7621_v3  ;;  %v4388_v59 = vrot.slane %v4299_v22, 2 }
 0x45a   : > { %v4610_v17 = vmax.f32 %v4594_v16, 0.0  ;;  %v4611_v24 = vmax.f32 %v4595_v6, 0.0 }
 0x45b   : > { %v4424_v26 = vsel %vm2568_vm2, %v4388_v59, %v4389_v41  ;;  %v4425_v30 = vsel %vm2568_vm2, %v4387_v20, %v4388_v59 }
 0x45c   : > { %4626 = vst [vmem:[%s7732_s23 + $0x20] sm:$0xff] %v4610_v17  ;;  %4627 = vst [vmem:[%s7732_s23 + $0x28] sm:$0xff] %v4611_v24  ;;  %v4451_v62 = vadd.f32 %v4425_v30, %v4071_v35  ;;  %v4452_v11 = vadd.f32 %v4424_v26, %v4074_v52 }
 0x45d   : > { %v5861_v2 = vpop.f32.mrb[160].mxu1  ;;  %v5909_v36 = vpop.f32.mrb[176].mxu0 }
 0x45e   : > { %v4515_v49 = vadd.f32 %v4451_v62, %v7626_v34  ;;  %v4516_v48 = vadd.f32 %v4452_v11, %v7629_v10  ;;  %v4086_v3 = vpop.f32.mrb[161].mxu1  ;;  %v4312_v31 = vpop.f32.mrb[177].mxu0  ;;  %v4393_v15 = vrot.slane %v5909_v36, 2 }
 0x45f   : > { %v4087_v45 = vadd.f32 %v4086_v3, %v7637_v37  ;;  %v5862_v54 = vpop.f32.mrb[162].mxu1  ;;  %v5910_v47 = vpop.f32.mrb[178].mxu0  ;;  %v4391_v4 = vrot.slane %v4312_v31, 2 }
 0x460   : > { %v4596_v5 = vadd.f32 %v7722_v19, %v4515_v49  ;;  %v4597_v29 = vadd.f32 %v7722_v19, %v4516_v48  ;;  %v4089_v53 = vpop.f32.mrb[163].mxu1  ;;  %v4315_v43 = vpop.f32.mrb[179].mxu0 }
 0x461   : > { %v4090_v34 = vadd.f32 %v4089_v53, %v7641_v40  ;;  %v4392_v8 = vrot.slane %v4315_v43, 2 }
 0x462   : > { %v4612_v10 = vmax.f32 %v4596_v5, 0.0  ;;  %v4613_v58 = vmax.f32 %v4597_v29, 0.0 }
 0x463   : > { %v4420_v0 = vsel %vm2568_vm2, %v4392_v8, %v4393_v15  ;;  %v4421_v37 = vsel %vm2568_vm2, %v4391_v4, %v4392_v8 }
 0x464   : > { %4628 = vst [vmem:[%s7732_s23 + $0x30] sm:$0xff] %v4612_v10  ;;  %4629 = vst [vmem:[%s7732_s23 + $0x38] sm:$0xff] %v4613_v58  ;;  %v4455_v14 = vadd.f32 %v4421_v37, %v4087_v45  ;;  %v4456_v46 = vadd.f32 %v4420_v0, %v4090_v34 }
 0x465   : > { %v5865_v56 = vpop.f32.mrb[164].mxu1  ;;  %v5913_v32 = vpop.f32.mrb[180].mxu0 }
 0x466   : > { %v4519_v9 = vadd.f32 %v4455_v14, %v7646_v60  ;;  %v4520_v55 = vadd.f32 %v4456_v46, %v7649_v38  ;;  %v4102_v40 = vpop.f32.mrb[165].mxu1  ;;  %v4328_v12 = vpop.f32.mrb[181].mxu0  ;;  %v4397_v28 = vrot.slane %v5913_v32, 2 }
 0x467   : > { %v4103_v50 = vadd.f32 %v4102_v40, %v7657_v13  ;;  %v5866_v61 = vpop.f32.mrb[166].mxu1  ;;  %v5914_v35 = vpop.f32.mrb[182].mxu0  ;;  %v4395_v22 = vrot.slane %v4328_v12, 2 }
 0x468   : > { %v4598_v51 = vadd.f32 %v7722_v19, %v4519_v9  ;;  %v4599_v39 = vadd.f32 %v7722_v19, %v4520_v55  ;;  %v4105_v16 = vpop.f32.mrb[167].mxu1  ;;  %v4331_v6 = vpop.f32.mrb[183].mxu0 }
 0x469   : > { %v4106_v60 = vadd.f32 %v4105_v16, %v7661_v7  ;;  %v4396_v41 = vrot.slane %v4331_v6, 2 }
 0x46a   : > { %v4614_v38 = vmax.f32 %v4598_v51, 0.0  ;;  %v4615_v20 = vmax.f32 %v4599_v39, 0.0 }
 0x46b   : > { %v4416_v52 = vsel %vm2568_vm2, %v4396_v41, %v4397_v28  ;;  %v4417_v13 = vsel %vm2568_vm2, %v4395_v22, %v4396_v41 }
 0x46c   : > { %4630 = vst [vmem:[%s7732_s23 + $0x40] sm:$0xff] %v4614_v38  ;;  %4631 = vst [vmem:[%s7732_s23 + $0x48] sm:$0xff] %v4615_v20  ;;  %v4459_v59 = vadd.f32 %v4417_v13, %v4103_v50  ;;  %v4460_v17 = vadd.f32 %v4416_v52, %v4106_v60 }
 0x46d   : > { %v5869_v24 = vpop.f32.mrb[168].mxu1 }
 0x46e   : > { %v4523_v26 = vadd.f32 %v4459_v59, %v7666_v44  ;;  %v4524_v7 = vadd.f32 %v4460_v17, %v7669_v27  ;;  %v4118_v30 = vpop.f32.mrb[169].mxu1 }
 0x46f   : > { %v4119_v62 = vadd.f32 %v4118_v30, %v7677_v63  ;;  %v5870_v11 = vpop.f32.mrb[170].mxu1 }
 0x470   : > { %v4600_v2 = vadd.f32 %v7722_v19, %v4523_v26  ;;  %v4601_v36 = vadd.f32 %v7722_v19, %v4524_v7  ;;  %v4121_v49 = vpop.f32.mrb[171].mxu1 }
 0x471   : > { %v4122_v48 = vadd.f32 %v4121_v49, %v7681_v23 }
 0x472   : > { %v4616_v3 = vmax.f32 %v4600_v2, 0.0  ;;  %v4617_v31 = vmax.f32 %v4601_v36, 0.0 }
 0x474   : > { %4632 = vst [vmem:[%s7732_s23 + $0x50] sm:$0xff] %v4616_v3  ;;  %4633 = vst [vmem:[%s7732_s23 + $0x58] sm:$0xff] %v4617_v31 }
 0x475   : > { %v5873_v45 = vpop.f32.mrb[172].mxu1 }
 0x476   : > { %v4134_v54 = vpop.f32.mrb[173].mxu1 }
 0x477   : > { %v4135_v44 = vadd.f32 %v4134_v54, %v7697_v25  ;;  %v5874_v27 = vpop.f32.mrb[174].mxu1 }
 0x478   : > { %v4137_v47 = vpop.f32.mrb[175].mxu1 }
 0x479   : > { %v4138_v63 = vadd.f32 %v4137_v47, %v7701_v1 }
 0x47d   : > { %v5917_v5 = vpop.f32.mrb[176].mxu1 }
 0x47e   : > { %v4344_v29 = vpop.f32.mrb[177].mxu1  ;;  %v4401_v15 = vrot.slane %v5917_v5, 2 }
 0x47f   : > { %v5918_v53 = vpop.f32.mrb[178].mxu1  ;;  %v4399_v4 = vrot.slane %v4344_v29, 2 }
 0x480   : > { %v4347_v43 = vpop.f32.mrb[179].mxu1 }
 0x481   : > { %v4400_v34 = vrot.slane %v4347_v43, 2 }
 0x483   : > { %v4412_v23 = vsel %vm2568_vm2, %v4400_v34, %v4401_v15  ;;  %v4413_v8 = vsel %vm2568_vm2, %v4399_v4, %v4400_v34 }
 0x484   : > { %v4463_v10 = vadd.f32 %v4413_v8, %v4119_v62  ;;  %v4464_v58 = vadd.f32 %v4412_v23, %v4122_v48 }
 0x485   : > { %v5921_v25 = vpop.f32.mrb[180].mxu1 }
 0x486   : > { %v4527_v1 = vadd.f32 %v4463_v10, %v7686_v33  ;;  %v4528_v0 = vadd.f32 %v4464_v58, %v7689_v57  ;;  %v4360_v37 = vpop.f32.mrb[181].mxu1  ;;  %v4405_v9 = vrot.slane %v5921_v25, 2 }
 0x487   : > { %v5922_v14 = vpop.f32.mrb[182].mxu1  ;;  %v4403_v55 = vrot.slane %v4360_v37, 2 }
 0x488   : > { %v4602_v46 = vadd.f32 %v7722_v19, %v4527_v1  ;;  %v4603_v56 = vadd.f32 %v7722_v19, %v4528_v0  ;;  %v4363_v32 = vpop.f32.mrb[183].mxu1 }
 0x489   : > { %v4404_v40 = vrot.slane %v4363_v32, 2 }
 0x48a   : > { %v4618_v12 = vmax.f32 %v4602_v46, 0.0  ;;  %v4619_v50 = vmax.f32 %v4603_v56, 0.0 }
 0x48b   : > { %v4408_v61 = vsel %vm2568_vm2, %v4404_v40, %v4405_v9  ;;  %v4409_v33 = vsel %vm2568_vm2, %v4403_v55, %v4404_v40 }
 0x48c   : > { %4634 = vst [vmem:[%s7732_s23 + $0x60] sm:$0xff] %v4618_v12  ;;  %4635 = vst [vmem:[%s7732_s23 + $0x68] sm:$0xff] %v4619_v50  ;;  %v4467_v57 = vadd.f32 %v4409_v33, %v4135_v44  ;;  %v4468_v35 = vadd.f32 %v4408_v61, %v4138_v63 }
 0x48e   : > { %v4531_v51 = vadd.f32 %v4467_v57, %v7706_v21  ;;  %v4532_v39 = vadd.f32 %v4468_v35, %v7709_v42 }
 0x490   : > { %v4604_v16 = vadd.f32 %v7722_v19, %v4531_v51  ;;  %v4605_v6 = vadd.f32 %v7722_v19, %v4532_v39 }
 0x492   : > { %v4620_v28 = vmax.f32 %v4604_v16, 0.0  ;;  %v4621_v22 = vmax.f32 %v4605_v6, 0.0 }
 0x494   : > { %4636 = vst [vmem:[%s7732_s23 + $0x70] sm:$0xff] %v4620_v28  ;;  %4637 = vst [vmem:[%s7732_s23 + $0x78] sm:$0xff] %v4621_v22 }
 0x495 PF: > { %s21_s19 = sadd.s32 1, %s6248_s19   ;;  %s7840_s17 = smov %s6244_s18 }
 0x496   : > { %p18_p7 = scmp.ge.s32.totalorder %s21_s19, 4   ;;  %s7841_s18 = smov %s7843_s20 }
 0x498   :  { %20 = sbr.rel (!%p18_p7) target bundleno = 2 (0x2), region = 117 }

</bundles_post_ra>
